<compile_context>
chip_gen: v7x
topology: tpu7x:2x2x1
jax: 0.10.0
libtpu: 0.0.40
codegen_flags: <defaults>
</compile_context>

<pallas_src>
import functools
import math

import jax
import jax.numpy as jnp
from jax import lax
from jax.experimental import pallas as pl
from jax.experimental.pallas import tpu as pltpu

EPS = 1e-5


# ---------------------------------------------------------------------------
# Fused kernel: 1x1 convs + BN + ReLU + dilated temporal convs + maxpool +
#               plain 1x1 + residual, all per (bnv, T) tile of rows.
# ---------------------------------------------------------------------------
def _ms_tcn_kernel(x_ref, wh_ref, shh_ref, wst_ref, shs_ref, wt_ref, smp_ref,
                   o_ref, scr_ref, *, T, cb, n_dil, dilations, ks, scr_off):
    # x_ref  : (bnv, T, Cin)           input tile, rows = (n, v) major, t minor
    # wh_ref : (n_dil+1, Cin, cb)      branch 1x1 weights, BN1 folded (ReLU'd)
    # shh_ref: (n_dil+1, 1, cb)        branch 1x1 shifts
    # wst_ref: (Cin, C_out)            residual + plain-1x1 weights (embedded)
    # shs_ref: (1, C_out)              all static shifts (res, pw, BN2's)
    # wt_ref : (n_dil, ks, cb, C_out)  temporal taps, BN2 folded, embedded
    # smp_ref: (cb, C_out)             maxpool BN2 scale-selection matrix
    # o_ref  : (bnv, T, C_out)         final concatenated + residual output
    # scr_ref: VMEM (bnv, T + 2*scr_off, cb) zero-halo staging buffer
    bnv = x_ref.shape[0]
    cin = x_ref.shape[2]
    c_out = o_ref.shape[2]
    rows = bnv * T

    x2 = x_ref[...].reshape(rows, cin)

    # Static path: residual (full C_out) + plain-1x1 branch + all shifts.
    out = jnp.dot(x2, wst_ref[...], preferred_element_type=jnp.float32)
    out = out + shs_ref[...]

    # Zero halo once; only the interior is rewritten per branch.
    scr_ref[...] = jnp.zeros(scr_ref.shape, jnp.float32)

    # --- dilated temporal-conv branches ---
    for b, d in enumerate(dilations):
        pad = (ks + (ks - 1) * (d - 1) - 1) // 2
        hb = jnp.maximum(
            jnp.dot(x2, wh_ref[b], preferred_element_type=jnp.float32)
            + shh_ref[b], 0.0)                               # (rows, cb)
        scr_ref[:, scr_off:scr_off + T, :] = hb.reshape(bnv, T, cb)
        for k in range(ks):                                  # static taps
            off = scr_off - pad + k * d
            hk = scr_ref[:, off:off + T, :].reshape(rows, cb)
            out = out + jnp.dot(hk, wt_ref[b, k],
                                preferred_element_type=jnp.float32)

    # --- max-pool branch: window 3 along T, stride 1, pad 1.  Input is
    # post-ReLU (>= 0) so the zero halo is equivalent to -inf padding. ---
    hm = jnp.maximum(
        jnp.dot(x2, wh_ref[n_dil], preferred_element_type=jnp.float32)
        + shh_ref[n_dil], 0.0)
    scr_ref[:, scr_off:scr_off + T, :] = hm.reshape(bnv, T, cb)
    m = jnp.maximum(
        jnp.maximum(scr_ref[:, scr_off - 1:scr_off - 1 + T, :],
                    scr_ref[:, scr_off:scr_off + T, :]),
        scr_ref[:, scr_off + 1:scr_off + 1 + T, :]).reshape(rows, cb)
    out = out + jnp.dot(m, smp_ref[...], preferred_element_type=jnp.float32)

    o_ref[...] = out.reshape(bnv, T, c_out)


def fused_ms_tcn(x3, wh, shh, wst, shs, wt_full, smp, *, T, cb, c_in, c_out,
                 n_dil, dilations, ks, bnv):
    NVp = x3.shape[0]
    assert NVp % bnv == 0
    max_pad = max(1, max((ks + (ks - 1) * (d - 1) - 1) // 2 for d in dilations))
    scr_off = ((max_pad + 8) // 8) * 8            # sublane-aligned, >= pad+1
    t_scr = T + 2 * scr_off
    kernel = functools.partial(
        _ms_tcn_kernel, T=T, cb=cb, n_dil=n_dil,
        dilations=tuple(dilations), ks=ks, scr_off=scr_off)
    flops = 2 * NVp * T * (c_in * c_out + (n_dil + 1) * c_in * cb
                           + n_dil * ks * cb * c_out + cb * c_out)
    bytes_accessed = 4 * (NVp * T * (c_in + c_out)
                          + (n_dil + 1) * c_in * cb + c_in * c_out
                          + n_dil * ks * cb * c_out + cb * c_out + 2 * c_out)
    return pl.pallas_call(
        kernel,
        out_shape=jax.ShapeDtypeStruct((NVp, T, c_out), jnp.float32),
        grid_spec=pltpu.PrefetchScalarGridSpec(
            num_scalar_prefetch=0,
            grid=(NVp // bnv,),
            in_specs=[
                pl.BlockSpec((bnv, T, c_in), lambda i: (i, 0, 0)),
                pl.BlockSpec((n_dil + 1, c_in, cb), lambda i: (0, 0, 0)),
                pl.BlockSpec((n_dil + 1, 1, cb), lambda i: (0, 0, 0)),
                pl.BlockSpec((c_in, c_out), lambda i: (0, 0)),
                pl.BlockSpec((1, c_out), lambda i: (0, 0)),
                pl.BlockSpec((n_dil, ks, cb, c_out), lambda i: (0, 0, 0, 0)),
                pl.BlockSpec((cb, c_out), lambda i: (0, 0)),
            ],
            out_specs=pl.BlockSpec((bnv, T, c_out), lambda i: (i, 0, 0)),
            scratch_shapes=[pltpu.VMEM((bnv, t_scr, cb), jnp.float32)],
        ),
        compiler_params=pltpu.CompilerParams(
            dimension_semantics=("parallel",)),
        cost_estimate=pl.CostEstimate(
            flops=flops, transcendentals=0, bytes_accessed=bytes_accessed),
    )(x3, wh, shh, wst, shs, wt_full, smp)


# ---------------------------------------------------------------------------
# Tiling heuristic
# ---------------------------------------------------------------------------
def _pick_bnv(NV, T, c_in, c_out, cb, t_scr):
    # Batch enough (n, v) rows per grid step that bnv*T gives ~512 MXU rows,
    # cap by a conservative VMEM budget (double-buffered x/out tiles + halo
    # scratch), and keep >= 2 grid steps so both v7x TensorCores get work.
    bnv = max(1, min(NV, 512 // max(T, 1)))
    bytes_per_nv_row = 4 * (2 * T * (c_in + c_out) + t_scr * cb)
    cap = max(1, (8 << 20) // max(bytes_per_nv_row, 1))
    bnv = min(bnv, cap)
    if NV > 1 and -(-NV // bnv) < 2:
        bnv = (NV + 1) // 2
    return max(bnv, 1)


# ---------------------------------------------------------------------------
# Parameter init (deterministic, mirrors weights_init) and BN folding
# ---------------------------------------------------------------------------
def _bn_params(key, c):
    return dict(
        gamma=1.0 + 0.02 * jax.random.normal(key, (c,), jnp.float32),
        beta=jnp.zeros((c,), jnp.float32),
        mean=jnp.zeros((c,), jnp.float32),   # running stats (eval mode)
        var=jnp.ones((c,), jnp.float32),
    )


def _kaiming(key, shape, fan_out):
    return jax.random.normal(key, shape, jnp.float32) * math.sqrt(2.0 / fan_out)


def init_params(key, c_in, c_out, kernel_size=3, dilations=(1, 2, 3, 4)):
    nb = len(dilations) + 2
    assert c_out % nb == 0
    cb = c_out // nb
    keys = iter(jax.random.split(key, 4 * len(dilations) + 16))
    params = dict(dilated=[], cb=cb)
    for d in dilations:
        params['dilated'].append(dict(
            d=d, ks=kernel_size,
            w1=_kaiming(next(keys), (cb, c_in), cb * 1 * 1),
            b1=jnp.zeros((cb,), jnp.float32),
            bn1=_bn_params(next(keys), cb),
            wt=_kaiming(next(keys), (cb, cb, kernel_size), cb * kernel_size * 1),
            bt=jnp.zeros((cb,), jnp.float32),
            bn2=_bn_params(next(keys), cb),
        ))
    params['maxpool'] = dict(
        w1=_kaiming(next(keys), (cb, c_in), cb),
        b1=jnp.zeros((cb,), jnp.float32),
        bn1=_bn_params(next(keys), cb),
        bn2=_bn_params(next(keys), cb),
    )
    params['pw'] = dict(
        w1=_kaiming(next(keys), (cb, c_in), cb),
        b1=jnp.zeros((cb,), jnp.float32),
        bn1=_bn_params(next(keys), cb),
    )
    # residual: TemporalConv(c_in, c_out, kernel_size=1, stride=1)
    params['res'] = dict(
        w=_kaiming(next(keys), (c_out, c_in), c_out),
        b=jnp.zeros((c_out,), jnp.float32),
        bn=_bn_params(next(keys), c_out),
    )
    return params


def fold_bn(bn, conv_bias):
    scale = bn['gamma'] / jnp.sqrt(bn['var'] + EPS)
    shift = bn['beta'] + scale * (conv_bias - bn['mean'])
    return scale, shift


# ---------------------------------------------------------------------------
# Forward pass (Pallas)
# ---------------------------------------------------------------------------
def multiscale_temporal_conv(x, params):
    # x: (N, C_in, T, V) float32, NCHW
    N, Cin, T, V = x.shape
    dil_params = params['dilated']
    n_dil = len(dil_params)
    nb = n_dil + 2
    cb = params['cb']
    c_out = nb * cb
    ks = dil_params[0]['ks']
    dilations = [bp['d'] for bp in dil_params]
    NV = N * V

    # ---- ReLU'd branch 1x1 convs with BN1 folded (dilated + maxpool) ----
    wh, shh = [], []
    for bp in dil_params:
        s, sh = fold_bn(bp['bn1'], bp['b1'])
        wh.append(bp['w1'].T * s[None, :])          # (Cin, cb)
        shh.append(sh)
    mp = params['maxpool']
    s, sh = fold_bn(mp['bn1'], mp['b1'])
    wh.append(mp['w1'].T * s[None, :])
    shh.append(sh)
    wh = jnp.stack(wh, axis=0)                      # (n_dil+1, Cin, cb)
    shh = jnp.stack(shh, axis=0)[:, None, :]        # (n_dil+1, 1, cb)

    # ---- static path: residual (full C_out) + plain 1x1 (embedded slot) ----
    r = params['res']
    s, sh = fold_bn(r['bn'], r['b'])
    w_static = r['w'].T * s[None, :]                # (Cin, C_out)
    shift_static = sh                               # (C_out,)
    pw = params['pw']
    s, sh = fold_bn(pw['bn1'], pw['b1'])
    pw_lo = (n_dil + 1) * cb
    w_static = w_static.at[:, pw_lo:pw_lo + cb].add(pw['w1'].T * s[None, :])
    shift_static = shift_static.at[pw_lo:pw_lo + cb].add(sh)

    # ---- dilated temporal taps, BN2 folded, embedded into C_out columns ----
    wt_full = jnp.zeros((n_dil, ks, cb, c_out), jnp.float32)
    for b, bp in enumerate(dil_params):
        s2, sh2 = fold_bn(bp['bn2'], bp['bt'])
        w_kio = jnp.transpose(bp['wt'], (2, 1, 0)) * s2[None, None, :]
        wt_full = wt_full.at[b, :, :, b * cb:(b + 1) * cb].set(w_kio)
        shift_static = shift_static.at[b * cb:(b + 1) * cb].add(sh2)

    # ---- maxpool BN2 as a scale-selection matrix + shift ----
    s2, sh2 = fold_bn(mp['bn2'], jnp.zeros((cb,), jnp.float32))
    mp_lo = n_dil * cb
    smp = jnp.zeros((cb, c_out), jnp.float32).at[
        jnp.arange(cb), mp_lo + jnp.arange(cb)].set(s2)
    shift_static = shift_static.at[mp_lo:mp_lo + cb].add(sh2)
    shift_static = shift_static[None, :]            # (1, C_out)

    # ---- layout: (N, Cin, T, V) -> (NV, T, Cin); x read from HBM once ----
    x3 = jnp.transpose(x, (0, 3, 2, 1)).reshape(NV, T, Cin)
    max_pad = max(1, max((ks + (ks - 1) * (d - 1) - 1) // 2 for d in dilations))
    scr_off = ((max_pad + 8) // 8) * 8
    bnv = _pick_bnv(NV, T, Cin, c_out, cb, T + 2 * scr_off)
    nv_pad = -(-NV // bnv) * bnv
    if nv_pad != NV:
        x3 = jnp.pad(x3, ((0, nv_pad - NV), (0, 0), (0, 0)))

    # ---- one fused pallas_call ----
    o = fused_ms_tcn(x3, wh, shh, w_static, shift_static, wt_full, smp,
                     T=T, cb=cb, c_in=Cin, c_out=c_out, n_dil=n_dil,
                     dilations=dilations, ks=ks, bnv=bnv)
    o = o[:NV].reshape(N, V, T, c_out)
    return jnp.transpose(o, (0, 3, 2, 1))           # -> (N, C_out, T, V)


# ---------------------------------------------------------------------------
# Pure-JAX reference (lax convs) for correctness check
# ---------------------------------------------------------------------------
def reference_forward(x, params):
    def bn_apply(h, bn):
        g = bn['gamma'][None, :, None, None]
        b = bn['beta'][None, :, None, None]
        m = bn['mean'][None, :, None, None]
        v = bn['var'][None, :, None, None]
        return g * (h - m) / jnp.sqrt(v + EPS) + b

    def conv(x, w4, b, padding, rhs_dilation=(1, 1)):
        y = lax.conv_general_dilated(
            x, w4, window_strides=(1, 1), padding=padding,
            rhs_dilation=rhs_dilation,
            dimension_numbers=('NCHW', 'OIHW', 'NCHW'),
            precision=lax.Precision.HIGHEST)
        return y + b[None, :, None, None]

    outs = []
    for bp in params['dilated']:
        h = conv(x, bp['w1'][:, :, None, None], bp['b1'], [(0, 0), (0, 0)])
        h = jax.nn.relu(bn_apply(h, bp['bn1']))
        d, ks = bp['d'], bp['ks']
        pad = (ks + (ks - 1) * (d - 1) - 1) // 2
        y = conv(h, bp['wt'][:, :, :, None], bp['bt'],
                 [(pad, pad), (0, 0)], rhs_dilation=(d, 1))
        outs.append(bn_apply(y, bp['bn2']))

    mp = params['maxpool']
    h = conv(x, mp['w1'][:, :, None, None], mp['b1'], [(0, 0), (0, 0)])
    h = jax.nn.relu(bn_apply(h, mp['bn1']))
    h = lax.reduce_window(h, -jnp.inf, lax.max, (1, 1, 3, 1), (1, 1, 1, 1),
                          [(0, 0), (0, 0), (1, 1), (0, 0)])
    outs.append(bn_apply(h, mp['bn2']))

    pw = params['pw']
    h = conv(x, pw['w1'][:, :, None, None], pw['b1'], [(0, 0), (0, 0)])
    outs.append(bn_apply(h, pw['bn1']))

    r = params['res']
    res = bn_apply(conv(x, r['w'][:, :, None, None], r['b'], [(0, 0), (0, 0)]),
                   r['bn'])
    return jnp.concatenate(outs, axis=1) + res


if __name__ == "__main__":
    key = jax.random.PRNGKey(0)
    kx, kp = jax.random.split(key)
    N, C_in, T, V = 2, 4, 16, 16
    C_out = 12  # must be a multiple of the 6 branches
    x = jax.random.normal(kx, (N, C_in, T, V), jnp.float32)
    params = init_params(kp, C_in, C_out)

    fwd = jax.jit(lambda xx: multiscale_temporal_conv(xx, params))
    out = jax.block_until_ready(fwd(x))
    assert out.shape == (N, C_out, T, V), out.shape

    ref = jax.block_until_ready(reference_forward(x, params))
    err = float(jnp.max(jnp.abs(out - ref)))
    assert err < 1e-3, f"max abs error {err}"
    print("KERNEL_OK")
</pallas_src>

<mosaic_0001>
module attributes {stable_mosaic.version = 11 : i64} {
  func.func @_ms_tcn_kernel(%arg0: i32, %arg1: memref<16x16x4xf32, #tpu.memory_space<vmem>>, %arg2: memref<5x4x2xf32, #tpu.memory_space<vmem>>, %arg3: memref<5x1x2xf32, #tpu.memory_space<vmem>>, %arg4: memref<4x12xf32, #tpu.memory_space<vmem>>, %arg5: memref<1x12xf32, #tpu.memory_space<vmem>>, %arg6: memref<4x3x2x12xf32, #tpu.memory_space<vmem>>, %arg7: memref<2x12xf32, #tpu.memory_space<vmem>>, %arg8: memref<16x16x12xf32, #tpu.memory_space<vmem>>, %arg9: memref<16x32x2xf32, #tpu.memory_space<vmem>>) attributes {dimension_semantics = [#tpu.dimension_semantics<parallel>], iteration_bounds = array<i64: 2>, scalar_prefetch = 0 : i64, scratch_operands = 1 : i64, tpu.core_type = #tpu.core_type<tc>, window_params = [{transform_indices = @transform_0, window_bounds = array<i64: 16, 16, 4>}, {pipeline_mode = #tpu.pipeline_mode<synchronous>, transform_indices = @transform_1, window_bounds = array<i64: 5, 4, 2>}, {pipeline_mode = #tpu.pipeline_mode<synchronous>, transform_indices = @transform_2, window_bounds = array<i64: 5, 1, 2>}, {pipeline_mode = #tpu.pipeline_mode<synchronous>, transform_indices = @transform_3, window_bounds = array<i64: 4, 12>}, {pipeline_mode = #tpu.pipeline_mode<synchronous>, transform_indices = @transform_4, window_bounds = array<i64: 1, 12>}, {pipeline_mode = #tpu.pipeline_mode<synchronous>, transform_indices = @transform_5, window_bounds = array<i64: 4, 3, 2, 12>}, {pipeline_mode = #tpu.pipeline_mode<synchronous>, transform_indices = @transform_6, window_bounds = array<i64: 2, 12>}, {transform_indices = @transform_7, window_bounds = array<i64: 16, 16, 12>}]} {
    %c0 = arith.constant 0 : index
    %c0_0 = arith.constant 0 : index
    %c0_1 = arith.constant 0 : index
    %0 = vector.load %arg1[%c0, %c0_0, %c0_1] : memref<16x16x4xf32, #tpu.memory_space<vmem>>, vector<16x16x4xf32>
    %1 = vector.shape_cast %0 : vector<16x16x4xf32> to vector<256x4xf32>
    %c0_2 = arith.constant 0 : index
    %c0_3 = arith.constant 0 : index
    %2 = vector.load %arg4[%c0_2, %c0_3] : memref<4x12xf32, #tpu.memory_space<vmem>>, vector<4x12xf32>
    %cst = arith.constant dense<0.000000e+00> : vector<256x12xf32>
    %3 = tpu.matmul %1, %2, %cst {dimension_numbers = #tpu.dot_dimension_numbers<[1], [0], [0], [1], [0, 0, 1, 1], [], []>} : vector<256x4xf32>, vector<4x12xf32>, vector<256x12xf32> -> vector<256x12xf32>
    %c0_4 = arith.constant 0 : index
    %c0_5 = arith.constant 0 : index
    %4 = vector.load %arg5[%c0_4, %c0_5] : memref<1x12xf32, #tpu.memory_space<vmem>>, vector<1x12xf32>
    %5 = vector.broadcast %4 : vector<1x12xf32> to vector<256x12xf32>
    %6 = arith.addf %3, %5 : vector<256x12xf32>
    %cst_6 = arith.constant 0.000000e+00 : f32
    %7 = vector.broadcast %cst_6 : f32 to vector<16x32x2xf32>
    %c0_7 = arith.constant 0 : index
    %c0_8 = arith.constant 0 : index
    %c0_9 = arith.constant 0 : index
    %8 = vector.load %arg9[%c0_7, %c0_8, %c0_9] : memref<16x32x2xf32, #tpu.memory_space<vmem>>, vector<16x32x2xf32>
    tpu.vector_store %arg9[%c0_7, %c0_8, %c0_9], %7 {strides = array<i32>} : memref<16x32x2xf32, #tpu.memory_space<vmem>>, vector<16x32x2xf32>,
    %c0_10 = arith.constant 0 : index
    %c0_11 = arith.constant 0 : index
    %c0_12 = arith.constant 0 : index
    %9 = vector.load %arg2[%c0_10, %c0_11, %c0_12] : memref<5x4x2xf32, #tpu.memory_space<vmem>>, vector<1x4x2xf32>
    %10 = vector.shape_cast %9 : vector<1x4x2xf32> to vector<4x2xf32>
    %cst_13 = arith.constant dense<0.000000e+00> : vector<256x2xf32>
    %11 = tpu.matmul %1, %10, %cst_13 {dimension_numbers = #tpu.dot_dimension_numbers<[1], [0], [0], [1], [0, 0, 1, 1], [], []>} : vector<256x4xf32>, vector<4x2xf32>, vector<256x2xf32> -> vector<256x2xf32>
    %c0_14 = arith.constant 0 : index
    %c0_15 = arith.constant 0 : index
    %c0_16 = arith.constant 0 : index
    %12 = vector.load %arg3[%c0_14, %c0_15, %c0_16] : memref<5x1x2xf32, #tpu.memory_space<vmem>>, vector<1x1x2xf32>
    %13 = vector.shape_cast %12 : vector<1x1x2xf32> to vector<1x2xf32>
    %14 = vector.broadcast %13 : vector<1x2xf32> to vector<256x2xf32>
    %15 = arith.addf %11, %14 : vector<256x2xf32>
    %cst_17 = arith.constant 0.000000e+00 : f32
    %16 = vector.broadcast %cst_17 : f32 to vector<256x2xf32>
    %17 = arith.maximumf %15, %16 : vector<256x2xf32>
    %18 = vector.shape_cast %17 : vector<256x2xf32> to vector<16x16x2xf32>
    %c0_18 = arith.constant 0 : index
    %c8 = arith.constant 8 : index
    %c0_19 = arith.constant 0 : index
    %19 = vector.load %arg9[%c0_18, %c8, %c0_19] : memref<16x32x2xf32, #tpu.memory_space<vmem>>, vector<16x16x2xf32>
    tpu.vector_store %arg9[%c0_18, %c8, %c0_19], %18 {strides = array<i32>} : memref<16x32x2xf32, #tpu.memory_space<vmem>>, vector<16x16x2xf32>,
    %c0_20 = arith.constant 0 : index
    %c7 = arith.constant 7 : index
    %c0_21 = arith.constant 0 : index
    %20 = vector.load %arg9[%c0_20, %c7, %c0_21] : memref<16x32x2xf32, #tpu.memory_space<vmem>>, vector<16x16x2xf32>
    %21 = vector.shape_cast %20 : vector<16x16x2xf32> to vector<256x2xf32>
    %c0_22 = arith.constant 0 : index
    %c0_23 = arith.constant 0 : index
    %c0_24 = arith.constant 0 : index
    %c0_25 = arith.constant 0 : index
    %22 = vector.load %arg6[%c0_22, %c0_23, %c0_24, %c0_25] : memref<4x3x2x12xf32, #tpu.memory_space<vmem>>, vector<1x1x2x12xf32>
    %23 = vector.shape_cast %22 : vector<1x1x2x12xf32> to vector<2x12xf32>
    %cst_26 = arith.constant dense<0.000000e+00> : vector<256x12xf32>
    %24 = tpu.matmul %21, %23, %cst_26 {dimension_numbers = #tpu.dot_dimension_numbers<[1], [0], [0], [1], [0, 0, 1, 1], [], []>} : vector<256x2xf32>, vector<2x12xf32>, vector<256x12xf32> -> vector<256x12xf32>
    %25 = arith.addf %6, %24 : vector<256x12xf32>
    %c0_27 = arith.constant 0 : index
    %c8_28 = arith.constant 8 : index
    %c0_29 = arith.constant 0 : index
    %26 = vector.load %arg9[%c0_27, %c8_28, %c0_29] : memref<16x32x2xf32, #tpu.memory_space<vmem>>, vector<16x16x2xf32>
    %27 = vector.shape_cast %26 : vector<16x16x2xf32> to vector<256x2xf32>
    %c0_30 = arith.constant 0 : index
    %c1 = arith.constant 1 : index
    %c0_31 = arith.constant 0 : index
    %c0_32 = arith.constant 0 : index
    %28 = vector.load %arg6[%c0_30, %c1, %c0_31, %c0_32] : memref<4x3x2x12xf32, #tpu.memory_space<vmem>>, vector<1x1x2x12xf32>
    %29 = vector.shape_cast %28 : vector<1x1x2x12xf32> to vector<2x12xf32>
    %cst_33 = arith.constant dense<0.000000e+00> : vector<256x12xf32>
    %30 = tpu.matmul %27, %29, %cst_33 {dimension_numbers = #tpu.dot_dimension_numbers<[1], [0], [0], [1], [0, 0, 1, 1], [], []>} : vector<256x2xf32>, vector<2x12xf32>, vector<256x12xf32> -> vector<256x12xf32>
    %31 = arith.addf %25, %30 : vector<256x12xf32>
    %c0_34 = arith.constant 0 : index
    %c9 = arith.constant 9 : index
    %c0_35 = arith.constant 0 : index
    %32 = vector.load %arg9[%c0_34, %c9, %c0_35] : memref<16x32x2xf32, #tpu.memory_space<vmem>>, vector<16x16x2xf32>
    %33 = vector.shape_cast %32 : vector<16x16x2xf32> to vector<256x2xf32>
    %c0_36 = arith.constant 0 : index
    %c2 = arith.constant 2 : index
    %c0_37 = arith.constant 0 : index
    %c0_38 = arith.constant 0 : index
    %34 = vector.load %arg6[%c0_36, %c2, %c0_37, %c0_38] : memref<4x3x2x12xf32, #tpu.memory_space<vmem>>, vector<1x1x2x12xf32>
    %35 = vector.shape_cast %34 : vector<1x1x2x12xf32> to vector<2x12xf32>
    %cst_39 = arith.constant dense<0.000000e+00> : vector<256x12xf32>
    %36 = tpu.matmul %33, %35, %cst_39 {dimension_numbers = #tpu.dot_dimension_numbers<[1], [0], [0], [1], [0, 0, 1, 1], [], []>} : vector<256x2xf32>, vector<2x12xf32>, vector<256x12xf32> -> vector<256x12xf32>
    %37 = arith.addf %31, %36 : vector<256x12xf32>
    %c1_40 = arith.constant 1 : index
    %c0_41 = arith.constant 0 : index
    %c0_42 = arith.constant 0 : index
    %38 = vector.load %arg2[%c1_40, %c0_41, %c0_42] : memref<5x4x2xf32, #tpu.memory_space<vmem>>, vector<1x4x2xf32>
    %39 = vector.shape_cast %38 : vector<1x4x2xf32> to vector<4x2xf32>
    %cst_43 = arith.constant dense<0.000000e+00> : vector<256x2xf32>
    %40 = tpu.matmul %1, %39, %cst_43 {dimension_numbers = #tpu.dot_dimension_numbers<[1], [0], [0], [1], [0, 0, 1, 1], [], []>} : vector<256x4xf32>, vector<4x2xf32>, vector<256x2xf32> -> vector<256x2xf32>
    %c1_44 = arith.constant 1 : index
    %c0_45 = arith.constant 0 : index
    %c0_46 = arith.constant 0 : index
    %41 = vector.load %arg3[%c1_44, %c0_45, %c0_46] : memref<5x1x2xf32, #tpu.memory_space<vmem>>, vector<1x1x2xf32>
    %42 = vector.shape_cast %41 : vector<1x1x2xf32> to vector<1x2xf32>
    %43 = vector.broadcast %42 : vector<1x2xf32> to vector<256x2xf32>
    %44 = arith.addf %40, %43 : vector<256x2xf32>
    %cst_47 = arith.constant 0.000000e+00 : f32
    %45 = vector.broadcast %cst_47 : f32 to vector<256x2xf32>
    %46 = arith.maximumf %44, %45 : vector<256x2xf32>
    %47 = vector.shape_cast %46 : vector<256x2xf32> to vector<16x16x2xf32>
    %c0_48 = arith.constant 0 : index
    %c8_49 = arith.constant 8 : index
    %c0_50 = arith.constant 0 : index
    %48 = vector.load %arg9[%c0_48, %c8_49, %c0_50] : memref<16x32x2xf32, #tpu.memory_space<vmem>>, vector<16x16x2xf32>
    tpu.vector_store %arg9[%c0_48, %c8_49, %c0_50], %47 {strides = array<i32>} : memref<16x32x2xf32, #tpu.memory_space<vmem>>, vector<16x16x2xf32>,
    %c0_51 = arith.constant 0 : index
    %c6 = arith.constant 6 : index
    %c0_52 = arith.constant 0 : index
    %49 = vector.load %arg9[%c0_51, %c6, %c0_52] : memref<16x32x2xf32, #tpu.memory_space<vmem>>, vector<16x16x2xf32>
    %50 = vector.shape_cast %49 : vector<16x16x2xf32> to vector<256x2xf32>
    %c1_53 = arith.constant 1 : index
    %c0_54 = arith.constant 0 : index
    %c0_55 = arith.constant 0 : index
    %c0_56 = arith.constant 0 : index
    %51 = vector.load %arg6[%c1_53, %c0_54, %c0_55, %c0_56] : memref<4x3x2x12xf32, #tpu.memory_space<vmem>>, vector<1x1x2x12xf32>
    %52 = vector.shape_cast %51 : vector<1x1x2x12xf32> to vector<2x12xf32>
    %cst_57 = arith.constant dense<0.000000e+00> : vector<256x12xf32>
    %53 = tpu.matmul %50, %52, %cst_57 {dimension_numbers = #tpu.dot_dimension_numbers<[1], [0], [0], [1], [0, 0, 1, 1], [], []>} : vector<256x2xf32>, vector<2x12xf32>, vector<256x12xf32> -> vector<256x12xf32>
    %54 = arith.addf %37, %53 : vector<256x12xf32>
    %c0_58 = arith.constant 0 : index
    %c8_59 = arith.constant 8 : index
    %c0_60 = arith.constant 0 : index
    %55 = vector.load %arg9[%c0_58, %c8_59, %c0_60] : memref<16x32x2xf32, #tpu.memory_space<vmem>>, vector<16x16x2xf32>
    %56 = vector.shape_cast %55 : vector<16x16x2xf32> to vector<256x2xf32>
    %c1_61 = arith.constant 1 : index
    %c1_62 = arith.constant 1 : index
    %c0_63 = arith.constant 0 : index
    %c0_64 = arith.constant 0 : index
    %57 = vector.load %arg6[%c1_61, %c1_62, %c0_63, %c0_64] : memref<4x3x2x12xf32, #tpu.memory_space<vmem>>, vector<1x1x2x12xf32>
    %58 = vector.shape_cast %57 : vector<1x1x2x12xf32> to vector<2x12xf32>
    %cst_65 = arith.constant dense<0.000000e+00> : vector<256x12xf32>
    %59 = tpu.matmul %56, %58, %cst_65 {dimension_numbers = #tpu.dot_dimension_numbers<[1], [0], [0], [1], [0, 0, 1, 1], [], []>} : vector<256x2xf32>, vector<2x12xf32>, vector<256x12xf32> -> vector<256x12xf32>
    %60 = arith.addf %54, %59 : vector<256x12xf32>
    %c0_66 = arith.constant 0 : index
    %c10 = arith.constant 10 : index
    %c0_67 = arith.constant 0 : index
    %61 = vector.load %arg9[%c0_66, %c10, %c0_67] : memref<16x32x2xf32, #tpu.memory_space<vmem>>, vector<16x16x2xf32>
    %62 = vector.shape_cast %61 : vector<16x16x2xf32> to vector<256x2xf32>
    %c1_68 = arith.constant 1 : index
    %c2_69 = arith.constant 2 : index
    %c0_70 = arith.constant 0 : index
    %c0_71 = arith.constant 0 : index
    %63 = vector.load %arg6[%c1_68, %c2_69, %c0_70, %c0_71] : memref<4x3x2x12xf32, #tpu.memory_space<vmem>>, vector<1x1x2x12xf32>
    %64 = vector.shape_cast %63 : vector<1x1x2x12xf32> to vector<2x12xf32>
    %cst_72 = arith.constant dense<0.000000e+00> : vector<256x12xf32>
    %65 = tpu.matmul %62, %64, %cst_72 {dimension_numbers = #tpu.dot_dimension_numbers<[1], [0], [0], [1], [0, 0, 1, 1], [], []>} : vector<256x2xf32>, vector<2x12xf32>, vector<256x12xf32> -> vector<256x12xf32>
    %66 = arith.addf %60, %65 : vector<256x12xf32>
    %c2_73 = arith.constant 2 : index
    %c0_74 = arith.constant 0 : index
    %c0_75 = arith.constant 0 : index
    %67 = vector.load %arg2[%c2_73, %c0_74, %c0_75] : memref<5x4x2xf32, #tpu.memory_space<vmem>>, vector<1x4x2xf32>
    %68 = vector.shape_cast %67 : vector<1x4x2xf32> to vector<4x2xf32>
    %cst_76 = arith.constant dense<0.000000e+00> : vector<256x2xf32>
    %69 = tpu.matmul %1, %68, %cst_76 {dimension_numbers = #tpu.dot_dimension_numbers<[1], [0], [0], [1], [0, 0, 1, 1], [], []>} : vector<256x4xf32>, vector<4x2xf32>, vector<256x2xf32> -> vector<256x2xf32>
    %c2_77 = arith.constant 2 : index
    %c0_78 = arith.constant 0 : index
    %c0_79 = arith.constant 0 : index
    %70 = vector.load %arg3[%c2_77, %c0_78, %c0_79] : memref<5x1x2xf32, #tpu.memory_space<vmem>>, vector<1x1x2xf32>
    %71 = vector.shape_cast %70 : vector<1x1x2xf32> to vector<1x2xf32>
    %72 = vector.broadcast %71 : vector<1x2xf32> to vector<256x2xf32>
    %73 = arith.addf %69, %72 : vector<256x2xf32>
    %cst_80 = arith.constant 0.000000e+00 : f32
    %74 = vector.broadcast %cst_80 : f32 to vector<256x2xf32>
    %75 = arith.maximumf %73, %74 : vector<256x2xf32>
    %76 = vector.shape_cast %75 : vector<256x2xf32> to vector<16x16x2xf32>
    %c0_81 = arith.constant 0 : index
    %c8_82 = arith.constant 8 : index
    %c0_83 = arith.constant 0 : index
    %77 = vector.load %arg9[%c0_81, %c8_82, %c0_83] : memref<16x32x2xf32, #tpu.memory_space<vmem>>, vector<16x16x2xf32>
    tpu.vector_store %arg9[%c0_81, %c8_82, %c0_83], %76 {strides = array<i32>} : memref<16x32x2xf32, #tpu.memory_space<vmem>>, vector<16x16x2xf32>,
    %c0_84 = arith.constant 0 : index
    %c5 = arith.constant 5 : index
    %c0_85 = arith.constant 0 : index
    %78 = vector.load %arg9[%c0_84, %c5, %c0_85] : memref<16x32x2xf32, #tpu.memory_space<vmem>>, vector<16x16x2xf32>
    %79 = vector.shape_cast %78 : vector<16x16x2xf32> to vector<256x2xf32>
    %c2_86 = arith.constant 2 : index
    %c0_87 = arith.constant 0 : index
    %c0_88 = arith.constant 0 : index
    %c0_89 = arith.constant 0 : index
    %80 = vector.load %arg6[%c2_86, %c0_87, %c0_88, %c0_89] : memref<4x3x2x12xf32, #tpu.memory_space<vmem>>, vector<1x1x2x12xf32>
    %81 = vector.shape_cast %80 : vector<1x1x2x12xf32> to vector<2x12xf32>
    %cst_90 = arith.constant dense<0.000000e+00> : vector<256x12xf32>
    %82 = tpu.matmul %79, %81, %cst_90 {dimension_numbers = #tpu.dot_dimension_numbers<[1], [0], [0], [1], [0, 0, 1, 1], [], []>} : vector<256x2xf32>, vector<2x12xf32>, vector<256x12xf32> -> vector<256x12xf32>
    %83 = arith.addf %66, %82 : vector<256x12xf32>
    %c0_91 = arith.constant 0 : index
    %c8_92 = arith.constant 8 : index
    %c0_93 = arith.constant 0 : index
    %84 = vector.load %arg9[%c0_91, %c8_92, %c0_93] : memref<16x32x2xf32, #tpu.memory_space<vmem>>, vector<16x16x2xf32>
    %85 = vector.shape_cast %84 : vector<16x16x2xf32> to vector<256x2xf32>
    %c2_94 = arith.constant 2 : index
    %c1_95 = arith.constant 1 : index
    %c0_96 = arith.constant 0 : index
    %c0_97 = arith.constant 0 : index
    %86 = vector.load %arg6[%c2_94, %c1_95, %c0_96, %c0_97] : memref<4x3x2x12xf32, #tpu.memory_space<vmem>>, vector<1x1x2x12xf32>
    %87 = vector.shape_cast %86 : vector<1x1x2x12xf32> to vector<2x12xf32>
    %cst_98 = arith.constant dense<0.000000e+00> : vector<256x12xf32>
    %88 = tpu.matmul %85, %87, %cst_98 {dimension_numbers = #tpu.dot_dimension_numbers<[1], [0], [0], [1], [0, 0, 1, 1], [], []>} : vector<256x2xf32>, vector<2x12xf32>, vector<256x12xf32> -> vector<256x12xf32>
    %89 = arith.addf %83, %88 : vector<256x12xf32>
    %c0_99 = arith.constant 0 : index
    %c11 = arith.constant 11 : index
    %c0_100 = arith.constant 0 : index
    %90 = vector.load %arg9[%c0_99, %c11, %c0_100] : memref<16x32x2xf32, #tpu.memory_space<vmem>>, vector<16x16x2xf32>
    %91 = vector.shape_cast %90 : vector<16x16x2xf32> to vector<256x2xf32>
    %c2_101 = arith.constant 2 : index
    %c2_102 = arith.constant 2 : index
    %c0_103 = arith.constant 0 : index
    %c0_104 = arith.constant 0 : index
    %92 = vector.load %arg6[%c2_101, %c2_102, %c0_103, %c0_104] : memref<4x3x2x12xf32, #tpu.memory_space<vmem>>, vector<1x1x2x12xf32>
    %93 = vector.shape_cast %92 : vector<1x1x2x12xf32> to vector<2x12xf32>
    %cst_105 = arith.constant dense<0.000000e+00> : vector<256x12xf32>
    %94 = tpu.matmul %91, %93, %cst_105 {dimension_numbers = #tpu.dot_dimension_numbers<[1], [0], [0], [1], [0, 0, 1, 1], [], []>} : vector<256x2xf32>, vector<2x12xf32>, vector<256x12xf32> -> vector<256x12xf32>
    %95 = arith.addf %89, %94 : vector<256x12xf32>
    %c3 = arith.constant 3 : index
    %c0_106 = arith.constant 0 : index
    %c0_107 = arith.constant 0 : index
    %96 = vector.load %arg2[%c3, %c0_106, %c0_107] : memref<5x4x2xf32, #tpu.memory_space<vmem>>, vector<1x4x2xf32>
    %97 = vector.shape_cast %96 : vector<1x4x2xf32> to vector<4x2xf32>
    %cst_108 = arith.constant dense<0.000000e+00> : vector<256x2xf32>
    %98 = tpu.matmul %1, %97, %cst_108 {dimension_numbers = #tpu.dot_dimension_numbers<[1], [0], [0], [1], [0, 0, 1, 1], [], []>} : vector<256x4xf32>, vector<4x2xf32>, vector<256x2xf32> -> vector<256x2xf32>
    %c3_109 = arith.constant 3 : index
    %c0_110 = arith.constant 0 : index
    %c0_111 = arith.constant 0 : index
    %99 = vector.load %arg3[%c3_109, %c0_110, %c0_111] : memref<5x1x2xf32, #tpu.memory_space<vmem>>, vector<1x1x2xf32>
    %100 = vector.shape_cast %99 : vector<1x1x2xf32> to vector<1x2xf32>
    %101 = vector.broadcast %100 : vector<1x2xf32> to vector<256x2xf32>
    %102 = arith.addf %98, %101 : vector<256x2xf32>
    %cst_112 = arith.constant 0.000000e+00 : f32
    %103 = vector.broadcast %cst_112 : f32 to vector<256x2xf32>
    %104 = arith.maximumf %102, %103 : vector<256x2xf32>
    %105 = vector.shape_cast %104 : vector<256x2xf32> to vector<16x16x2xf32>
    %c0_113 = arith.constant 0 : index
    %c8_114 = arith.constant 8 : index
    %c0_115 = arith.constant 0 : index
    %106 = vector.load %arg9[%c0_113, %c8_114, %c0_115] : memref<16x32x2xf32, #tpu.memory_space<vmem>>, vector<16x16x2xf32>
    tpu.vector_store %arg9[%c0_113, %c8_114, %c0_115], %105 {strides = array<i32>} : memref<16x32x2xf32, #tpu.memory_space<vmem>>, vector<16x16x2xf32>,
    %c0_116 = arith.constant 0 : index
    %c4 = arith.constant 4 : index
    %c0_117 = arith.constant 0 : index
    %107 = vector.load %arg9[%c0_116, %c4, %c0_117] : memref<16x32x2xf32, #tpu.memory_space<vmem>>, vector<16x16x2xf32>
    %108 = vector.shape_cast %107 : vector<16x16x2xf32> to vector<256x2xf32>
    %c3_118 = arith.constant 3 : index
    %c0_119 = arith.constant 0 : index
    %c0_120 = arith.constant 0 : index
    %c0_121 = arith.constant 0 : index
    %109 = vector.load %arg6[%c3_118, %c0_119, %c0_120, %c0_121] : memref<4x3x2x12xf32, #tpu.memory_space<vmem>>, vector<1x1x2x12xf32>
    %110 = vector.shape_cast %109 : vector<1x1x2x12xf32> to vector<2x12xf32>
    %cst_122 = arith.constant dense<0.000000e+00> : vector<256x12xf32>
    %111 = tpu.matmul %108, %110, %cst_122 {dimension_numbers = #tpu.dot_dimension_numbers<[1], [0], [0], [1], [0, 0, 1, 1], [], []>} : vector<256x2xf32>, vector<2x12xf32>, vector<256x12xf32> -> vector<256x12xf32>
    %112 = arith.addf %95, %111 : vector<256x12xf32>
    %c0_123 = arith.constant 0 : index
    %c8_124 = arith.constant 8 : index
    %c0_125 = arith.constant 0 : index
    %113 = vector.load %arg9[%c0_123, %c8_124, %c0_125] : memref<16x32x2xf32, #tpu.memory_space<vmem>>, vector<16x16x2xf32>
    %114 = vector.shape_cast %113 : vector<16x16x2xf32> to vector<256x2xf32>
    %c3_126 = arith.constant 3 : index
    %c1_127 = arith.constant 1 : index
    %c0_128 = arith.constant 0 : index
    %c0_129 = arith.constant 0 : index
    %115 = vector.load %arg6[%c3_126, %c1_127, %c0_128, %c0_129] : memref<4x3x2x12xf32, #tpu.memory_space<vmem>>, vector<1x1x2x12xf32>
    %116 = vector.shape_cast %115 : vector<1x1x2x12xf32> to vector<2x12xf32>
    %cst_130 = arith.constant dense<0.000000e+00> : vector<256x12xf32>
    %117 = tpu.matmul %114, %116, %cst_130 {dimension_numbers = #tpu.dot_dimension_numbers<[1], [0], [0], [1], [0, 0, 1, 1], [], []>} : vector<256x2xf32>, vector<2x12xf32>, vector<256x12xf32> -> vector<256x12xf32>
    %118 = arith.addf %112, %117 : vector<256x12xf32>
    %c0_131 = arith.constant 0 : index
    %c12 = arith.constant 12 : index
    %c0_132 = arith.constant 0 : index
    %119 = vector.load %arg9[%c0_131, %c12, %c0_132] : memref<16x32x2xf32, #tpu.memory_space<vmem>>, vector<16x16x2xf32>
    %120 = vector.shape_cast %119 : vector<16x16x2xf32> to vector<256x2xf32>
    %c3_133 = arith.constant 3 : index
    %c2_134 = arith.constant 2 : index
    %c0_135 = arith.constant 0 : index
    %c0_136 = arith.constant 0 : index
    %121 = vector.load %arg6[%c3_133, %c2_134, %c0_135, %c0_136] : memref<4x3x2x12xf32, #tpu.memory_space<vmem>>, vector<1x1x2x12xf32>
    %122 = vector.shape_cast %121 : vector<1x1x2x12xf32> to vector<2x12xf32>
    %cst_137 = arith.constant dense<0.000000e+00> : vector<256x12xf32>
    %123 = tpu.matmul %120, %122, %cst_137 {dimension_numbers = #tpu.dot_dimension_numbers<[1], [0], [0], [1], [0, 0, 1, 1], [], []>} : vector<256x2xf32>, vector<2x12xf32>, vector<256x12xf32> -> vector<256x12xf32>
    %124 = arith.addf %118, %123 : vector<256x12xf32>
    %c4_138 = arith.constant 4 : index
    %c0_139 = arith.constant 0 : index
    %c0_140 = arith.constant 0 : index
    %125 = vector.load %arg2[%c4_138, %c0_139, %c0_140] : memref<5x4x2xf32, #tpu.memory_space<vmem>>, vector<1x4x2xf32>
    %126 = vector.shape_cast %125 : vector<1x4x2xf32> to vector<4x2xf32>
    %cst_141 = arith.constant dense<0.000000e+00> : vector<256x2xf32>
    %127 = tpu.matmul %1, %126, %cst_141 {dimension_numbers = #tpu.dot_dimension_numbers<[1], [0], [0], [1], [0, 0, 1, 1], [], []>} : vector<256x4xf32>, vector<4x2xf32>, vector<256x2xf32> -> vector<256x2xf32>
    %c4_142 = arith.constant 4 : index
    %c0_143 = arith.constant 0 : index
    %c0_144 = arith.constant 0 : index
    %128 = vector.load %arg3[%c4_142, %c0_143, %c0_144] : memref<5x1x2xf32, #tpu.memory_space<vmem>>, vector<1x1x2xf32>
    %129 = vector.shape_cast %128 : vector<1x1x2xf32> to vector<1x2xf32>
    %130 = vector.broadcast %129 : vector<1x2xf32> to vector<256x2xf32>
    %131 = arith.addf %127, %130 : vector<256x2xf32>
    %cst_145 = arith.constant 0.000000e+00 : f32
    %132 = vector.broadcast %cst_145 : f32 to vector<256x2xf32>
    %133 = arith.maximumf %131, %132 : vector<256x2xf32>
    %134 = vector.shape_cast %133 : vector<256x2xf32> to vector<16x16x2xf32>
    %c0_146 = arith.constant 0 : index
    %c8_147 = arith.constant 8 : index
    %c0_148 = arith.constant 0 : index
    %135 = vector.load %arg9[%c0_146, %c8_147, %c0_148] : memref<16x32x2xf32, #tpu.memory_space<vmem>>, vector<16x16x2xf32>
    tpu.vector_store %arg9[%c0_146, %c8_147, %c0_148], %134 {strides = array<i32>} : memref<16x32x2xf32, #tpu.memory_space<vmem>>, vector<16x16x2xf32>,
    %c0_149 = arith.constant 0 : index
    %c7_150 = arith.constant 7 : index
    %c0_151 = arith.constant 0 : index
    %136 = vector.load %arg9[%c0_149, %c7_150, %c0_151] : memref<16x32x2xf32, #tpu.memory_space<vmem>>, vector<16x16x2xf32>
    %c0_152 = arith.constant 0 : index
    %c8_153 = arith.constant 8 : index
    %c0_154 = arith.constant 0 : index
    %137 = vector.load %arg9[%c0_152, %c8_153, %c0_154] : memref<16x32x2xf32, #tpu.memory_space<vmem>>, vector<16x16x2xf32>
    %138 = arith.maximumf %136, %137 : vector<16x16x2xf32>
    %c0_155 = arith.constant 0 : index
    %c9_156 = arith.constant 9 : index
    %c0_157 = arith.constant 0 : index
    %139 = vector.load %arg9[%c0_155, %c9_156, %c0_157] : memref<16x32x2xf32, #tpu.memory_space<vmem>>, vector<16x16x2xf32>
    %140 = arith.maximumf %138, %139 : vector<16x16x2xf32>
    %141 = vector.shape_cast %140 : vector<16x16x2xf32> to vector<256x2xf32>
    %c0_158 = arith.constant 0 : index
    %c0_159 = arith.constant 0 : index
    %142 = vector.load %arg7[%c0_158, %c0_159] : memref<2x12xf32, #tpu.memory_space<vmem>>, vector<2x12xf32>
    %cst_160 = arith.constant dense<0.000000e+00> : vector<256x12xf32>
    %143 = tpu.matmul %141, %142, %cst_160 {dimension_numbers = #tpu.dot_dimension_numbers<[1], [0], [0], [1], [0, 0, 1, 1], [], []>} : vector<256x2xf32>, vector<2x12xf32>, vector<256x12xf32> -> vector<256x12xf32>
    %144 = arith.addf %124, %143 : vector<256x12xf32>
    %145 = vector.shape_cast %144 : vector<256x12xf32> to vector<16x16x12xf32>
    %c0_161 = arith.constant 0 : index
    %c0_162 = arith.constant 0 : index
    %c0_163 = arith.constant 0 : index
    %146 = vector.load %arg8[%c0_161, %c0_162, %c0_163] : memref<16x16x12xf32, #tpu.memory_space<vmem>>, vector<16x16x12xf32>
    tpu.vector_store %arg8[%c0_161, %c0_162, %c0_163], %145 {strides = array<i32>} : memref<16x16x12xf32, #tpu.memory_space<vmem>>, vector<16x16x12xf32>,
    return
  }
  func.func @transform_0(%arg0: i32) -> (i32, i32, i32) {
    %c0_i32 = arith.constant 0 : i32
    %c0_i32_0 = arith.constant 0 : i32
    %c0_i32_1 = arith.constant 0 : i32
    return %arg0, %c0_i32, %c0_i32_0 : i32, i32, i32
  }
  func.func @transform_1(%arg0: i32) -> (i32, i32, i32) {
    %c0_i32 = arith.constant 0 : i32
    %c0_i32_0 = arith.constant 0 : i32
    %c0_i32_1 = arith.constant 0 : i32
    %c0_i32_2 = arith.constant 0 : i32
    return %c0_i32, %c0_i32_0, %c0_i32_1 : i32, i32, i32
  }
  func.func @transform_2(%arg0: i32) -> (i32, i32, i32) {
    %c0_i32 = arith.constant 0 : i32
    %c0_i32_0 = arith.constant 0 : i32
    %c0_i32_1 = arith.constant 0 : i32
    %c0_i32_2 = arith.constant 0 : i32
    return %c0_i32, %c0_i32_0, %c0_i32_1 : i32, i32, i32
  }
  func.func @transform_3(%arg0: i32) -> (i32, i32) {
    %c0_i32 = arith.constant 0 : i32
    %c0_i32_0 = arith.constant 0 : i32
    %c0_i32_1 = arith.constant 0 : i32
    return %c0_i32, %c0_i32_0 : i32, i32
  }
  func.func @transform_4(%arg0: i32) -> (i32, i32) {
    %c0_i32 = arith.constant 0 : i32
    %c0_i32_0 = arith.constant 0 : i32
    %c0_i32_1 = arith.constant 0 : i32
    return %c0_i32, %c0_i32_0 : i32, i32
  }
  func.func @transform_5(%arg0: i32) -> (i32, i32, i32, i32) {
    %c0_i32 = arith.constant 0 : i32
    %c0_i32_0 = arith.constant 0 : i32
    %c0_i32_1 = arith.constant 0 : i32
    %c0_i32_2 = arith.constant 0 : i32
    %c0_i32_3 = arith.constant 0 : i32
    return %c0_i32, %c0_i32_0, %c0_i32_1, %c0_i32_2 : i32, i32, i32, i32
  }
  func.func @transform_6(%arg0: i32) -> (i32, i32) {
    %c0_i32 = arith.constant 0 : i32
    %c0_i32_0 = arith.constant 0 : i32
    %c0_i32_1 = arith.constant 0 : i32
    return %c0_i32, %c0_i32_0 : i32, i32
  }
  func.func @transform_7(%arg0: i32) -> (i32, i32, i32) {
    %c0_i32 = arith.constant 0 : i32
    %c0_i32_0 = arith.constant 0 : i32
    %c0_i32_1 = arith.constant 0 : i32
    return %arg0, %c0_i32, %c0_i32_0 : i32, i32, i32
  }
}

</mosaic_0001>

<bundles_post_ra>
// kernel: _lambda_.1
= control target key start
LH: loop header
LB: loop body
LE: loop exit
PB: predicated region body
PF: predicated region fallthrough
CT: control target
= control target key end

     0   :  { %s10298_s24 = smov 0   ;;  %s12351_s0 = inlined_call_operand.vmem [shape: f32[32,16,4], index: 0, kind: input, shape index: {}]   ;;  %s12352_s1 = inlined_call_operand.vmem [shape: f32[5,4,2], index: 1, kind: input, shape index: {}]   ;;  %s12353_s2 = inlined_call_operand.vmem [shape: f32[5,1,2], index: 2, kind: input, shape index: {}]   ;;  %s12354_s3 = inlined_call_operand.vmem [shape: f32[4,12], index: 3, kind: input, shape index: {}]   ;;  %s12355_s4 = inlined_call_operand.vmem [shape: f32[1,12], index: 4, kind: input, shape index: {}]   ;;  %s12356_s5 = inlined_call_operand.vmem [shape: f32[4,3,2,12], index: 5, kind: input, shape index: {}]   ;;  %s12357_s6 = inlined_call_operand.vmem [shape: f32[2,12], index: 6, kind: input, shape index: {}]   ;;  %s12358_s7 = inlined_call_operand.vmem [shape: f32[32,16,12], index: 7, kind: output, shape index: {}]  }
   0x1 LB: > { %s7514_s25 = sadd.s32 4294967295, %s10255_s24   ;;  %p7518_p0 = scmp.ge.s32.totalorder %s10255_s24, 1  ;;  %s10255_s24 = sphi %s10298_s24, %s17_s24  }
   0x2   : > { %p239_p1 = scmp.lt.s32.totalorder %s10255_s24, 3 }
   0x4   : > { %p240_p2 = pnand %p7518_p0, %p239_p1 }
   0x6   : > { %243 = sbr.rel (%p240_p2) target bundleno = 1679 (0x68f), region = 48 }
   0xd   : > { %v319_v0 = vld [vmem:[%s12354_s3] sm:$0xf]  ;;  %vm424_vm0 = vcmask 1043456   ;;  %s7519_s28 = sshll.u32 %s7514_s25, 4  ;;  %vm327_vm1 = vcmask 31744   ;;  %vm653_vm2 = vcmask 15360  }
   0xe   : > { %8808 = vmatprep.subr.msk.mxu1 %vm424_vm0, %v319_v0  ;;  %p274_p3 = scmp.lt.s32.totalorder %s7519_s28, 31  ;;  %v10313_v1 = vld [vmem:[%s12352_s1] sm:$0xf]  ;;  %v10257_v2 = vmov 0.0   ;;  %vm1147_vm3 = vcmask 1041408   ;;  %vm7423_vm4 = vcmask 97280  }
   0xf   : > { %8809 = vmatpush3.msk.msra.mxu1 %vm424_vm0, %v319_v0  ;;  %656 = vst.msk [vmem:[#allocation2 + $0x10] sm:$0xff] %vm653_vm2, %v10257_v2  ;;  %654 = vst.msk [vmem:[#allocation2] sm:$0xff] %vm653_vm2, %v10257_v2  ;;  %v10470_v6 = vld [vmem:[%s12356_s5] sm:$0x3]  ;;  %v7626_v36 = vld [vmem:[%s12356_s5 + $0x2] sm:$0x3] }
  0x10   : > { %s12402_s28 = smov (!%p274_p3, %s7519_s28), 31  ;;  %8858 = vmatprep.subr.msk.mxu1 %vm424_vm0, %v10313_v1  ;;  %655 = vst.msk [vmem:[#allocation2 + $0x8] sm:$0xff] %vm653_vm2, %v10257_v2  ;;  %657 = vst.msk [vmem:[#allocation2 + $0x18] sm:$0xff] %vm653_vm2, %v10257_v2  ;;  %v10698_v37 = vld [vmem:[%s12353_s2] ss:$0 sm:$0xff] }
  0x11   : > { %s8179_s8 = sshll.u32 %s12402_s28, 4  ;;  %658 = vst.msk [vmem:[#allocation2 + $0x20] sm:$0xff] %vm653_vm2, %v10257_v2  ;;  %659 = vst.msk [vmem:[#allocation2 + $0x28] sm:$0xff] %vm653_vm2, %v10257_v2  ;;  %v10718_v62 = vld [vmem:[%s12356_s5 + $0x4] sm:$0x3] }
  0x12   : > { %s10326_s11 = scalar_lea.vmem %s12351_s0, %s8179_s8  ;;  %660 = vst.msk [vmem:[#allocation2 + $0x30] sm:$0xff] %vm653_vm2, %v10257_v2  ;;  %661 = vst.msk [vmem:[#allocation2 + $0x38] sm:$0xff] %vm653_vm2, %v10257_v2  ;;  %s12222_s20 = scalar_lea.vmem %s12358_s7, %s8179_s8 }
  0x13   : > { %662 = vst.msk [vmem:[#allocation2 + $0x40] sm:$0xff] %vm653_vm2, %v10257_v2  ;;  %663 = vst.msk [vmem:[#allocation2 + $0x48] sm:$0xff] %vm653_vm2, %v10257_v2  ;;  %v10457_v3 = vld [vmem:[%s10326_s11] sm:$0xff]  ;;  %v10460_v4 = vld [vmem:[%s10326_s11 + $0x8] sm:$0xff] }
  0x14   : > { %664 = vst.msk [vmem:[#allocation2 + $0x50] sm:$0xff] %vm653_vm2, %v10257_v2  ;;  %665 = vst.msk [vmem:[#allocation2 + $0x58] sm:$0xff] %vm653_vm2, %v10257_v2  ;;  %v10463_v5 = vld [vmem:[%s10326_s11 + $0x10] sm:$0xff]  ;;  %8810 = vmatprep.mubr.msk.f32.mxu1 %vm327_vm1, %v10457_v3  ;;  %v10479_v7 = vld [vmem:[%s10326_s11 + $0x18] sm:$0xff] }
  0x15   : > { %666 = vst.msk [vmem:[#allocation2 + $0x60] sm:$0xff] %vm653_vm2, %v10257_v2  ;;  %667 = vst.msk [vmem:[#allocation2 + $0x68] sm:$0xff] %vm653_vm2, %v10257_v2  ;;  %8811 = vmatmul.mubr.msk.f32.vlgmr.msra.gmra.mrb[0].mxu1 %vm327_vm1, %v10460_v4  ;;  %v10482_v8 = vld [vmem:[%s10326_s11 + $0x20] sm:$0xff]  ;;  %v10491_v9 = vld [vmem:[%s10326_s11 + $0x28] sm:$0xff] }
  0x16   : > { %668 = vst.msk [vmem:[#allocation2 + $0x70] sm:$0xff] %vm653_vm2, %v10257_v2  ;;  %669 = vst.msk [vmem:[#allocation2 + $0x78] sm:$0xff] %vm653_vm2, %v10257_v2  ;;  %8859 = vmatpush3.msk.msra.mxu1 %vm424_vm0, %v10313_v1  ;;  %8813 = vmatprep.mubr.msk.f32.mxu1 %vm327_vm1, %v10463_v5  ;;  %v10494_v10 = vld [vmem:[%s10326_s11 + $0x30] sm:$0xff]  ;;  %v10501_v11 = vld [vmem:[%s10326_s11 + $0x38] sm:$0xff] }
  0x17   : > { %670 = vst.msk [vmem:[#allocation2 + $0x80] sm:$0xff] %vm653_vm2, %v10257_v2  ;;  %671 = vst.msk [vmem:[#allocation2 + $0x88] sm:$0xff] %vm653_vm2, %v10257_v2  ;;  %8908 = vmatprep.subr.msk.mxu1 %vm1147_vm3, %v10470_v6  ;;  %v10504_v12 = vld [vmem:[%s10326_s11 + $0x40] sm:$0xff]  ;;  %v10511_v13 = vld [vmem:[%s10326_s11 + $0x48] sm:$0xff] }
  0x18   : > { %672 = vst.msk [vmem:[#allocation2 + $0x90] sm:$0xff] %vm653_vm2, %v10257_v2  ;;  %673 = vst.msk [vmem:[#allocation2 + $0x98] sm:$0xff] %vm653_vm2, %v10257_v2  ;;  %v10514_v14 = vld [vmem:[%s10326_s11 + $0x50] sm:$0xff]  ;;  %v10521_v15 = vld [vmem:[%s10326_s11 + $0x58] sm:$0xff] }
  0x19   : > { %674 = vst.msk [vmem:[#allocation2 + $0xa0] sm:$0xff] %vm653_vm2, %v10257_v2  ;;  %675 = vst.msk [vmem:[#allocation2 + $0xa8] sm:$0xff] %vm653_vm2, %v10257_v2  ;;  %8814 = vmatmul.mubr.msk.f32.gmra.mrb[2].mxu1 %vm327_vm1, %v10479_v7  ;;  %v10524_v16 = vld [vmem:[%s10326_s11 + $0x60] sm:$0xff]  ;;  %v10531_v17 = vld [vmem:[%s10326_s11 + $0x68] sm:$0xff] }
  0x1a   : > { %676 = vst.msk [vmem:[#allocation2 + $0xb0] sm:$0xff] %vm653_vm2, %v10257_v2  ;;  %677 = vst.msk [vmem:[#allocation2 + $0xb8] sm:$0xff] %vm653_vm2, %v10257_v2  ;;  %8816 = vmatprep.mubr.msk.f32.mxu1 %vm327_vm1, %v10482_v8  ;;  %v10534_v18 = vld [vmem:[%s10326_s11 + $0x70] sm:$0xff]  ;;  %v10541_v19 = vld [vmem:[%s10326_s11 + $0x78] sm:$0xff] }
  0x1b   : > { %678 = vst.msk [vmem:[#allocation2 + $0xc0] sm:$0xff] %vm653_vm2, %v10257_v2  ;;  %679 = vst.msk [vmem:[#allocation2 + $0xc8] sm:$0xff] %vm653_vm2, %v10257_v2  ;;  %v10544_v20 = vld [vmem:[%s10326_s11 + $0x80] sm:$0xff]  ;;  %v10551_v21 = vld [vmem:[%s10326_s11 + $0x88] sm:$0xff] }
  0x1c   : > { %680 = vst.msk [vmem:[#allocation2 + $0xd0] sm:$0xff] %vm653_vm2, %v10257_v2  ;;  %681 = vst.msk [vmem:[#allocation2 + $0xd8] sm:$0xff] %vm653_vm2, %v10257_v2  ;;  %v10554_v22 = vld [vmem:[%s10326_s11 + $0x90] sm:$0xff]  ;;  %v10561_v23 = vld [vmem:[%s10326_s11 + $0x98] sm:$0xff] }
  0x1d   : > { %682 = vst.msk [vmem:[#allocation2 + $0xe0] sm:$0xff] %vm653_vm2, %v10257_v2  ;;  %683 = vst.msk [vmem:[#allocation2 + $0xe8] sm:$0xff] %vm653_vm2, %v10257_v2  ;;  %8817 = vmatmul.mubr.msk.f32.gmra.mrb[4].mxu1 %vm327_vm1, %v10491_v9  ;;  %v10564_v24 = vld [vmem:[%s10326_s11 + $0xa0] sm:$0xff]  ;;  %v10571_v25 = vld [vmem:[%s10326_s11 + $0xa8] sm:$0xff] }
  0x1e   : > { %684 = vst.msk [vmem:[#allocation2 + $0xf0] sm:$0xff] %vm653_vm2, %v10257_v2  ;;  %685 = vst.msk [vmem:[#allocation2 + $0xf8] sm:$0xff] %vm653_vm2, %v10257_v2  ;;  %8819 = vmatprep.mubr.msk.f32.mxu1 %vm327_vm1, %v10494_v10  ;;  %v10574_v26 = vld [vmem:[%s10326_s11 + $0xb0] sm:$0xff]  ;;  %v10581_v27 = vld [vmem:[%s10326_s11 + $0xb8] sm:$0xff] }
  0x1f   : > { %686 = vst.msk [vmem:[#allocation2 + $0x100] sm:$0xff] %vm653_vm2, %v10257_v2  ;;  %687 = vst.msk [vmem:[#allocation2 + $0x108] sm:$0xff] %vm653_vm2, %v10257_v2  ;;  %v10584_v28 = vld [vmem:[%s10326_s11 + $0xc0] sm:$0xff]  ;;  %v10591_v29 = vld [vmem:[%s10326_s11 + $0xc8] sm:$0xff] }
  0x20   : > { %688 = vst.msk [vmem:[#allocation2 + $0x110] sm:$0xff] %vm653_vm2, %v10257_v2  ;;  %689 = vst.msk [vmem:[#allocation2 + $0x118] sm:$0xff] %vm653_vm2, %v10257_v2  ;;  %v10594_v30 = vld [vmem:[%s10326_s11 + $0xd0] sm:$0xff]  ;;  %v10601_v31 = vld [vmem:[%s10326_s11 + $0xd8] sm:$0xff] }
  0x21   : > { %690 = vst.msk [vmem:[#allocation2 + $0x120] sm:$0xff] %vm653_vm2, %v10257_v2  ;;  %691 = vst.msk [vmem:[#allocation2 + $0x128] sm:$0xff] %vm653_vm2, %v10257_v2  ;;  %8820 = vmatmul.mubr.msk.f32.gmra.mrb[6].mxu1 %vm327_vm1, %v10501_v11  ;;  %v10604_v32 = vld [vmem:[%s10326_s11 + $0xe0] sm:$0xff]  ;;  %v10611_v33 = vld [vmem:[%s10326_s11 + $0xe8] sm:$0xff] }
  0x22   : > { %692 = vst.msk [vmem:[#allocation2 + $0x130] sm:$0xff] %vm653_vm2, %v10257_v2  ;;  %693 = vst.msk [vmem:[#allocation2 + $0x138] sm:$0xff] %vm653_vm2, %v10257_v2  ;;  %8822 = vmatprep.mubr.msk.f32.mxu1 %vm327_vm1, %v10504_v12  ;;  %v10614_v34 = vld [vmem:[%s10326_s11 + $0xf0] sm:$0xff]  ;;  %v10621_v35 = vld [vmem:[%s10326_s11 + $0xf8] sm:$0xff] }
  0x23   : > { %694 = vst.msk [vmem:[#allocation2 + $0x140] sm:$0xff] %vm653_vm2, %v10257_v2  ;;  %695 = vst.msk [vmem:[#allocation2 + $0x148] sm:$0xff] %vm653_vm2, %v10257_v2 }
  0x24   : > { %696 = vst.msk [vmem:[#allocation2 + $0x150] sm:$0xff] %vm653_vm2, %v10257_v2  ;;  %697 = vst.msk [vmem:[#allocation2 + $0x158] sm:$0xff] %vm653_vm2, %v10257_v2 }
  0x25   : > { %698 = vst.msk [vmem:[#allocation2 + $0x160] sm:$0xff] %vm653_vm2, %v10257_v2  ;;  %699 = vst.msk [vmem:[#allocation2 + $0x168] sm:$0xff] %vm653_vm2, %v10257_v2  ;;  %8823 = vmatmul.mubr.msk.f32.gmra.mrb[8].mxu1 %vm327_vm1, %v10511_v13 }
  0x26   : > { %700 = vst.msk [vmem:[#allocation2 + $0x170] sm:$0xff] %vm653_vm2, %v10257_v2  ;;  %701 = vst.msk [vmem:[#allocation2 + $0x178] sm:$0xff] %vm653_vm2, %v10257_v2  ;;  %8825 = vmatprep.mubr.msk.f32.mxu1 %vm327_vm1, %v10514_v14 }
  0x27   : > { %702 = vst.msk [vmem:[#allocation2 + $0x180] sm:$0xff] %vm653_vm2, %v10257_v2  ;;  %703 = vst.msk [vmem:[#allocation2 + $0x188] sm:$0xff] %vm653_vm2, %v10257_v2 }
  0x28   : > { %704 = vst.msk [vmem:[#allocation2 + $0x190] sm:$0xff] %vm653_vm2, %v10257_v2  ;;  %705 = vst.msk [vmem:[#allocation2 + $0x198] sm:$0xff] %vm653_vm2, %v10257_v2 }
  0x29   : > { %706 = vst.msk [vmem:[#allocation2 + $0x1a0] sm:$0xff] %vm653_vm2, %v10257_v2  ;;  %707 = vst.msk [vmem:[#allocation2 + $0x1a8] sm:$0xff] %vm653_vm2, %v10257_v2  ;;  %8826 = vmatmul.mubr.msk.f32.gmra.mrb[10].mxu1 %vm327_vm1, %v10521_v15 }
  0x2a   : > { %708 = vst.msk [vmem:[#allocation2 + $0x1b0] sm:$0xff] %vm653_vm2, %v10257_v2  ;;  %709 = vst.msk [vmem:[#allocation2 + $0x1b8] sm:$0xff] %vm653_vm2, %v10257_v2  ;;  %8828 = vmatprep.mubr.msk.f32.mxu1 %vm327_vm1, %v10524_v16 }
  0x2b   : > { %710 = vst.msk [vmem:[#allocation2 + $0x1c0] sm:$0xff] %vm653_vm2, %v10257_v2  ;;  %711 = vst.msk [vmem:[#allocation2 + $0x1c8] sm:$0xff] %vm653_vm2, %v10257_v2 }
  0x2c   : > { %712 = vst.msk [vmem:[#allocation2 + $0x1d0] sm:$0xff] %vm653_vm2, %v10257_v2  ;;  %713 = vst.msk [vmem:[#allocation2 + $0x1d8] sm:$0xff] %vm653_vm2, %v10257_v2 }
  0x2d   : > { %714 = vst.msk [vmem:[#allocation2 + $0x1e0] sm:$0xff] %vm653_vm2, %v10257_v2  ;;  %715 = vst.msk [vmem:[#allocation2 + $0x1e8] sm:$0xff] %vm653_vm2, %v10257_v2  ;;  %8829 = vmatmul.mubr.msk.f32.gmra.mrb[12].mxu1 %vm327_vm1, %v10531_v17 }
  0x2e   : > { %716 = vst.msk [vmem:[#allocation2 + $0x1f0] sm:$0xff] %vm653_vm2, %v10257_v2  ;;  %717 = vst.msk [vmem:[#allocation2 + $0x1f8] sm:$0xff] %vm653_vm2, %v10257_v2  ;;  %8831 = vmatprep.mubr.msk.f32.mxu1 %vm327_vm1, %v10534_v18 }
  0x31   : > { %8832 = vmatmul.mubr.msk.f32.gmra.mrb[14].mxu1 %vm327_vm1, %v10541_v19 }
  0x32   : > { %8834 = vmatprep.mubr.msk.f32.mxu1 %vm327_vm1, %v10544_v20 }
  0x35   : > { %8835 = vmatmul.mubr.msk.f32.gmra.mrb[16].mxu1 %vm327_vm1, %v10551_v21 }
  0x36   : > { %8837 = vmatprep.mubr.msk.f32.mxu1 %vm327_vm1, %v10554_v22 }
  0x39   : > { %8838 = vmatmul.mubr.msk.f32.gmra.mrb[18].mxu1 %vm327_vm1, %v10561_v23 }
  0x3a   : > { %8840 = vmatprep.mubr.msk.f32.mxu1 %vm327_vm1, %v10564_v24 }
  0x3d   : > { %8841 = vmatmul.mubr.msk.f32.gmra.mrb[20].mxu1 %vm327_vm1, %v10571_v25 }
  0x3e   : > { %8843 = vmatprep.mubr.msk.f32.mxu1 %vm327_vm1, %v10574_v26 }
  0x41   : > { %8844 = vmatmul.mubr.msk.f32.gmra.mrb[22].mxu1 %vm327_vm1, %v10581_v27 }
  0x42   : > { %8846 = vmatprep.mubr.msk.f32.mxu1 %vm327_vm1, %v10584_v28 }
  0x45   : > { %8847 = vmatmul.mubr.msk.f32.gmra.mrb[24].mxu1 %vm327_vm1, %v10591_v29 }
  0x46   : > { %8849 = vmatprep.mubr.msk.f32.mxu1 %vm327_vm1, %v10594_v30 }
  0x49   : > { %8850 = vmatmul.mubr.msk.f32.gmra.mrb[26].mxu1 %vm327_vm1, %v10601_v31 }
  0x4a   : > { %8852 = vmatprep.mubr.msk.f32.mxu1 %vm327_vm1, %v10604_v32 }
  0x4d   : > { %8853 = vmatmul.mubr.msk.f32.gmra.mrb[28].mxu1 %vm327_vm1, %v10611_v33 }
  0x4e   : > { %8855 = vmatprep.mubr.msk.f32.mxu1 %vm327_vm1, %v10614_v34 }
  0x51   : > { %8856 = vmatmul.mubr.msk.f32.gmra.mrb[30].mxu1 %vm327_vm1, %v10621_v35 }
  0x52   : > { %8860 = vmatprep.mubr.msk.f32.mxu1 %vm327_vm1, %v10457_v3 }
  0x55   : > { %8861 = vmatmul.mubr.msk.f32.vlgmr.msra.gmra.mrb[32].mxu1 %vm327_vm1, %v10460_v4 }
  0x56   : > { %8863 = vmatprep.mubr.msk.f32.mxu1 %vm327_vm1, %v10463_v5  ;;  %8909 = vmatpush3.msk.msra.mxu1 %vm1147_vm3, %v10470_v6 }
  0x57   : > { %8958 = vmatprep.subr.msk.mxu1 %vm1147_vm3, %v7626_v36 }
  0x59   : > { %8864 = vmatmul.mubr.msk.f32.gmra.mrb[34].mxu1 %vm327_vm1, %v10479_v7 }
  0x5a   : > { %8866 = vmatprep.mubr.msk.f32.mxu1 %vm327_vm1, %v10482_v8 }
  0x5d   : > { %8867 = vmatmul.mubr.msk.f32.gmra.mrb[36].mxu1 %vm327_vm1, %v10491_v9 }
  0x5e   : > { %8869 = vmatprep.mubr.msk.f32.mxu1 %vm327_vm1, %v10494_v10 }
  0x61   : > { %8870 = vmatmul.mubr.msk.f32.gmra.mrb[38].mxu1 %vm327_vm1, %v10501_v11 }
  0x62   : > { %8872 = vmatprep.mubr.msk.f32.mxu1 %vm327_vm1, %v10504_v12 }
  0x65   : > { %8873 = vmatmul.mubr.msk.f32.gmra.mrb[40].mxu1 %vm327_vm1, %v10511_v13 }
  0x66   : > { %8875 = vmatprep.mubr.msk.f32.mxu1 %vm327_vm1, %v10514_v14 }
  0x69   : > { %8876 = vmatmul.mubr.msk.f32.gmra.mrb[42].mxu1 %vm327_vm1, %v10521_v15 }
  0x6a   : > { %8878 = vmatprep.mubr.msk.f32.mxu1 %vm327_vm1, %v10524_v16 }
  0x6d   : > { %8879 = vmatmul.mubr.msk.f32.gmra.mrb[44].mxu1 %vm327_vm1, %v10531_v17 }
  0x6e   : > { %8881 = vmatprep.mubr.msk.f32.mxu1 %vm327_vm1, %v10534_v18 }
  0x71   : > { %8882 = vmatmul.mubr.msk.f32.gmra.mrb[46].mxu1 %vm327_vm1, %v10541_v19 }
  0x72   : > { %8884 = vmatprep.mubr.msk.f32.mxu1 %vm327_vm1, %v10544_v20 }
  0x75   : > { %8885 = vmatmul.mubr.msk.f32.gmra.mrb[48].mxu1 %vm327_vm1, %v10551_v21 }
  0x76   : > { %8887 = vmatprep.mubr.msk.f32.mxu1 %vm327_vm1, %v10554_v22 }
  0x79   : > { %8888 = vmatmul.mubr.msk.f32.gmra.mrb[50].mxu1 %vm327_vm1, %v10561_v23 }
  0x7a   : > { %8890 = vmatprep.mubr.msk.f32.mxu1 %vm327_vm1, %v10564_v24 }
  0x7d   : > { %8891 = vmatmul.mubr.msk.f32.gmra.mrb[52].mxu1 %vm327_vm1, %v10571_v25 }
  0x7e   : > { %8893 = vmatprep.mubr.msk.f32.mxu1 %vm327_vm1, %v10574_v26 }
  0x81   : > { %8894 = vmatmul.mubr.msk.f32.gmra.mrb[54].mxu1 %vm327_vm1, %v10581_v27 }
  0x82   : > { %8896 = vmatprep.mubr.msk.f32.mxu1 %vm327_vm1, %v10584_v28 }
  0x85   : > { %8897 = vmatmul.mubr.msk.f32.gmra.mrb[56].mxu1 %vm327_vm1, %v10591_v29 }
  0x86   : > { %8899 = vmatprep.mubr.msk.f32.mxu1 %vm327_vm1, %v10594_v30 }
  0x89   : > { %8900 = vmatmul.mubr.msk.f32.gmra.mrb[58].mxu1 %vm327_vm1, %v10601_v31 }
  0x8a   : > { %8902 = vmatprep.mubr.msk.f32.mxu1 %vm327_vm1, %v10604_v32 }
  0x8d   : > { %8903 = vmatmul.mubr.msk.f32.gmra.mrb[60].mxu1 %vm327_vm1, %v10611_v33 }
  0x8e   : > { %8905 = vmatprep.mubr.msk.f32.mxu1 %vm327_vm1, %v10614_v34 }
  0x91   : > { %8906 = vmatmul.mubr.msk.f32.gmra.mrb[62].mxu1 %vm327_vm1, %v10621_v35 }
 0x128   : > { %v8862_v38 = vpop.f32.mrb[32].mxu1 }
 0x129   : > { %v801_v39 = vadd.f32 %v8862_v38, %v10698_v37  ;;  %v795_v40 = vpop.f32.mrb[33].mxu1 }
 0x12a   : > { %v796_v41 = vadd.f32 %v10698_v37, %v795_v40 }
 0x12b   : > { %v955_v42 = vmax.f32 %v801_v39, 0.0 }
 0x12c   : > { %v954_v43 = vmax.f32 %v796_v41, 0.0  ;;  %v8865_v44 = vpop.f32.mrb[34].mxu1 }
 0x12d   : > { %987 = vst.msk [vmem:[#allocation2 + $0x10] sm:$0xff] %vm653_vm2, %v955_v42  ;;  %v811_v45 = vadd.f32 %v8865_v44, %v10698_v37  ;;  %v805_v46 = vpop.f32.mrb[35].mxu1 }
 0x12e   : > { %986 = vst.msk [vmem:[#allocation2 + $0x8] sm:$0xff] %vm653_vm2, %v954_v43  ;;  %v806_v47 = vadd.f32 %v10698_v37, %v805_v46 }
 0x12f   : > { %v957_v48 = vmax.f32 %v811_v45, 0.0 }
 0x130   : > { %v956_v49 = vmax.f32 %v806_v47, 0.0  ;;  %v8868_v50 = vpop.f32.mrb[36].mxu1 }
 0x131   : > { %989 = vst.msk [vmem:[#allocation2 + $0x30] sm:$0xff] %vm653_vm2, %v957_v48  ;;  %v821_v51 = vadd.f32 %v8868_v50, %v10698_v37  ;;  %v815_v52 = vpop.f32.mrb[37].mxu1 }
 0x132   : > { %988 = vst.msk [vmem:[#allocation2 + $0x28] sm:$0xff] %vm653_vm2, %v956_v49  ;;  %v816_v53 = vadd.f32 %v10698_v37, %v815_v52 }
 0x133   : > { %v959_v54 = vmax.f32 %v821_v51, 0.0 }
 0x134   : > { %v958_v55 = vmax.f32 %v816_v53, 0.0  ;;  %v8871_v56 = vpop.f32.mrb[38].mxu1 }
 0x135   : > { %991 = vst.msk [vmem:[#allocation2 + $0x50] sm:$0xff] %vm653_vm2, %v959_v54  ;;  %v831_v57 = vadd.f32 %v8871_v56, %v10698_v37  ;;  %v825_v58 = vpop.f32.mrb[39].mxu1  ;;  %v1018_v59 = vld [vmem:[#allocation2 + $0x7] sm:$0xff]  ;;  %v1019_v60 = vld [vmem:[#allocation2 + $0xf] sm:$0xff] }
 0x136   : > { %990 = vst.msk [vmem:[#allocation2 + $0x48] sm:$0xff] %vm653_vm2, %v958_v55  ;;  %v826_v61 = vadd.f32 %v10698_v37, %v825_v58  ;;  %8910 = vmatprep.mubr.msk.f32.mxu1 %vm653_vm2, %v1018_v59 }
 0x137   : > { %v961_v63 = vmax.f32 %v831_v57, 0.0  ;;  %8911 = vmatmul.mubr.msk.f32.vlgmr.msra.gmra.mrb[0].mxu1 %vm653_vm2, %v1019_v60 }
 0x138   : > { %v960_v0 = vmax.f32 %v826_v61, 0.0  ;;  %8959 = vmatpush3.msk.msra.mxu1 %vm1147_vm3, %v7626_v36  ;;  %v8874_v1 = vpop.f32.mrb[40].mxu1 }
 0x139   : > { %993 = vst.msk [vmem:[#allocation2 + $0x70] sm:$0xff] %vm653_vm2, %v961_v63  ;;  %v841_v2 = vadd.f32 %v8874_v1, %v10698_v37  ;;  %v835_v6 = vpop.f32.mrb[41].mxu1  ;;  %v1020_v38 = vld [vmem:[#allocation2 + $0x27] sm:$0xff]  ;;  %v1021_v39 = vld [vmem:[#allocation2 + $0x2f] sm:$0xff]  ;;  %9008 = vmatprep.subr.msk.mxu1 %vm1147_vm3, %v10718_v62 }
 0x13a   : > { %992 = vst.msk [vmem:[#allocation2 + $0x68] sm:$0xff] %vm653_vm2, %v960_v0  ;;  %v836_v40 = vadd.f32 %v10698_v37, %v835_v6  ;;  %8913 = vmatprep.mubr.msk.f32.mxu1 %vm653_vm2, %v1020_v38 }
 0x13b   : > { %v963_v41 = vmax.f32 %v841_v2, 0.0  ;;  %8914 = vmatmul.mubr.msk.f32.gmra.mrb[2].mxu1 %vm653_vm2, %v1021_v39 }
 0x13c   : > { %v962_v36 = vmax.f32 %v836_v40, 0.0  ;;  %v8877_v42 = vpop.f32.mrb[42].mxu1 }
 0x13d   : > { %995 = vst.msk [vmem:[#allocation2 + $0x90] sm:$0xff] %vm653_vm2, %v963_v41  ;;  %v851_v43 = vadd.f32 %v8877_v42, %v10698_v37  ;;  %v845_v44 = vpop.f32.mrb[43].mxu1  ;;  %v1022_v45 = vld [vmem:[#allocation2 + $0x47] sm:$0xff]  ;;  %v1023_v46 = vld [vmem:[#allocation2 + $0x4f] sm:$0xff] }
 0x13e   : > { %994 = vst.msk [vmem:[#allocation2 + $0x88] sm:$0xff] %vm653_vm2, %v962_v36  ;;  %v846_v47 = vadd.f32 %v10698_v37, %v845_v44  ;;  %8916 = vmatprep.mubr.msk.f32.mxu1 %vm653_vm2, %v1022_v45 }
 0x13f   : > { %v965_v48 = vmax.f32 %v851_v43, 0.0  ;;  %8917 = vmatmul.mubr.msk.f32.gmra.mrb[4].mxu1 %vm653_vm2, %v1023_v46 }
 0x140   : > { %v964_v49 = vmax.f32 %v846_v47, 0.0  ;;  %v8880_v50 = vpop.f32.mrb[44].mxu1 }
 0x141   : > { %997 = vst.msk [vmem:[#allocation2 + $0xb0] sm:$0xff] %vm653_vm2, %v965_v48  ;;  %v861_v51 = vadd.f32 %v8880_v50, %v10698_v37  ;;  %v855_v52 = vpop.f32.mrb[45].mxu1  ;;  %v1024_v53 = vld [vmem:[#allocation2 + $0x67] sm:$0xff]  ;;  %v1025_v54 = vld [vmem:[#allocation2 + $0x6f] sm:$0xff] }
 0x142   : > { %996 = vst.msk [vmem:[#allocation2 + $0xa8] sm:$0xff] %vm653_vm2, %v964_v49  ;;  %v856_v55 = vadd.f32 %v10698_v37, %v855_v52  ;;  %8919 = vmatprep.mubr.msk.f32.mxu1 %vm653_vm2, %v1024_v53 }
 0x143   : > { %v967_v56 = vmax.f32 %v861_v51, 0.0  ;;  %8920 = vmatmul.mubr.msk.f32.gmra.mrb[6].mxu1 %vm653_vm2, %v1025_v54 }
 0x144   : > { %v966_v57 = vmax.f32 %v856_v55, 0.0  ;;  %v8883_v58 = vpop.f32.mrb[46].mxu1 }
 0x145   : > { %999 = vst.msk [vmem:[#allocation2 + $0xd0] sm:$0xff] %vm653_vm2, %v967_v56  ;;  %v871_v59 = vadd.f32 %v8883_v58, %v10698_v37  ;;  %v865_v60 = vpop.f32.mrb[47].mxu1  ;;  %v1026_v61 = vld [vmem:[#allocation2 + $0x87] sm:$0xff]  ;;  %v1027_v63 = vld [vmem:[#allocation2 + $0x8f] sm:$0xff] }
 0x146   : > { %998 = vst.msk [vmem:[#allocation2 + $0xc8] sm:$0xff] %vm653_vm2, %v966_v57  ;;  %v866_v0 = vadd.f32 %v10698_v37, %v865_v60  ;;  %8922 = vmatprep.mubr.msk.f32.mxu1 %vm653_vm2, %v1026_v61 }
 0x147   : > { %v969_v1 = vmax.f32 %v871_v59, 0.0  ;;  %8923 = vmatmul.mubr.msk.f32.gmra.mrb[8].mxu1 %vm653_vm2, %v1027_v63 }
 0x148   : > { %v968_v2 = vmax.f32 %v866_v0, 0.0  ;;  %v8886_v6 = vpop.f32.mrb[48].mxu1 }
 0x149   : > { %1001 = vst.msk [vmem:[#allocation2 + $0xf0] sm:$0xff] %vm653_vm2, %v969_v1  ;;  %v881_v38 = vadd.f32 %v8886_v6, %v10698_v37  ;;  %v875_v39 = vpop.f32.mrb[49].mxu1  ;;  %v1028_v40 = vld [vmem:[#allocation2 + $0xa7] sm:$0xff]  ;;  %v1029_v41 = vld [vmem:[#allocation2 + $0xaf] sm:$0xff] }
 0x14a   : > { %1000 = vst.msk [vmem:[#allocation2 + $0xe8] sm:$0xff] %vm653_vm2, %v968_v2  ;;  %v876_v36 = vadd.f32 %v10698_v37, %v875_v39  ;;  %8925 = vmatprep.mubr.msk.f32.mxu1 %vm653_vm2, %v1028_v40 }
 0x14b   : > { %v971_v42 = vmax.f32 %v881_v38, 0.0  ;;  %8926 = vmatmul.mubr.msk.f32.gmra.mrb[10].mxu1 %vm653_vm2, %v1029_v41 }
 0x14c   : > { %v970_v43 = vmax.f32 %v876_v36, 0.0  ;;  %v8889_v44 = vpop.f32.mrb[50].mxu1 }
 0x14d   : > { %1003 = vst.msk [vmem:[#allocation2 + $0x110] sm:$0xff] %vm653_vm2, %v971_v42  ;;  %v891_v45 = vadd.f32 %v8889_v44, %v10698_v37  ;;  %v885_v46 = vpop.f32.mrb[51].mxu1  ;;  %v1030_v47 = vld [vmem:[#allocation2 + $0xc7] sm:$0xff]  ;;  %v1031_v48 = vld [vmem:[#allocation2 + $0xcf] sm:$0xff] }
 0x14e   : > { %1002 = vst.msk [vmem:[#allocation2 + $0x108] sm:$0xff] %vm653_vm2, %v970_v43  ;;  %v886_v49 = vadd.f32 %v10698_v37, %v885_v46  ;;  %8928 = vmatprep.mubr.msk.f32.mxu1 %vm653_vm2, %v1030_v47 }
 0x14f   : > { %v973_v50 = vmax.f32 %v891_v45, 0.0  ;;  %8929 = vmatmul.mubr.msk.f32.gmra.mrb[12].mxu1 %vm653_vm2, %v1031_v48 }
 0x150   : > { %v972_v51 = vmax.f32 %v886_v49, 0.0  ;;  %v8892_v52 = vpop.f32.mrb[52].mxu1 }
 0x151   : > { %1005 = vst.msk [vmem:[#allocation2 + $0x130] sm:$0xff] %vm653_vm2, %v973_v50  ;;  %v901_v53 = vadd.f32 %v8892_v52, %v10698_v37  ;;  %v895_v54 = vpop.f32.mrb[53].mxu1  ;;  %v1032_v55 = vld [vmem:[#allocation2 + $0xe7] sm:$0xff]  ;;  %v1033_v56 = vld [vmem:[#allocation2 + $0xef] sm:$0xff] }
 0x152   : > { %1004 = vst.msk [vmem:[#allocation2 + $0x128] sm:$0xff] %vm653_vm2, %v972_v51  ;;  %v896_v57 = vadd.f32 %v10698_v37, %v895_v54  ;;  %8931 = vmatprep.mubr.msk.f32.mxu1 %vm653_vm2, %v1032_v55 }
 0x153   : > { %v975_v58 = vmax.f32 %v901_v53, 0.0  ;;  %8932 = vmatmul.mubr.msk.f32.gmra.mrb[14].mxu1 %vm653_vm2, %v1033_v56 }
 0x154   : > { %v974_v59 = vmax.f32 %v896_v57, 0.0  ;;  %v8895_v60 = vpop.f32.mrb[54].mxu1 }
 0x155   : > { %1007 = vst.msk [vmem:[#allocation2 + $0x150] sm:$0xff] %vm653_vm2, %v975_v58  ;;  %v911_v61 = vadd.f32 %v8895_v60, %v10698_v37  ;;  %v905_v63 = vpop.f32.mrb[55].mxu1  ;;  %v1034_v0 = vld [vmem:[#allocation2 + $0x107] sm:$0xff]  ;;  %v1035_v1 = vld [vmem:[#allocation2 + $0x10f] sm:$0xff] }
 0x156   : > { %1006 = vst.msk [vmem:[#allocation2 + $0x148] sm:$0xff] %vm653_vm2, %v974_v59  ;;  %v906_v2 = vadd.f32 %v10698_v37, %v905_v63  ;;  %8934 = vmatprep.mubr.msk.f32.mxu1 %vm653_vm2, %v1034_v0 }
 0x157   : > { %v977_v6 = vmax.f32 %v911_v61, 0.0  ;;  %8935 = vmatmul.mubr.msk.f32.gmra.mrb[16].mxu1 %vm653_vm2, %v1035_v1 }
 0x158   : > { %v976_v38 = vmax.f32 %v906_v2, 0.0  ;;  %v8898_v39 = vpop.f32.mrb[56].mxu1 }
 0x159   : > { %1009 = vst.msk [vmem:[#allocation2 + $0x170] sm:$0xff] %vm653_vm2, %v977_v6  ;;  %v921_v40 = vadd.f32 %v8898_v39, %v10698_v37  ;;  %v915_v41 = vpop.f32.mrb[57].mxu1  ;;  %v1036_v36 = vld [vmem:[#allocation2 + $0x127] sm:$0xff]  ;;  %v1037_v42 = vld [vmem:[#allocation2 + $0x12f] sm:$0xff] }
 0x15a   : > { %1008 = vst.msk [vmem:[#allocation2 + $0x168] sm:$0xff] %vm653_vm2, %v976_v38  ;;  %v916_v43 = vadd.f32 %v10698_v37, %v915_v41  ;;  %8937 = vmatprep.mubr.msk.f32.mxu1 %vm653_vm2, %v1036_v36 }
 0x15b   : > { %v979_v44 = vmax.f32 %v921_v40, 0.0  ;;  %8938 = vmatmul.mubr.msk.f32.gmra.mrb[18].mxu1 %vm653_vm2, %v1037_v42 }
 0x15c   : > { %v978_v45 = vmax.f32 %v916_v43, 0.0  ;;  %v8901_v46 = vpop.f32.mrb[58].mxu1 }
 0x15d   : > { %1011 = vst.msk [vmem:[#allocation2 + $0x190] sm:$0xff] %vm653_vm2, %v979_v44  ;;  %v931_v47 = vadd.f32 %v8901_v46, %v10698_v37  ;;  %v925_v48 = vpop.f32.mrb[59].mxu1  ;;  %v1038_v49 = vld [vmem:[#allocation2 + $0x147] sm:$0xff]  ;;  %v1039_v50 = vld [vmem:[#allocation2 + $0x14f] sm:$0xff] }
 0x15e   : > { %1010 = vst.msk [vmem:[#allocation2 + $0x188] sm:$0xff] %vm653_vm2, %v978_v45  ;;  %v926_v51 = vadd.f32 %v10698_v37, %v925_v48  ;;  %8940 = vmatprep.mubr.msk.f32.mxu1 %vm653_vm2, %v1038_v49  ;;  %v1408_v45 = vld [vmem:[#allocation2 + $0x8] sm:$0xff]  ;;  %v1409_v46 = vld [vmem:[#allocation2 + $0x10] sm:$0xff] }
 0x15f   : > { %v981_v52 = vmax.f32 %v931_v47, 0.0  ;;  %8941 = vmatmul.mubr.msk.f32.gmra.mrb[20].mxu1 %vm653_vm2, %v1039_v50  ;;  %v10808_v47 = vld [vmem:[%s12352_s1 + $0x4] sm:$0xf]  ;;  %v1410_v48 = vld [vmem:[#allocation2 + $0x28] sm:$0xff]  ;;  %v1411_v49 = vld [vmem:[#allocation2 + $0x30] sm:$0xff] }
 0x160   : > { %v980_v53 = vmax.f32 %v926_v51, 0.0  ;;  %v8904_v54 = vpop.f32.mrb[60].mxu1  ;;  %v1412_v50 = vld [vmem:[#allocation2 + $0x48] sm:$0xff]  ;;  %v1413_v51 = vld [vmem:[#allocation2 + $0x50] sm:$0xff] }
 0x161   : > { %1013 = vst.msk [vmem:[#allocation2 + $0x1b0] sm:$0xff] %vm653_vm2, %v981_v52  ;;  %v941_v55 = vadd.f32 %v8904_v54, %v10698_v37  ;;  %v935_v56 = vpop.f32.mrb[61].mxu1  ;;  %v1040_v57 = vld [vmem:[#allocation2 + $0x167] sm:$0xff]  ;;  %v1041_v58 = vld [vmem:[#allocation2 + $0x16f] sm:$0xff] }
 0x162   : > { %1012 = vst.msk [vmem:[#allocation2 + $0x1a8] sm:$0xff] %vm653_vm2, %v980_v53  ;;  %v936_v59 = vadd.f32 %v10698_v37, %v935_v56  ;;  %8943 = vmatprep.mubr.msk.f32.mxu1 %vm653_vm2, %v1040_v57  ;;  %v1414_v52 = vld [vmem:[#allocation2 + $0x68] sm:$0xff]  ;;  %v1415_v53 = vld [vmem:[#allocation2 + $0x70] sm:$0xff] }
 0x163   : > { %v983_v60 = vmax.f32 %v941_v55, 0.0  ;;  %8944 = vmatmul.mubr.msk.f32.gmra.mrb[22].mxu1 %vm653_vm2, %v1041_v58  ;;  %v1417_v54 = vld [vmem:[#allocation2 + $0x90] sm:$0xff]  ;;  %v1418_v55 = vld [vmem:[#allocation2 + $0xa8] sm:$0xff] }
 0x164   : > { %v982_v61 = vmax.f32 %v936_v59, 0.0  ;;  %v8907_v63 = vpop.f32.mrb[62].mxu1  ;;  %v1419_v56 = vld [vmem:[#allocation2 + $0xb0] sm:$0xff]  ;;  %v1420_v57 = vld [vmem:[#allocation2 + $0xc8] sm:$0xff] }
 0x165   : > { %1015 = vst.msk [vmem:[#allocation2 + $0x1d0] sm:$0xff] %vm653_vm2, %v983_v60  ;;  %v951_v0 = vadd.f32 %v8907_v63, %v10698_v37  ;;  %v945_v1 = vpop.f32.mrb[63].mxu1  ;;  %v1042_v2 = vld [vmem:[#allocation2 + $0x187] sm:$0xff]  ;;  %v1043_v6 = vld [vmem:[#allocation2 + $0x18f] sm:$0xff] }
 0x166   : > { %1014 = vst.msk [vmem:[#allocation2 + $0x1c8] sm:$0xff] %vm653_vm2, %v982_v61  ;;  %v946_v38 = vadd.f32 %v10698_v37, %v945_v1  ;;  %8946 = vmatprep.mubr.msk.f32.mxu1 %vm653_vm2, %v1042_v2  ;;  %v1421_v58 = vld [vmem:[#allocation2 + $0xd0] sm:$0xff]  ;;  %v1422_v59 = vld [vmem:[#allocation2 + $0xe8] sm:$0xff] }
 0x167   : > { %v985_v39 = vmax.f32 %v951_v0, 0.0  ;;  %8947 = vmatmul.mubr.msk.f32.gmra.mrb[24].mxu1 %vm653_vm2, %v1043_v6  ;;  %v1423_v60 = vld [vmem:[#allocation2 + $0xf0] sm:$0xff]  ;;  %v1424_v61 = vld [vmem:[#allocation2 + $0x108] sm:$0xff] }
 0x168   : > { %v984_v40 = vmax.f32 %v946_v38, 0.0  ;;  %v1425_v63 = vld [vmem:[#allocation2 + $0x110] sm:$0xff]  ;;  %v1426_v0 = vld [vmem:[#allocation2 + $0x128] sm:$0xff] }
 0x169   : > { %1017 = vst.msk [vmem:[#allocation2 + $0x1f0] sm:$0xff] %vm653_vm2, %v985_v39  ;;  %v1044_v41 = vld [vmem:[#allocation2 + $0x1a7] sm:$0xff]  ;;  %v1045_v36 = vld [vmem:[#allocation2 + $0x1af] sm:$0xff] }
 0x16a   : > { %1016 = vst.msk [vmem:[#allocation2 + $0x1e8] sm:$0xff] %vm653_vm2, %v984_v40  ;;  %8949 = vmatprep.mubr.msk.f32.mxu1 %vm653_vm2, %v1044_v41  ;;  %v1427_v1 = vld [vmem:[#allocation2 + $0x130] sm:$0xff]  ;;  %v1428_v2 = vld [vmem:[#allocation2 + $0x148] sm:$0xff] }
 0x16b   : > { %8950 = vmatmul.mubr.msk.f32.gmra.mrb[26].mxu1 %vm653_vm2, %v1045_v36  ;;  %v1429_v6 = vld [vmem:[#allocation2 + $0x150] sm:$0xff]  ;;  %v1430_v38 = vld [vmem:[#allocation2 + $0x168] sm:$0xff] }
 0x16c   : > { %v1431_v39 = vld [vmem:[#allocation2 + $0x170] sm:$0xff]  ;;  %v1432_v40 = vld [vmem:[#allocation2 + $0x188] sm:$0xff] }
 0x16d   : > { %v1046_v42 = vld [vmem:[#allocation2 + $0x1c7] sm:$0xff]  ;;  %v1047_v43 = vld [vmem:[#allocation2 + $0x1cf] sm:$0xff] }
 0x16e   : > { %8952 = vmatprep.mubr.msk.f32.mxu1 %vm653_vm2, %v1046_v42  ;;  %v1433_v41 = vld [vmem:[#allocation2 + $0x190] sm:$0xff]  ;;  %v1434_v36 = vld [vmem:[#allocation2 + $0x1a8] sm:$0xff] }
 0x16f   : > { %8953 = vmatmul.mubr.msk.f32.gmra.mrb[28].mxu1 %vm653_vm2, %v1047_v43  ;;  %v1435_v42 = vld [vmem:[#allocation2 + $0x1b0] sm:$0xff]  ;;  %v1436_v43 = vld [vmem:[#allocation2 + $0x1c8] sm:$0xff] }
 0x171   : > { %v1048_v37 = vld [vmem:[#allocation2 + $0x1e7] sm:$0xff]  ;;  %v1049_v44 = vld [vmem:[#allocation2 + $0x1ef] sm:$0xff] }
 0x172   : > { %8955 = vmatprep.mubr.msk.f32.mxu1 %vm653_vm2, %v1048_v37  ;;  %v1437_v37 = vld [vmem:[#allocation2 + $0x1d0] sm:$0xff] }
 0x173   : > { %8956 = vmatmul.mubr.msk.f32.gmra.mrb[30].mxu1 %vm653_vm2, %v1049_v44  ;;  %v1438_v44 = vld [vmem:[#allocation2 + $0x1e8] sm:$0xff] }
 0x174   : > { %8960 = vmatprep.mubr.msk.f32.mxu1 %vm653_vm2, %v1408_v45  ;;  %v1439_v45 = vld [vmem:[#allocation2 + $0x1f0] sm:$0xff] }
 0x177   : > { %8961 = vmatmul.mubr.msk.f32.vlgmr.msra.gmra.mrb[0].mxu1 %vm653_vm2, %v1409_v46  ;;  %v1798_v46 = vld [vmem:[#allocation2 + $0x9] sm:$0xff] }
 0x178   : > { %9009 = vmatpush3.msk.msra.mxu1 %vm1147_vm3, %v10718_v62  ;;  %8963 = vmatprep.mubr.msk.f32.mxu1 %vm653_vm2, %v1410_v48  ;;  %v1416_v62 = vld [vmem:[#allocation2 + $0x88] sm:$0xff]  ;;  %v1799_v48 = vld [vmem:[#allocation2 + $0x11] sm:$0xff] }
 0x179   : > { %9058 = vmatprep.subr.msk.mxu1 %vm424_vm0, %v10808_v47 }
 0x17b   : > { %8964 = vmatmul.mubr.msk.f32.gmra.mrb[2].mxu1 %vm653_vm2, %v1411_v49  ;;  %v1800_v49 = vld [vmem:[#allocation2 + $0x29] sm:$0xff] }
 0x17c   : > { %8966 = vmatprep.mubr.msk.f32.mxu1 %vm653_vm2, %v1412_v50  ;;  %v1801_v50 = vld [vmem:[#allocation2 + $0x31] sm:$0xff] }
 0x17f   : > { %8967 = vmatmul.mubr.msk.f32.gmra.mrb[4].mxu1 %vm653_vm2, %v1413_v51  ;;  %v1802_v51 = vld [vmem:[#allocation2 + $0x49] sm:$0xff] }
 0x180   : > { %8969 = vmatprep.mubr.msk.f32.mxu1 %vm653_vm2, %v1414_v52  ;;  %v1803_v52 = vld [vmem:[#allocation2 + $0x51] sm:$0xff] }
 0x183   : > { %8970 = vmatmul.mubr.msk.f32.gmra.mrb[6].mxu1 %vm653_vm2, %v1415_v53  ;;  %v1804_v53 = vld [vmem:[#allocation2 + $0x69] sm:$0xff] }
 0x184   : > { %8972 = vmatprep.mubr.msk.f32.mxu1 %vm653_vm2, %v1416_v62  ;;  %v1805_v62 = vld [vmem:[#allocation2 + $0x71] sm:$0xff] }
 0x187   : > { %8973 = vmatmul.mubr.msk.f32.gmra.mrb[8].mxu1 %vm653_vm2, %v1417_v54  ;;  %v1806_v54 = vld [vmem:[#allocation2 + $0x89] sm:$0xff] }
 0x188   : > { %8975 = vmatprep.mubr.msk.f32.mxu1 %vm653_vm2, %v1418_v55  ;;  %v1808_v55 = vld [vmem:[#allocation2 + $0xa9] sm:$0xff] }
 0x18b   : > { %8976 = vmatmul.mubr.msk.f32.gmra.mrb[10].mxu1 %vm653_vm2, %v1419_v56  ;;  %v1809_v56 = vld [vmem:[#allocation2 + $0xb1] sm:$0xff] }
 0x18c   : > { %8978 = vmatprep.mubr.msk.f32.mxu1 %vm653_vm2, %v1420_v57  ;;  %v1810_v57 = vld [vmem:[#allocation2 + $0xc9] sm:$0xff] }
 0x18f   : > { %8979 = vmatmul.mubr.msk.f32.gmra.mrb[12].mxu1 %vm653_vm2, %v1421_v58  ;;  %v1811_v58 = vld [vmem:[#allocation2 + $0xd1] sm:$0xff] }
 0x190   : > { %8981 = vmatprep.mubr.msk.f32.mxu1 %vm653_vm2, %v1422_v59  ;;  %v1812_v59 = vld [vmem:[#allocation2 + $0xe9] sm:$0xff] }
 0x193   : > { %8982 = vmatmul.mubr.msk.f32.gmra.mrb[14].mxu1 %vm653_vm2, %v1423_v60  ;;  %v1813_v60 = vld [vmem:[#allocation2 + $0xf1] sm:$0xff] }
 0x194   : > { %8984 = vmatprep.mubr.msk.f32.mxu1 %vm653_vm2, %v1424_v61  ;;  %v1814_v61 = vld [vmem:[#allocation2 + $0x109] sm:$0xff] }
 0x197   : > { %8985 = vmatmul.mubr.msk.f32.gmra.mrb[16].mxu1 %vm653_vm2, %v1425_v63  ;;  %v1815_v63 = vld [vmem:[#allocation2 + $0x111] sm:$0xff] }
 0x198   : > { %8987 = vmatprep.mubr.msk.f32.mxu1 %vm653_vm2, %v1426_v0  ;;  %v1816_v0 = vld [vmem:[#allocation2 + $0x129] sm:$0xff] }
 0x19b   : > { %8988 = vmatmul.mubr.msk.f32.gmra.mrb[18].mxu1 %vm653_vm2, %v1427_v1  ;;  %v1817_v1 = vld [vmem:[#allocation2 + $0x131] sm:$0xff] }
 0x19c   : > { %8990 = vmatprep.mubr.msk.f32.mxu1 %vm653_vm2, %v1428_v2  ;;  %v1818_v2 = vld [vmem:[#allocation2 + $0x149] sm:$0xff] }
 0x19f   : > { %8991 = vmatmul.mubr.msk.f32.gmra.mrb[20].mxu1 %vm653_vm2, %v1429_v6  ;;  %v1819_v6 = vld [vmem:[#allocation2 + $0x151] sm:$0xff] }
 0x1a0   : > { %8993 = vmatprep.mubr.msk.f32.mxu1 %vm653_vm2, %v1430_v38  ;;  %v1820_v38 = vld [vmem:[#allocation2 + $0x169] sm:$0xff] }
 0x1a3   : > { %8994 = vmatmul.mubr.msk.f32.gmra.mrb[22].mxu1 %vm653_vm2, %v1431_v39  ;;  %v1821_v39 = vld [vmem:[#allocation2 + $0x171] sm:$0xff] }
 0x1a4   : > { %8996 = vmatprep.mubr.msk.f32.mxu1 %vm653_vm2, %v1432_v40  ;;  %v1822_v40 = vld [vmem:[#allocation2 + $0x189] sm:$0xff] }
 0x1a7   : > { %8997 = vmatmul.mubr.msk.f32.gmra.mrb[24].mxu1 %vm653_vm2, %v1433_v41  ;;  %v1823_v41 = vld [vmem:[#allocation2 + $0x191] sm:$0xff] }
 0x1a8   : > { %8999 = vmatprep.mubr.msk.f32.mxu1 %vm653_vm2, %v1434_v36  ;;  %v1824_v36 = vld [vmem:[#allocation2 + $0x1a9] sm:$0xff] }
 0x1ab   : > { %9000 = vmatmul.mubr.msk.f32.gmra.mrb[26].mxu1 %vm653_vm2, %v1435_v42  ;;  %v1825_v42 = vld [vmem:[#allocation2 + $0x1b1] sm:$0xff] }
 0x1ac   : > { %9002 = vmatprep.mubr.msk.f32.mxu1 %vm653_vm2, %v1436_v43  ;;  %v1826_v43 = vld [vmem:[#allocation2 + $0x1c9] sm:$0xff] }
 0x1af   : > { %9003 = vmatmul.mubr.msk.f32.gmra.mrb[28].mxu1 %vm653_vm2, %v1437_v37  ;;  %v1827_v37 = vld [vmem:[#allocation2 + $0x1d1] sm:$0xff] }
 0x1b0   : > { %9005 = vmatprep.mubr.msk.f32.mxu1 %vm653_vm2, %v1438_v44  ;;  %v1828_v44 = vld [vmem:[#allocation2 + $0x1e9] sm:$0xff] }
 0x1b3   : > { %9006 = vmatmul.mubr.msk.f32.gmra.mrb[30].mxu1 %vm653_vm2, %v1439_v45  ;;  %v1829_v45 = vld [vmem:[#allocation2 + $0x1f1] sm:$0xff] }
 0x1b4   : > { %9010 = vmatprep.mubr.msk.f32.mxu1 %vm653_vm2, %v1798_v46 }
 0x1b7   : > { %9011 = vmatmul.mubr.msk.f32.vlgmr.msra.gmra.mrb[0].mxu1 %vm653_vm2, %v1799_v48 }
 0x1b8   : > { %9059 = vmatpush3.msk.msra.mxu1 %vm424_vm0, %v10808_v47  ;;  %9013 = vmatprep.mubr.msk.f32.mxu1 %vm653_vm2, %v1800_v49  ;;  %v1807_v47 = vld [vmem:[#allocation2 + $0x91] sm:$0xff] }
 0x1bb   : > { %9014 = vmatmul.mubr.msk.f32.gmra.mrb[2].mxu1 %vm653_vm2, %v1801_v50 }
 0x1bc   : > { %9016 = vmatprep.mubr.msk.f32.mxu1 %vm653_vm2, %v1802_v51 }
 0x1bf   : > { %9017 = vmatmul.mubr.msk.f32.gmra.mrb[4].mxu1 %vm653_vm2, %v1803_v52 }
 0x1c0   : > { %9019 = vmatprep.mubr.msk.f32.mxu1 %vm653_vm2, %v1804_v53 }
 0x1c3   : > { %9020 = vmatmul.mubr.msk.f32.gmra.mrb[6].mxu1 %vm653_vm2, %v1805_v62 }
 0x1c4   : > { %9022 = vmatprep.mubr.msk.f32.mxu1 %vm653_vm2, %v1806_v54 }
 0x1c7   : > { %9023 = vmatmul.mubr.msk.f32.gmra.mrb[8].mxu1 %vm653_vm2, %v1807_v47 }
 0x1c8   : > { %9025 = vmatprep.mubr.msk.f32.mxu1 %vm653_vm2, %v1808_v55 }
 0x1cb   : > { %9026 = vmatmul.mubr.msk.f32.gmra.mrb[10].mxu1 %vm653_vm2, %v1809_v56 }
 0x1cc   : > { %9028 = vmatprep.mubr.msk.f32.mxu1 %vm653_vm2, %v1810_v57  ;;  %v11016_v57 = vld [vmem:[%s12356_s5 + $0xa] sm:$0x3] }
 0x1cf   : > { %9029 = vmatmul.mubr.msk.f32.gmra.mrb[12].mxu1 %vm653_vm2, %v1811_v58 }
 0x1d0   : > { %9031 = vmatprep.mubr.msk.f32.mxu1 %vm653_vm2, %v1812_v59 }
 0x1d3   : > { %9032 = vmatmul.mubr.msk.f32.gmra.mrb[14].mxu1 %vm653_vm2, %v1813_v60 }
 0x1d4   : > { %9034 = vmatprep.mubr.msk.f32.mxu1 %vm653_vm2, %v1814_v61 }
 0x1d7   : > { %9035 = vmatmul.mubr.msk.f32.gmra.mrb[16].mxu1 %vm653_vm2, %v1815_v63 }
 0x1d8   : > { %9037 = vmatprep.mubr.msk.f32.mxu1 %vm653_vm2, %v1816_v0 }
 0x1db   : > { %9038 = vmatmul.mubr.msk.f32.gmra.mrb[18].mxu1 %vm653_vm2, %v1817_v1 }
 0x1dc   : > { %9040 = vmatprep.mubr.msk.f32.mxu1 %vm653_vm2, %v1818_v2 }
 0x1df   : > { %9041 = vmatmul.mubr.msk.f32.gmra.mrb[20].mxu1 %vm653_vm2, %v1819_v6 }
 0x1e0   : > { %9043 = vmatprep.mubr.msk.f32.mxu1 %vm653_vm2, %v1820_v38 }
 0x1e3   : > { %9044 = vmatmul.mubr.msk.f32.gmra.mrb[22].mxu1 %vm653_vm2, %v1821_v39 }
 0x1e4   : > { %9046 = vmatprep.mubr.msk.f32.mxu1 %vm653_vm2, %v1822_v40 }
 0x1e7   : > { %9047 = vmatmul.mubr.msk.f32.gmra.mrb[24].mxu1 %vm653_vm2, %v1823_v41 }
 0x1e8   : > { %9049 = vmatprep.mubr.msk.f32.mxu1 %vm653_vm2, %v1824_v36 }
 0x1eb   : > { %9050 = vmatmul.mubr.msk.f32.gmra.mrb[26].mxu1 %vm653_vm2, %v1825_v42 }
 0x1ec   : > { %9052 = vmatprep.mubr.msk.f32.mxu1 %vm653_vm2, %v1826_v43 }
 0x1ef   : > { %9053 = vmatmul.mubr.msk.f32.gmra.mrb[28].mxu1 %vm653_vm2, %v1827_v37 }
 0x1f0   : > { %9055 = vmatprep.mubr.msk.f32.mxu1 %vm653_vm2, %v1828_v44 }
 0x1f3   : > { %9056 = vmatmul.mubr.msk.f32.gmra.mrb[30].mxu1 %vm653_vm2, %v1829_v45 }
 0x1f4   : > { %9060 = vmatprep.mubr.msk.f32.mxu1 %vm327_vm1, %v10457_v3  ;;  %v7730_v3 = vld [vmem:[%s12356_s5 + $0x6] sm:$0x3] }
 0x1f5   : > { %9758 = vmatprep.subr.msk.mxu1 %vm1147_vm3, %v7730_v3  ;;  %9108 = vmatprep.subr.msk.mxu0 %vm1147_vm3, %v7730_v3 }
 0x1f6   : > { %9109 = vmatpush3.msk.msra.mxu0 %vm1147_vm3, %v7730_v3 }
 0x1f7   : > { %9061 = vmatmul.mubr.msk.f32.vlgmr.msra.gmra.mrb[64].mxu1 %vm327_vm1, %v10460_v4  ;;  %v7764_v4 = vld [vmem:[%s12356_s5 + $0x8] sm:$0x3] }
 0x1f8   : > { %9063 = vmatprep.mubr.msk.f32.mxu1 %vm327_vm1, %v10463_v5  ;;  %9759 = vmatpush3.msk.msra.mxu1 %vm1147_vm3, %v7730_v3  ;;  %v10957_v5 = vld [vmem:[%s12352_s1 + $0x8] sm:$0xf] }
 0x1f9   : > { %9158 = vmatprep.subr.msk.mxu0 %vm1147_vm3, %v7764_v4  ;;  %9258 = vmatprep.subr.msk.mxu1 %vm424_vm0, %v10957_v5 }
 0x1fb   : > { %9064 = vmatmul.mubr.msk.f32.gmra.mrb[66].mxu1 %vm327_vm1, %v10479_v7 }
 0x1fc   : > { %9066 = vmatprep.mubr.msk.f32.mxu1 %vm327_vm1, %v10482_v8 }
 0x1ff   : > { %9067 = vmatmul.mubr.msk.f32.gmra.mrb[68].mxu1 %vm327_vm1, %v10491_v9 }
 0x200   : > { %9069 = vmatprep.mubr.msk.f32.mxu1 %vm327_vm1, %v10494_v10 }
 0x203   : > { %9070 = vmatmul.mubr.msk.f32.gmra.mrb[70].mxu1 %vm327_vm1, %v10501_v11 }
 0x204   : > { %9072 = vmatprep.mubr.msk.f32.mxu1 %vm327_vm1, %v10504_v12 }
 0x207   : > { %9073 = vmatmul.mubr.msk.f32.gmra.mrb[72].mxu1 %vm327_vm1, %v10511_v13 }
 0x208   : > { %9075 = vmatprep.mubr.msk.f32.mxu1 %vm327_vm1, %v10514_v14 }
 0x20b   : > { %9076 = vmatmul.mubr.msk.f32.gmra.mrb[74].mxu1 %vm327_vm1, %v10521_v15 }
 0x20c   : > { %9078 = vmatprep.mubr.msk.f32.mxu1 %vm327_vm1, %v10524_v16 }
 0x20f   : > { %9079 = vmatmul.mubr.msk.f32.gmra.mrb[76].mxu1 %vm327_vm1, %v10531_v17 }
 0x210   : > { %9081 = vmatprep.mubr.msk.f32.mxu1 %vm327_vm1, %v10534_v18 }
 0x213   : > { %9082 = vmatmul.mubr.msk.f32.gmra.mrb[78].mxu1 %vm327_vm1, %v10541_v19 }
 0x214   : > { %9084 = vmatprep.mubr.msk.f32.mxu1 %vm327_vm1, %v10544_v20 }
 0x217   : > { %9085 = vmatmul.mubr.msk.f32.gmra.mrb[80].mxu1 %vm327_vm1, %v10551_v21 }
 0x218   : > { %9087 = vmatprep.mubr.msk.f32.mxu1 %vm327_vm1, %v10554_v22 }
 0x21b   : > { %9088 = vmatmul.mubr.msk.f32.gmra.mrb[82].mxu1 %vm327_vm1, %v10561_v23  ;;  %v10996_v23 = vld [vmem:[%s12353_s2 + $0x1] ss:$0 sm:$0xff] }
 0x21c   : > { %9090 = vmatprep.mubr.msk.f32.mxu1 %vm327_vm1, %v10564_v24 }
 0x21f   : > { %9091 = vmatmul.mubr.msk.f32.gmra.mrb[84].mxu1 %vm327_vm1, %v10571_v25 }
 0x220   : > { %9093 = vmatprep.mubr.msk.f32.mxu1 %vm327_vm1, %v10574_v26 }
 0x223   : > { %9094 = vmatmul.mubr.msk.f32.gmra.mrb[86].mxu1 %vm327_vm1, %v10581_v27 }
 0x224   : > { %9096 = vmatprep.mubr.msk.f32.mxu1 %vm327_vm1, %v10584_v28 }
 0x227   : > { %9097 = vmatmul.mubr.msk.f32.gmra.mrb[88].mxu1 %vm327_vm1, %v10591_v29 }
 0x228   : > { %9099 = vmatprep.mubr.msk.f32.mxu1 %vm327_vm1, %v10594_v30 }
 0x22b   : > { %9100 = vmatmul.mubr.msk.f32.gmra.mrb[90].mxu1 %vm327_vm1, %v10601_v31 }
 0x22c   : > { %9102 = vmatprep.mubr.msk.f32.mxu1 %vm327_vm1, %v10604_v32 }
 0x22f   : > { %9103 = vmatmul.mubr.msk.f32.gmra.mrb[92].mxu1 %vm327_vm1, %v10611_v33 }
 0x230   : > { %9105 = vmatprep.mubr.msk.f32.mxu1 %vm327_vm1, %v10614_v34 }
 0x233   : > { %9106 = vmatmul.mubr.msk.f32.gmra.mrb[94].mxu1 %vm327_vm1, %v10621_v35 }
 0x28a   : > { %v10961_v7 = vpop.f32.mrb[0].mxu1 }
 0x28b   : > { %v10963_v8 = vpop.f32.mrb[1].mxu1 }
 0x28e   : > { %v10965_v9 = vpop.f32.mrb[2].mxu1 }
 0x28f   : > { %v10967_v10 = vpop.f32.mrb[3].mxu1 }
 0x292   : > { %v10969_v11 = vpop.f32.mrb[4].mxu1 }
 0x293   : > { %v10971_v12 = vpop.f32.mrb[5].mxu1 }
 0x296   : > { %v10973_v13 = vpop.f32.mrb[6].mxu1 }
 0x297   : > { %v10975_v14 = vpop.f32.mrb[7].mxu1 }
 0x29a   : > { %v10977_v15 = vpop.f32.mrb[8].mxu1 }
 0x29b   : > { %v10979_v16 = vpop.f32.mrb[9].mxu1 }
 0x29e   : > { %v10981_v17 = vpop.f32.mrb[10].mxu1 }
 0x29f   : > { %v10983_v18 = vpop.f32.mrb[11].mxu1 }
 0x2a0   : > { %12359 = vst [vmem:[#allocation3_spill] sm:$0xff] %v10983_v18 }
 0x2a2   : > { %v10985_v19 = vpop.f32.mrb[12].mxu1 }
 0x2a3   : > { %12360 = vst [vmem:[#allocation4_spill] sm:$0xff] %v10985_v19  ;;  %v10987_v20 = vpop.f32.mrb[13].mxu1 }
 0x2a4   : > { %12361 = vst [vmem:[#allocation5_spill] sm:$0xff] %v10987_v20 }
 0x2a6   : > { %v10989_v21 = vpop.f32.mrb[14].mxu1 }
 0x2a7   : > { %12362 = vst [vmem:[#allocation6_spill] sm:$0xff] %v10989_v21  ;;  %v10991_v22 = vpop.f32.mrb[15].mxu1 }
 0x2a8   : > { %12363 = vst [vmem:[#allocation7_spill] sm:$0xff] %v10991_v22 }
 0x2ca   : > { %v9062_v24 = vpop.f32.mrb[64].mxu1 }
 0x2cb   : > { %v2273_v25 = vadd.f32 %v9062_v24, %v10996_v23  ;;  %v2267_v26 = vpop.f32.mrb[65].mxu1 }
 0x2cc   : > { %v2268_v27 = vadd.f32 %v10996_v23, %v2267_v26 }
 0x2cd   : > { %v2427_v28 = vmax.f32 %v2273_v25, 0.0 }
 0x2ce   : > { %v2426_v29 = vmax.f32 %v2268_v27, 0.0  ;;  %v9065_v30 = vpop.f32.mrb[66].mxu1 }
 0x2cf   : > { %2459 = vst.msk [vmem:[#allocation2 + $0x10] sm:$0xff] %vm653_vm2, %v2427_v28  ;;  %v2283_v31 = vadd.f32 %v9065_v30, %v10996_v23  ;;  %v2277_v32 = vpop.f32.mrb[67].mxu1 }
 0x2d0   : > { %2458 = vst.msk [vmem:[#allocation2 + $0x8] sm:$0xff] %vm653_vm2, %v2426_v29  ;;  %v2278_v33 = vadd.f32 %v10996_v23, %v2277_v32 }
 0x2d1   : > { %v2429_v34 = vmax.f32 %v2283_v31, 0.0 }
 0x2d2   : > { %v2428_v35 = vmax.f32 %v2278_v33, 0.0  ;;  %v9068_v46 = vpop.f32.mrb[68].mxu1 }
 0x2d3   : > { %2461 = vst.msk [vmem:[#allocation2 + $0x30] sm:$0xff] %vm653_vm2, %v2429_v34  ;;  %v2293_v48 = vadd.f32 %v9068_v46, %v10996_v23  ;;  %v2287_v49 = vpop.f32.mrb[69].mxu1 }
 0x2d4   : > { %2460 = vst.msk [vmem:[#allocation2 + $0x28] sm:$0xff] %vm653_vm2, %v2428_v35  ;;  %v2288_v50 = vadd.f32 %v10996_v23, %v2287_v49 }
 0x2d5   : > { %v2431_v51 = vmax.f32 %v2293_v48, 0.0 }
 0x2d6   : > { %v2430_v52 = vmax.f32 %v2288_v50, 0.0  ;;  %v9071_v53 = vpop.f32.mrb[70].mxu1 }
 0x2d7   : > { %2463 = vst.msk [vmem:[#allocation2 + $0x50] sm:$0xff] %vm653_vm2, %v2431_v51  ;;  %v2303_v62 = vadd.f32 %v9071_v53, %v10996_v23  ;;  %v2297_v54 = vpop.f32.mrb[71].mxu1  ;;  %v2490_v47 = vld [vmem:[#allocation2 + $0x6] sm:$0xff]  ;;  %v2491_v55 = vld [vmem:[#allocation2 + $0xe] sm:$0xff] }
 0x2d8   : > { %2462 = vst.msk [vmem:[#allocation2 + $0x48] sm:$0xff] %vm653_vm2, %v2430_v52  ;;  %v2298_v56 = vadd.f32 %v10996_v23, %v2297_v54  ;;  %9110 = vmatprep.mubr.msk.f32.mxu0 %vm653_vm2, %v2490_v47 }
 0x2d9   : > { %v2433_v58 = vmax.f32 %v2303_v62, 0.0  ;;  %9111 = vmatmul.mubr.msk.f32.vlgmr.msra.gmra.mrb[0].mxu0 %vm653_vm2, %v2491_v55 }
 0x2da   : > { %v2432_v59 = vmax.f32 %v2298_v56, 0.0  ;;  %v9074_v60 = vpop.f32.mrb[72].mxu1  ;;  %9159 = vmatpush3.msk.msra.mxu0 %vm1147_vm3, %v7764_v4 }
 0x2db   : > { %2465 = vst.msk [vmem:[#allocation2 + $0x70] sm:$0xff] %vm653_vm2, %v2433_v58  ;;  %v2313_v61 = vadd.f32 %v9074_v60, %v10996_v23  ;;  %v2307_v63 = vpop.f32.mrb[73].mxu1  ;;  %v2492_v0 = vld [vmem:[#allocation2 + $0x26] sm:$0xff]  ;;  %v2493_v1 = vld [vmem:[#allocation2 + $0x2e] sm:$0xff]  ;;  %9208 = vmatprep.subr.msk.mxu0 %vm1147_vm3, %v11016_v57 }
 0x2dc   : > { %2464 = vst.msk [vmem:[#allocation2 + $0x68] sm:$0xff] %vm653_vm2, %v2432_v59  ;;  %v2308_v2 = vadd.f32 %v10996_v23, %v2307_v63  ;;  %9113 = vmatprep.mubr.msk.f32.mxu0 %vm653_vm2, %v2492_v0 }
 0x2dd   : > { %v2435_v6 = vmax.f32 %v2313_v61, 0.0  ;;  %9114 = vmatmul.mubr.msk.f32.gmra.mrb[2].mxu0 %vm653_vm2, %v2493_v1 }
 0x2de   : > { %v2434_v38 = vmax.f32 %v2308_v2, 0.0  ;;  %v9077_v39 = vpop.f32.mrb[74].mxu1 }
 0x2df   : > { %2467 = vst.msk [vmem:[#allocation2 + $0x90] sm:$0xff] %vm653_vm2, %v2435_v6  ;;  %v2323_v40 = vadd.f32 %v9077_v39, %v10996_v23  ;;  %v2317_v41 = vpop.f32.mrb[75].mxu1  ;;  %v2494_v36 = vld [vmem:[#allocation2 + $0x46] sm:$0xff]  ;;  %v2495_v42 = vld [vmem:[#allocation2 + $0x4e] sm:$0xff] }
 0x2e0   : > { %2466 = vst.msk [vmem:[#allocation2 + $0x88] sm:$0xff] %vm653_vm2, %v2434_v38  ;;  %v2318_v43 = vadd.f32 %v10996_v23, %v2317_v41  ;;  %9116 = vmatprep.mubr.msk.f32.mxu0 %vm653_vm2, %v2494_v36  ;;  %v2880_v41 = vld [vmem:[#allocation2 + $0x8] sm:$0xff] }
 0x2e1   : > { %v2437_v37 = vmax.f32 %v2323_v40, 0.0  ;;  %9117 = vmatmul.mubr.msk.f32.gmra.mrb[4].mxu0 %vm653_vm2, %v2495_v42 }
 0x2e2   : > { %v2436_v44 = vmax.f32 %v2318_v43, 0.0  ;;  %v9080_v45 = vpop.f32.mrb[76].mxu1 }
 0x2e3   : > { %2469 = vst.msk [vmem:[#allocation2 + $0xb0] sm:$0xff] %vm653_vm2, %v2437_v37  ;;  %v2333_v3 = vadd.f32 %v9080_v45, %v10996_v23  ;;  %v2327_v4 = vpop.f32.mrb[77].mxu1  ;;  %v2496_v24 = vld [vmem:[#allocation2 + $0x66] sm:$0xff]  ;;  %v2497_v25 = vld [vmem:[#allocation2 + $0x6e] sm:$0xff] }
 0x2e4   : > { %2468 = vst.msk [vmem:[#allocation2 + $0xa8] sm:$0xff] %vm653_vm2, %v2436_v44  ;;  %v2328_v26 = vadd.f32 %v10996_v23, %v2327_v4  ;;  %9119 = vmatprep.mubr.msk.f32.mxu0 %vm653_vm2, %v2496_v24  ;;  %v2881_v4 = vld [vmem:[#allocation2 + $0x10] sm:$0xff]  ;;  %v11073_v24 = vld [vmem:[%s12352_s1 + $0xc] sm:$0xf] }
 0x2e5   : > { %v2439_v27 = vmax.f32 %v2333_v3, 0.0  ;;  %9120 = vmatmul.mubr.msk.f32.gmra.mrb[6].mxu0 %vm653_vm2, %v2497_v25 }
 0x2e6   : > { %v2438_v28 = vmax.f32 %v2328_v26, 0.0  ;;  %v9083_v29 = vpop.f32.mrb[78].mxu1  ;;  %v2882_v26 = vld [vmem:[#allocation2 + $0x28] sm:$0xff] }
 0x2e7   : > { %2471 = vst.msk [vmem:[#allocation2 + $0xd0] sm:$0xff] %vm653_vm2, %v2439_v27  ;;  %v2343_v30 = vadd.f32 %v9083_v29, %v10996_v23  ;;  %v2337_v31 = vpop.f32.mrb[79].mxu1  ;;  %v2498_v32 = vld [vmem:[#allocation2 + $0x86] sm:$0xff]  ;;  %v2499_v33 = vld [vmem:[#allocation2 + $0x8e] sm:$0xff] }
 0x2e8   : > { %2470 = vst.msk [vmem:[#allocation2 + $0xc8] sm:$0xff] %vm653_vm2, %v2438_v28  ;;  %v2338_v34 = vadd.f32 %v10996_v23, %v2337_v31  ;;  %9122 = vmatprep.mubr.msk.f32.mxu0 %vm653_vm2, %v2498_v32  ;;  %v11080_v27 = vld [vmem:[%s12356_s5 + $0xc] sm:$0x3] }
 0x2e9   : > { %v2441_v35 = vmax.f32 %v2343_v30, 0.0  ;;  %9123 = vmatmul.mubr.msk.f32.gmra.mrb[8].mxu0 %vm653_vm2, %v2499_v33 }
 0x2ea   : > { %v2440_v46 = vmax.f32 %v2338_v34, 0.0  ;;  %v9086_v48 = vpop.f32.mrb[80].mxu1  ;;  %v2883_v34 = vld [vmem:[#allocation2 + $0x30] sm:$0xff] }
 0x2eb   : > { %2473 = vst.msk [vmem:[#allocation2 + $0xf0] sm:$0xff] %vm653_vm2, %v2441_v35  ;;  %v2353_v49 = vadd.f32 %v9086_v48, %v10996_v23  ;;  %v2347_v50 = vpop.f32.mrb[81].mxu1  ;;  %v2500_v51 = vld [vmem:[#allocation2 + $0xa6] sm:$0xff]  ;;  %v2501_v52 = vld [vmem:[#allocation2 + $0xae] sm:$0xff] }
 0x2ec   : > { %2472 = vst.msk [vmem:[#allocation2 + $0xe8] sm:$0xff] %vm653_vm2, %v2440_v46  ;;  %v2348_v53 = vadd.f32 %v10996_v23, %v2347_v50  ;;  %9125 = vmatprep.mubr.msk.f32.mxu0 %vm653_vm2, %v2500_v51  ;;  %v2884_v46 = vld [vmem:[#allocation2 + $0x48] sm:$0xff] }
 0x2ed   : > { %v2443_v62 = vmax.f32 %v2353_v49, 0.0  ;;  %9126 = vmatmul.mubr.msk.f32.gmra.mrb[10].mxu0 %vm653_vm2, %v2501_v52 }
 0x2ee   : > { %v2442_v54 = vmax.f32 %v2348_v53, 0.0  ;;  %v9089_v47 = vpop.f32.mrb[82].mxu1 }
 0x2ef   : > { %2475 = vst.msk [vmem:[#allocation2 + $0x110] sm:$0xff] %vm653_vm2, %v2443_v62  ;;  %v2363_v55 = vadd.f32 %v9089_v47, %v10996_v23  ;;  %v2357_v56 = vpop.f32.mrb[83].mxu1  ;;  %v2502_v58 = vld [vmem:[#allocation2 + $0xc6] sm:$0xff]  ;;  %v2503_v59 = vld [vmem:[#allocation2 + $0xce] sm:$0xff] }
 0x2f0   : > { %2474 = vst.msk [vmem:[#allocation2 + $0x108] sm:$0xff] %vm653_vm2, %v2442_v54  ;;  %v2358_v60 = vadd.f32 %v10996_v23, %v2357_v56  ;;  %9128 = vmatprep.mubr.msk.f32.mxu0 %vm653_vm2, %v2502_v58  ;;  %v2885_v62 = vld [vmem:[#allocation2 + $0x50] sm:$0xff]  ;;  %v2886_v47 = vld [vmem:[#allocation2 + $0x68] sm:$0xff] }
 0x2f1   : > { %v2445_v61 = vmax.f32 %v2363_v55, 0.0  ;;  %9129 = vmatmul.mubr.msk.f32.gmra.mrb[12].mxu0 %vm653_vm2, %v2503_v59 }
 0x2f2   : > { %v2444_v63 = vmax.f32 %v2358_v60, 0.0  ;;  %v9092_v0 = vpop.f32.mrb[84].mxu1 }
 0x2f3   : > { %2477 = vst.msk [vmem:[#allocation2 + $0x130] sm:$0xff] %vm653_vm2, %v2445_v61  ;;  %v2373_v1 = vadd.f32 %v9092_v0, %v10996_v23  ;;  %v2367_v2 = vpop.f32.mrb[85].mxu1  ;;  %v2504_v6 = vld [vmem:[#allocation2 + $0xe6] sm:$0xff]  ;;  %v2505_v38 = vld [vmem:[#allocation2 + $0xee] sm:$0xff] }
 0x2f4   : > { %2476 = vst.msk [vmem:[#allocation2 + $0x128] sm:$0xff] %vm653_vm2, %v2444_v63  ;;  %v2368_v39 = vadd.f32 %v10996_v23, %v2367_v2  ;;  %9131 = vmatprep.mubr.msk.f32.mxu0 %vm653_vm2, %v2504_v6  ;;  %v2887_v0 = vld [vmem:[#allocation2 + $0x70] sm:$0xff]  ;;  %v2888_v2 = vld [vmem:[#allocation2 + $0x88] sm:$0xff] }
 0x2f5   : > { %v2447_v40 = vmax.f32 %v2373_v1, 0.0  ;;  %9132 = vmatmul.mubr.msk.f32.gmra.mrb[14].mxu0 %vm653_vm2, %v2505_v38 }
 0x2f6   : > { %v2446_v36 = vmax.f32 %v2368_v39, 0.0  ;;  %v9095_v42 = vpop.f32.mrb[86].mxu1  ;;  %9160 = vmatprep.mubr.msk.f32.mxu0 %vm653_vm2, %v2880_v41 }
 0x2f7   : > { %2479 = vst.msk [vmem:[#allocation2 + $0x150] sm:$0xff] %vm653_vm2, %v2447_v40  ;;  %v2383_v43 = vadd.f32 %v9095_v42, %v10996_v23  ;;  %v2377_v37 = vpop.f32.mrb[87].mxu1  ;;  %v2506_v44 = vld [vmem:[#allocation2 + $0x106] sm:$0xff]  ;;  %v2507_v45 = vld [vmem:[#allocation2 + $0x10e] sm:$0xff] }
 0x2f8   : > { %2478 = vst.msk [vmem:[#allocation2 + $0x148] sm:$0xff] %vm653_vm2, %v2446_v36  ;;  %v2378_v3 = vadd.f32 %v10996_v23, %v2377_v37  ;;  %9134 = vmatprep.mubr.msk.f32.mxu1 %vm653_vm2, %v2506_v44  ;;  %v2890_v44 = vld [vmem:[#allocation2 + $0xa8] sm:$0xff] }
 0x2f9   : > { %v2449_v25 = vmax.f32 %v2383_v43, 0.0  ;;  %9135 = vmatmul.mubr.msk.f32.vlgmr.msra.gmra.mrb[16].mxu1 %vm653_vm2, %v2507_v45  ;;  %9161 = vmatmul.mubr.msk.f32.vlgmr.msra.gmra.mrb[0].mxu0 %vm653_vm2, %v2881_v4  ;;  %v2889_v43 = vld [vmem:[#allocation2 + $0x90] sm:$0xff] }
 0x2fa   : > { %v2448_v28 = vmax.f32 %v2378_v3, 0.0  ;;  %9259 = vmatpush3.msk.msra.mxu1 %vm424_vm0, %v10957_v5  ;;  %v9098_v29 = vpop.f32.mrb[88].mxu1  ;;  %9163 = vmatprep.mubr.msk.f32.mxu0 %vm653_vm2, %v2882_v26 }
 0x2fb   : > { %2481 = vst.msk [vmem:[#allocation2 + $0x170] sm:$0xff] %vm653_vm2, %v2449_v25  ;;  %v2393_v30 = vadd.f32 %v9098_v29, %v10996_v23  ;;  %v2387_v31 = vpop.f32.mrb[89].mxu1  ;;  %v2508_v32 = vld [vmem:[#allocation2 + $0x126] sm:$0xff]  ;;  %v2509_v33 = vld [vmem:[#allocation2 + $0x12e] sm:$0xff]  ;;  %9209 = vmatpush3.msk.msra.mxu0 %vm1147_vm3, %v11016_v57  ;;  %9458 = vmatprep.subr.msk.mxu1 %vm424_vm0, %v11073_v24 }
 0x2fc   : > { %2480 = vst.msk [vmem:[#allocation2 + $0x168] sm:$0xff] %vm653_vm2, %v2448_v28  ;;  %v2388_v5 = vadd.f32 %v10996_v23, %v2387_v31  ;;  %9137 = vmatprep.mubr.msk.f32.mxu1 %vm653_vm2, %v2508_v32  ;;  %9308 = vmatprep.subr.msk.mxu0 %vm1147_vm3, %v11080_v27  ;;  %v2892_v25 = vld [vmem:[#allocation2 + $0xc8] sm:$0xff]  ;;  %v2893_v29 = vld [vmem:[#allocation2 + $0xd0] sm:$0xff] }
 0x2fd   : > { %v2451_v35 = vmax.f32 %v2393_v30, 0.0  ;;  %9138 = vmatmul.mubr.msk.f32.gmra.mrb[18].mxu1 %vm653_vm2, %v2509_v33  ;;  %9164 = vmatmul.mubr.msk.f32.gmra.mrb[2].mxu0 %vm653_vm2, %v2883_v34  ;;  %v2894_v30 = vld [vmem:[#allocation2 + $0xe8] sm:$0xff]  ;;  %v2895_v33 = vld [vmem:[#allocation2 + $0xf0] sm:$0xff]  ;;  %v11138_v34 = vld [vmem:[%s10326_s11] sm:$0xff] }
 0x2fe   : > { %v2450_v57 = vmax.f32 %v2388_v5, 0.0  ;;  %v9101_v48 = vpop.f32.mrb[90].mxu1  ;;  %9166 = vmatprep.mubr.msk.f32.mxu0 %vm653_vm2, %v2884_v46  ;;  %v2896_v5 = vld [vmem:[#allocation2 + $0x108] sm:$0xff] }
 0x2ff   : > { %2483 = vst.msk [vmem:[#allocation2 + $0x190] sm:$0xff] %vm653_vm2, %v2451_v35  ;;  %v2403_v49 = vadd.f32 %v9101_v48, %v10996_v23  ;;  %v2397_v50 = vpop.f32.mrb[91].mxu1  ;;  %v2510_v51 = vld [vmem:[#allocation2 + $0x146] sm:$0xff]  ;;  %v2511_v52 = vld [vmem:[#allocation2 + $0x14e] sm:$0xff] }
 0x300   : > { %2482 = vst.msk [vmem:[#allocation2 + $0x188] sm:$0xff] %vm653_vm2, %v2450_v57  ;;  %v2398_v53 = vadd.f32 %v10996_v23, %v2397_v50  ;;  %9140 = vmatprep.mubr.msk.f32.mxu1 %vm653_vm2, %v2510_v51  ;;  %v2897_v35 = vld [vmem:[#allocation2 + $0x110] sm:$0xff]  ;;  %v11144_v46 = vld [vmem:[%s10326_s11 + $0x8] sm:$0xff]  ;;  %v11158_v50 = vld [vmem:[%s10326_s11 + $0x18] sm:$0xff] }
 0x301   : > { %v2453_v54 = vmax.f32 %v2403_v49, 0.0  ;;  %9141 = vmatmul.mubr.msk.f32.gmra.mrb[20].mxu1 %vm653_vm2, %v2511_v52  ;;  %9167 = vmatmul.mubr.msk.f32.gmra.mrb[4].mxu0 %vm653_vm2, %v2885_v62  ;;  %v2898_v57 = vld [vmem:[#allocation2 + $0x128] sm:$0xff]  ;;  %v11150_v48 = vld [vmem:[%s10326_s11 + $0x10] sm:$0xff]  ;;  %v11164_v52 = vld [vmem:[%s10326_s11 + $0x20] sm:$0xff] }
 0x302   : > { %v2452_v55 = vmax.f32 %v2398_v53, 0.0  ;;  %v9104_v56 = vpop.f32.mrb[92].mxu1  ;;  %9169 = vmatprep.mubr.msk.f32.mxu0 %vm653_vm2, %v2886_v47  ;;  %v2899_v49 = vld [vmem:[#allocation2 + $0x130] sm:$0xff]  ;;  %v2900_v51 = vld [vmem:[#allocation2 + $0x148] sm:$0xff] }
 0x303   : > { %2485 = vst.msk [vmem:[#allocation2 + $0x1b0] sm:$0xff] %vm653_vm2, %v2453_v54  ;;  %v2413_v58 = vadd.f32 %v9104_v56, %v10996_v23  ;;  %v2407_v59 = vpop.f32.mrb[93].mxu1  ;;  %v2512_v60 = vld [vmem:[#allocation2 + $0x166] sm:$0xff]  ;;  %v2513_v61 = vld [vmem:[#allocation2 + $0x16e] sm:$0xff] }
 0x304   : > { %2484 = vst.msk [vmem:[#allocation2 + $0x1a8] sm:$0xff] %vm653_vm2, %v2452_v55  ;;  %v2408_v63 = vadd.f32 %v10996_v23, %v2407_v59  ;;  %9143 = vmatprep.mubr.msk.f32.mxu1 %vm653_vm2, %v2512_v60  ;;  %v2901_v53 = vld [vmem:[#allocation2 + $0x150] sm:$0xff]  ;;  %v2902_v62 = vld [vmem:[#allocation2 + $0x168] sm:$0xff]  ;;  %v11182_v55 = vld [vmem:[%s10326_s11 + $0x38] sm:$0xff] }
 0x305   : > { %v2455_v1 = vmax.f32 %v2413_v58, 0.0  ;;  %9144 = vmatmul.mubr.msk.f32.gmra.mrb[22].mxu1 %vm653_vm2, %v2513_v61  ;;  %9170 = vmatmul.mubr.msk.f32.gmra.mrb[6].mxu0 %vm653_vm2, %v2887_v0  ;;  %v11176_v54 = vld [vmem:[%s10326_s11 + $0x30] sm:$0xff]  ;;  %v11188_v58 = vld [vmem:[%s10326_s11 + $0x40] sm:$0xff]  ;;  %v11194_v60 = vld [vmem:[%s10326_s11 + $0x48] sm:$0xff] }
 0x306   : > { %v2454_v6 = vmax.f32 %v2408_v63, 0.0  ;;  %v9107_v38 = vpop.f32.mrb[94].mxu1  ;;  %9172 = vmatprep.mubr.msk.f32.mxu0 %vm653_vm2, %v2888_v2  ;;  %v2903_v47 = vld [vmem:[#allocation2 + $0x170] sm:$0xff] }
 0x307   : > { %2487 = vst.msk [vmem:[#allocation2 + $0x1d0] sm:$0xff] %vm653_vm2, %v2455_v1  ;;  %v2423_v39 = vadd.f32 %v9107_v38, %v10996_v23  ;;  %v2417_v40 = vpop.f32.mrb[95].mxu1  ;;  %v2514_v41 = vld [vmem:[#allocation2 + $0x186] sm:$0xff]  ;;  %v2515_v36 = vld [vmem:[#allocation2 + $0x18e] sm:$0xff]  ;;  %v11206_v1 = vld [vmem:[%s10326_s11 + $0x58] sm:$0xff] }
 0x308   : > { %2486 = vst.msk [vmem:[#allocation2 + $0x1c8] sm:$0xff] %vm653_vm2, %v2454_v6  ;;  %v2418_v42 = vadd.f32 %v10996_v23, %v2417_v40  ;;  %9146 = vmatprep.mubr.msk.f32.mxu1 %vm653_vm2, %v2514_v41  ;;  %v2891_v23 = vld [vmem:[#allocation2 + $0xb0] sm:$0xff]  ;;  %v2904_v56 = vld [vmem:[#allocation2 + $0x188] sm:$0xff]  ;;  %v11212_v6 = vld [vmem:[%s10326_s11 + $0x60] sm:$0xff] }
 0x309   : > { %v2457_v37 = vmax.f32 %v2423_v39, 0.0  ;;  %9147 = vmatmul.mubr.msk.f32.gmra.mrb[24].mxu1 %vm653_vm2, %v2515_v36  ;;  %9173 = vmatmul.mubr.msk.f32.gmra.mrb[8].mxu0 %vm653_vm2, %v2889_v43  ;;  %v2905_v59 = vld [vmem:[#allocation2 + $0x190] sm:$0xff]  ;;  %v11218_v39 = vld [vmem:[%s10326_s11 + $0x68] sm:$0xff] }
 0x30a   : > { %v2456_v45 = vmax.f32 %v2418_v42, 0.0  ;;  %9175 = vmatprep.mubr.msk.f32.mxu0 %vm653_vm2, %v2890_v44  ;;  %v11200_v63 = vld [vmem:[%s10326_s11 + $0x50] sm:$0xff]  ;;  %v11230_v42 = vld [vmem:[%s10326_s11 + $0x78] sm:$0xff] }
 0x30b   : > { %2489 = vst.msk [vmem:[#allocation2 + $0x1f0] sm:$0xff] %vm653_vm2, %v2457_v37  ;;  %v2516_v3 = vld [vmem:[#allocation2 + $0x1a6] sm:$0xff]  ;;  %v2517_v4 = vld [vmem:[#allocation2 + $0x1ae] sm:$0xff] }
 0x30c   : > { %2488 = vst.msk [vmem:[#allocation2 + $0x1e8] sm:$0xff] %vm653_vm2, %v2456_v45  ;;  %9149 = vmatprep.mubr.msk.f32.mxu1 %vm653_vm2, %v2516_v3  ;;  %v2906_v61 = vld [vmem:[#allocation2 + $0x1a8] sm:$0xff]  ;;  %v2907_v0 = vld [vmem:[#allocation2 + $0x1b0] sm:$0xff]  ;;  %v11236_v37 = vld [vmem:[%s10326_s11 + $0x80] sm:$0xff] }
 0x30d   : > { %9150 = vmatmul.mubr.msk.f32.gmra.mrb[26].mxu1 %vm653_vm2, %v2517_v4  ;;  %9176 = vmatmul.mubr.msk.f32.gmra.mrb[10].mxu0 %vm653_vm2, %v2891_v23  ;;  %v11224_v41 = vld [vmem:[%s10326_s11 + $0x70] sm:$0xff]  ;;  %v11242_v45 = vld [vmem:[%s10326_s11 + $0x88] sm:$0xff] }
 0x30e   : > { %9178 = vmatprep.mubr.msk.f32.mxu0 %vm653_vm2, %v2892_v25  ;;  %v2909_v38 = vld [vmem:[#allocation2 + $0x1d0] sm:$0xff]  ;;  %v11256_v25 = vld [vmem:[%s10326_s11 + $0x98] sm:$0xff] }
 0x30f   : > { %v2518_v26 = vld [vmem:[#allocation2 + $0x1c6] sm:$0xff]  ;;  %v2519_v28 = vld [vmem:[#allocation2 + $0x1ce] sm:$0xff] }
 0x310   : > { %9152 = vmatprep.mubr.msk.f32.mxu1 %vm653_vm2, %v2518_v26  ;;  %v2908_v2 = vld [vmem:[#allocation2 + $0x1c8] sm:$0xff]  ;;  %v3271_v44 = vld [vmem:[#allocation2 + $0x12] sm:$0xff] }
 0x311   : > { %9153 = vmatmul.mubr.msk.f32.gmra.mrb[28].mxu1 %vm653_vm2, %v2519_v28  ;;  %9179 = vmatmul.mubr.msk.f32.gmra.mrb[12].mxu0 %vm653_vm2, %v2893_v29  ;;  %v3270_v43 = vld [vmem:[#allocation2 + $0xa] sm:$0xff]  ;;  %v3273_v23 = vld [vmem:[#allocation2 + $0x32] sm:$0xff]  ;;  %v11262_v28 = vld [vmem:[%s10326_s11 + $0xa0] sm:$0xff] }
 0x312   : > { %9181 = vmatprep.mubr.msk.f32.mxu0 %vm653_vm2, %v2894_v30  ;;  %v2911_v36 = vld [vmem:[#allocation2 + $0x1f0] sm:$0xff] }
 0x313   : > { %v2520_v31 = vld [vmem:[#allocation2 + $0x1e6] sm:$0xff]  ;;  %v2521_v32 = vld [vmem:[#allocation2 + $0x1ee] sm:$0xff] }
 0x314   : > { %9155 = vmatprep.mubr.msk.f32.mxu1 %vm653_vm2, %v2520_v31  ;;  %v2910_v40 = vld [vmem:[#allocation2 + $0x1e8] sm:$0xff]  ;;  %v11248_v4 = vld [vmem:[%s10326_s11 + $0x90] sm:$0xff] }
 0x315   : > { %9156 = vmatmul.mubr.msk.f32.gmra.mrb[30].mxu1 %vm653_vm2, %v2521_v32  ;;  %9182 = vmatmul.mubr.msk.f32.gmra.mrb[14].mxu0 %vm653_vm2, %v2895_v33  ;;  %v3272_v3 = vld [vmem:[#allocation2 + $0x2a] sm:$0xff]  ;;  %v3275_v29 = vld [vmem:[#allocation2 + $0x52] sm:$0xff] }
 0x316   : > { %9184 = vmatprep.mubr.msk.f32.mxu0 %vm653_vm2, %v2896_v5  ;;  %9260 = vmatprep.mubr.msk.f32.mxu1 %vm327_vm1, %v11138_v34  ;;  %v3274_v26 = vld [vmem:[#allocation2 + $0x4a] sm:$0xff]  ;;  %v3277_v32 = vld [vmem:[#allocation2 + $0x72] sm:$0xff] }
 0x317   : > { %v3276_v30 = vld [vmem:[#allocation2 + $0x6a] sm:$0xff]  ;;  %v11280_v33 = vld [vmem:[%s10326_s11 + $0xb8] sm:$0xff] }
 0x318   : > { %v11274_v31 = vld [vmem:[%s10326_s11 + $0xb0] sm:$0xff] }
 0x319   : > { %9185 = vmatmul.mubr.msk.f32.gmra.mrb[16].mxu0 %vm653_vm2, %v2897_v35  ;;  %9261 = vmatmul.mubr.msk.f32.vlgmr.msra.gmra.mrb[96].mxu1 %vm327_vm1, %v11144_v46  ;;  %v3278_v5 = vld [vmem:[#allocation2 + $0x8a] sm:$0xff]  ;;  %v11286_v35 = vld [vmem:[%s10326_s11 + $0xc0] sm:$0xff] }
 0x31a   : > { %9187 = vmatprep.mubr.msk.f32.mxu0 %vm653_vm2, %v2898_v57  ;;  %9263 = vmatprep.mubr.msk.f32.mxu1 %vm327_vm1, %v11150_v48  ;;  %v3279_v57 = vld [vmem:[#allocation2 + $0x92] sm:$0xff] }
 0x31b   : > { %9459 = vmatpush3.msk.msra.mxu1 %vm424_vm0, %v11073_v24  ;;  %v11170_v24 = vld [vmem:[%s10326_s11 + $0x28] sm:$0xff] }
 0x31d   : > { %9188 = vmatmul.mubr.msk.f32.gmra.mrb[18].mxu0 %vm653_vm2, %v2899_v49  ;;  %9264 = vmatmul.mubr.msk.f32.gmra.mrb[98].mxu1 %vm327_vm1, %v11158_v50  ;;  %v11292_v49 = vld [vmem:[%s10326_s11 + $0xc8] sm:$0xff] }
 0x31e   : > { %9190 = vmatprep.mubr.msk.f32.mxu0 %vm653_vm2, %v2900_v51  ;;  %9266 = vmatprep.mubr.msk.f32.mxu1 %vm327_vm1, %v11164_v52  ;;  %v3280_v51 = vld [vmem:[#allocation2 + $0xaa] sm:$0xff] }
 0x321   : > { %9191 = vmatmul.mubr.msk.f32.gmra.mrb[20].mxu0 %vm653_vm2, %v2901_v53  ;;  %9267 = vmatmul.mubr.msk.f32.gmra.mrb[100].mxu1 %vm327_vm1, %v11170_v24  ;;  %v11298_v53 = vld [vmem:[%s10326_s11 + $0xd0] sm:$0xff] }
 0x322   : > { %9193 = vmatprep.mubr.msk.f32.mxu0 %vm653_vm2, %v2902_v62  ;;  %9269 = vmatprep.mubr.msk.f32.mxu1 %vm327_vm1, %v11176_v54  ;;  %v3281_v62 = vld [vmem:[#allocation2 + $0xb2] sm:$0xff] }
 0x325   : > { %9194 = vmatmul.mubr.msk.f32.gmra.mrb[22].mxu0 %vm653_vm2, %v2903_v47  ;;  %9270 = vmatmul.mubr.msk.f32.gmra.mrb[102].mxu1 %vm327_vm1, %v11182_v55  ;;  %v11304_v47 = vld [vmem:[%s10326_s11 + $0xd8] sm:$0xff] }
 0x326   : > { %9196 = vmatprep.mubr.msk.f32.mxu0 %vm653_vm2, %v2904_v56  ;;  %9272 = vmatprep.mubr.msk.f32.mxu1 %vm327_vm1, %v11188_v58  ;;  %v3282_v56 = vld [vmem:[#allocation2 + $0xca] sm:$0xff] }
 0x329   : > { %9197 = vmatmul.mubr.msk.f32.gmra.mrb[24].mxu0 %vm653_vm2, %v2905_v59  ;;  %9273 = vmatmul.mubr.msk.f32.gmra.mrb[104].mxu1 %vm327_vm1, %v11194_v60  ;;  %v11310_v59 = vld [vmem:[%s10326_s11 + $0xe0] sm:$0xff] }
 0x32a   : > { %9199 = vmatprep.mubr.msk.f32.mxu0 %vm653_vm2, %v2906_v61  ;;  %9275 = vmatprep.mubr.msk.f32.mxu1 %vm327_vm1, %v11200_v63  ;;  %v3283_v61 = vld [vmem:[#allocation2 + $0xd2] sm:$0xff] }
 0x32d   : > { %9200 = vmatmul.mubr.msk.f32.gmra.mrb[26].mxu0 %vm653_vm2, %v2907_v0  ;;  %9276 = vmatmul.mubr.msk.f32.gmra.mrb[106].mxu1 %vm327_vm1, %v11206_v1  ;;  %v11316_v0 = vld [vmem:[%s10326_s11 + $0xe8] sm:$0xff] }
 0x32e   : > { %9202 = vmatprep.mubr.msk.f32.mxu0 %vm653_vm2, %v2908_v2  ;;  %9278 = vmatprep.mubr.msk.f32.mxu1 %vm327_vm1, %v11212_v6  ;;  %v3284_v2 = vld [vmem:[#allocation2 + $0xea] sm:$0xff] }
 0x331   : > { %9203 = vmatmul.mubr.msk.f32.gmra.mrb[28].mxu0 %vm653_vm2, %v2909_v38  ;;  %9279 = vmatmul.mubr.msk.f32.gmra.mrb[108].mxu1 %vm327_vm1, %v11218_v39  ;;  %v11322_v38 = vld [vmem:[%s10326_s11 + $0xf0] sm:$0xff] }
 0x332   : > { %9205 = vmatprep.mubr.msk.f32.mxu0 %vm653_vm2, %v2910_v40  ;;  %9281 = vmatprep.mubr.msk.f32.mxu1 %vm327_vm1, %v11224_v41  ;;  %v3285_v40 = vld [vmem:[#allocation2 + $0xf2] sm:$0xff] }
 0x335   : > { %9206 = vmatmul.mubr.msk.f32.gmra.mrb[30].mxu0 %vm653_vm2, %v2911_v36  ;;  %9282 = vmatmul.mubr.msk.f32.gmra.mrb[110].mxu1 %vm327_vm1, %v11230_v42  ;;  %v11328_v36 = vld [vmem:[%s10326_s11 + $0xf8] sm:$0xff] }
 0x336   : > { %9210 = vmatprep.mubr.msk.f32.mxu0 %vm653_vm2, %v3270_v43  ;;  %9284 = vmatprep.mubr.msk.f32.mxu1 %vm327_vm1, %v11236_v37  ;;  %v3286_v43 = vld [vmem:[#allocation2 + $0x10a] sm:$0xff] }
 0x339   : > { %9211 = vmatmul.mubr.msk.f32.vlgmr.msra.gmra.mrb[0].mxu0 %vm653_vm2, %v3271_v44  ;;  %9285 = vmatmul.mubr.msk.f32.gmra.mrb[112].mxu1 %vm327_vm1, %v11242_v45  ;;  %v3287_v44 = vld [vmem:[#allocation2 + $0x112] sm:$0xff] }
 0x33a   : > { %9213 = vmatprep.mubr.msk.f32.mxu0 %vm653_vm2, %v3272_v3  ;;  %9287 = vmatprep.mubr.msk.f32.mxu1 %vm327_vm1, %v11248_v4  ;;  %v3288_v3 = vld [vmem:[#allocation2 + $0x12a] sm:$0xff] }
 0x33b   : > { %9309 = vmatpush3.msk.msra.mxu0 %vm1147_vm3, %v11080_v27  ;;  %v11268_v27 = vld [vmem:[%s10326_s11 + $0xa8] sm:$0xff] }
 0x33d   : > { %9214 = vmatmul.mubr.msk.f32.gmra.mrb[2].mxu0 %vm653_vm2, %v3273_v23  ;;  %9288 = vmatmul.mubr.msk.f32.gmra.mrb[114].mxu1 %vm327_vm1, %v11256_v25  ;;  %v3289_v23 = vld [vmem:[#allocation2 + $0x132] sm:$0xff] }
 0x33e   : > { %9216 = vmatprep.mubr.msk.f32.mxu0 %vm653_vm2, %v3274_v26  ;;  %9290 = vmatprep.mubr.msk.f32.mxu1 %vm327_vm1, %v11262_v28  ;;  %v3290_v26 = vld [vmem:[#allocation2 + $0x14a] sm:$0xff] }
 0x341   : > { %9217 = vmatmul.mubr.msk.f32.gmra.mrb[4].mxu0 %vm653_vm2, %v3275_v29  ;;  %9291 = vmatmul.mubr.msk.f32.gmra.mrb[116].mxu1 %vm327_vm1, %v11268_v27  ;;  %v3291_v29 = vld [vmem:[#allocation2 + $0x152] sm:$0xff] }
 0x342   : > { %9219 = vmatprep.mubr.msk.f32.mxu0 %vm653_vm2, %v3276_v30  ;;  %9293 = vmatprep.mubr.msk.f32.mxu1 %vm327_vm1, %v11274_v31  ;;  %v3292_v30 = vld [vmem:[#allocation2 + $0x16a] sm:$0xff] }
 0x345   : > { %9220 = vmatmul.mubr.msk.f32.gmra.mrb[6].mxu0 %vm653_vm2, %v3277_v32  ;;  %9294 = vmatmul.mubr.msk.f32.gmra.mrb[118].mxu1 %vm327_vm1, %v11280_v33  ;;  %v3293_v32 = vld [vmem:[#allocation2 + $0x172] sm:$0xff] }
 0x346   : > { %9222 = vmatprep.mubr.msk.f32.mxu0 %vm653_vm2, %v3278_v5  ;;  %9296 = vmatprep.mubr.msk.f32.mxu1 %vm327_vm1, %v11286_v35  ;;  %v3294_v5 = vld [vmem:[#allocation2 + $0x18a] sm:$0xff] }
 0x349   : > { %9223 = vmatmul.mubr.msk.f32.gmra.mrb[8].mxu0 %vm653_vm2, %v3279_v57  ;;  %9297 = vmatmul.mubr.msk.f32.gmra.mrb[120].mxu1 %vm327_vm1, %v11292_v49  ;;  %v3295_v57 = vld [vmem:[#allocation2 + $0x192] sm:$0xff] }
 0x34a   : > { %9225 = vmatprep.mubr.msk.f32.mxu0 %vm653_vm2, %v3280_v51  ;;  %9299 = vmatprep.mubr.msk.f32.mxu1 %vm327_vm1, %v11298_v53  ;;  %v3296_v51 = vld [vmem:[#allocation2 + $0x1aa] sm:$0xff] }
 0x34d   : > { %9226 = vmatmul.mubr.msk.f32.gmra.mrb[10].mxu0 %vm653_vm2, %v3281_v62  ;;  %9300 = vmatmul.mubr.msk.f32.gmra.mrb[122].mxu1 %vm327_vm1, %v11304_v47  ;;  %v3297_v62 = vld [vmem:[#allocation2 + $0x1b2] sm:$0xff] }
 0x34e   : > { %9228 = vmatprep.mubr.msk.f32.mxu0 %vm653_vm2, %v3282_v56  ;;  %9302 = vmatprep.mubr.msk.f32.mxu1 %vm327_vm1, %v11310_v59  ;;  %v3298_v56 = vld [vmem:[#allocation2 + $0x1ca] sm:$0xff] }
 0x351   : > { %9229 = vmatmul.mubr.msk.f32.gmra.mrb[12].mxu0 %vm653_vm2, %v3283_v61  ;;  %9303 = vmatmul.mubr.msk.f32.gmra.mrb[124].mxu1 %vm327_vm1, %v11316_v0  ;;  %v3299_v61 = vld [vmem:[#allocation2 + $0x1d2] sm:$0xff] }
 0x352   : > { %9231 = vmatprep.mubr.msk.f32.mxu0 %vm653_vm2, %v3284_v2  ;;  %9305 = vmatprep.mubr.msk.f32.mxu1 %vm327_vm1, %v11322_v38  ;;  %v3300_v2 = vld [vmem:[#allocation2 + $0x1ea] sm:$0xff] }
 0x355   : > { %9232 = vmatmul.mubr.msk.f32.gmra.mrb[14].mxu0 %vm653_vm2, %v3285_v40  ;;  %9306 = vmatmul.mubr.msk.f32.gmra.mrb[126].mxu1 %vm327_vm1, %v11328_v36  ;;  %v3301_v40 = vld [vmem:[#allocation2 + $0x1f2] sm:$0xff] }
 0x356   : > { %9234 = vmatprep.mubr.msk.f32.mxu0 %vm653_vm2, %v3286_v43  ;;  %9460 = vmatprep.mubr.msk.f32.mxu1 %vm327_vm1, %v11138_v34  ;;  %v11391_v43 = vld [vmem:[%s12356_s5 + $0xe] sm:$0x3] }
 0x357   : > { %9358 = vmatprep.subr.msk.mxu0 %vm1147_vm3, %v11391_v43 }
 0x359   : > { %9235 = vmatmul.mubr.msk.f32.gmra.mrb[16].mxu0 %vm653_vm2, %v3287_v44  ;;  %9461 = vmatmul.mubr.msk.f32.vlgmr.msra.gmra.mrb[128].mxu1 %vm327_vm1, %v11144_v46 }
 0x35a   : > { %9237 = vmatprep.mubr.msk.f32.mxu0 %vm653_vm2, %v3288_v3  ;;  %9463 = vmatprep.mubr.msk.f32.mxu1 %vm327_vm1, %v11150_v48 }
 0x35d   : > { %9238 = vmatmul.mubr.msk.f32.gmra.mrb[18].mxu0 %vm653_vm2, %v3289_v23  ;;  %9464 = vmatmul.mubr.msk.f32.gmra.mrb[130].mxu1 %vm327_vm1, %v11158_v50 }
 0x35e   : > { %9240 = vmatprep.mubr.msk.f32.mxu0 %vm653_vm2, %v3290_v26  ;;  %9466 = vmatprep.mubr.msk.f32.mxu1 %vm327_vm1, %v11164_v52 }
 0x361   : > { %9241 = vmatmul.mubr.msk.f32.gmra.mrb[20].mxu0 %vm653_vm2, %v3291_v29  ;;  %9467 = vmatmul.mubr.msk.f32.gmra.mrb[132].mxu1 %vm327_vm1, %v11170_v24 }
 0x362   : > { %9243 = vmatprep.mubr.msk.f32.mxu0 %vm653_vm2, %v3292_v30  ;;  %9469 = vmatprep.mubr.msk.f32.mxu1 %vm327_vm1, %v11176_v54  ;;  %v8108_v30 = vld [vmem:[%s12352_s1 + $0x10] sm:$0xf] }
 0x363   : > { %9658 = vmatprep.subr.msk.mxu1 %vm424_vm0, %v8108_v30 }
 0x364   : > { %9659 = vmatpush3.msk.msra.mxu1 %vm424_vm0, %v8108_v30 }
 0x365   : > { %9244 = vmatmul.mubr.msk.f32.gmra.mrb[22].mxu0 %vm653_vm2, %v3293_v32  ;;  %9470 = vmatmul.mubr.msk.f32.gmra.mrb[134].mxu1 %vm327_vm1, %v11182_v55 }
 0x366   : > { %9246 = vmatprep.mubr.msk.f32.mxu0 %vm653_vm2, %v3294_v5  ;;  %9472 = vmatprep.mubr.msk.f32.mxu1 %vm327_vm1, %v11188_v58 }
 0x369   : > { %9247 = vmatmul.mubr.msk.f32.gmra.mrb[24].mxu0 %vm653_vm2, %v3295_v57  ;;  %9473 = vmatmul.mubr.msk.f32.gmra.mrb[136].mxu1 %vm327_vm1, %v11194_v60 }
 0x36a   : > { %9249 = vmatprep.mubr.msk.f32.mxu0 %vm653_vm2, %v3296_v51  ;;  %9475 = vmatprep.mubr.msk.f32.mxu1 %vm327_vm1, %v11200_v63 }
 0x36d   : > { %9250 = vmatmul.mubr.msk.f32.gmra.mrb[26].mxu0 %vm653_vm2, %v3297_v62  ;;  %9476 = vmatmul.mubr.msk.f32.gmra.mrb[138].mxu1 %vm327_vm1, %v11206_v1 }
 0x36e   : > { %9252 = vmatprep.mubr.msk.f32.mxu0 %vm653_vm2, %v3298_v56  ;;  %9478 = vmatprep.mubr.msk.f32.mxu1 %vm327_vm1, %v11212_v6 }
 0x371   : > { %9253 = vmatmul.mubr.msk.f32.gmra.mrb[28].mxu0 %vm653_vm2, %v3299_v61  ;;  %9479 = vmatmul.mubr.msk.f32.gmra.mrb[140].mxu1 %vm327_vm1, %v11218_v39 }
 0x372   : > { %9255 = vmatprep.mubr.msk.f32.mxu0 %vm653_vm2, %v3300_v2  ;;  %9481 = vmatprep.mubr.msk.f32.mxu1 %vm327_vm1, %v11224_v41 }
 0x375   : > { %9256 = vmatmul.mubr.msk.f32.gmra.mrb[30].mxu0 %vm653_vm2, %v3301_v40  ;;  %9482 = vmatmul.mubr.msk.f32.gmra.mrb[142].mxu1 %vm327_vm1, %v11230_v42 }
 0x376   : > { %9484 = vmatprep.mubr.msk.f32.mxu1 %vm327_vm1, %v11236_v37 }
 0x379   : > { %9485 = vmatmul.mubr.msk.f32.gmra.mrb[144].mxu1 %vm327_vm1, %v11242_v45 }
 0x37a   : > { %9487 = vmatprep.mubr.msk.f32.mxu1 %vm327_vm1, %v11248_v4 }
 0x37d   : > { %9488 = vmatmul.mubr.msk.f32.gmra.mrb[146].mxu1 %vm327_vm1, %v11256_v25 }
 0x37e   : > { %9490 = vmatprep.mubr.msk.f32.mxu1 %vm327_vm1, %v11262_v28 }
 0x381   : > { %9491 = vmatmul.mubr.msk.f32.gmra.mrb[148].mxu1 %vm327_vm1, %v11268_v27 }
 0x382   : > { %9493 = vmatprep.mubr.msk.f32.mxu1 %vm327_vm1, %v11274_v31 }
 0x385   : > { %9494 = vmatmul.mubr.msk.f32.gmra.mrb[150].mxu1 %vm327_vm1, %v11280_v33 }
 0x386   : > { %9496 = vmatprep.mubr.msk.f32.mxu1 %vm327_vm1, %v11286_v35 }
 0x389   : > { %9497 = vmatmul.mubr.msk.f32.gmra.mrb[152].mxu1 %vm327_vm1, %v11292_v49 }
 0x38a   : > { %9499 = vmatprep.mubr.msk.f32.mxu1 %vm327_vm1, %v11298_v53 }
 0x38d   : > { %9500 = vmatmul.mubr.msk.f32.gmra.mrb[154].mxu1 %vm327_vm1, %v11304_v47 }
 0x38e   : > { %9502 = vmatprep.mubr.msk.f32.mxu1 %vm327_vm1, %v11310_v59 }
 0x391   : > { %9503 = vmatmul.mubr.msk.f32.gmra.mrb[156].mxu1 %vm327_vm1, %v11316_v0 }
 0x392   : > { %9505 = vmatprep.mubr.msk.f32.mxu1 %vm327_vm1, %v11322_v38 }
 0x395   : > { %9506 = vmatmul.mubr.msk.f32.gmra.mrb[158].mxu1 %vm327_vm1, %v11328_v36 }
 0x396   : > { %9660 = vmatprep.mubr.msk.f32.mxu1 %vm327_vm1, %v11138_v34 }
 0x399   : > { %9661 = vmatmul.mubr.msk.f32.vlgmr.msra.gmra.mrb[160].mxu1 %vm327_vm1, %v11144_v46 }
 0x39a   : > { %9663 = vmatprep.mubr.msk.f32.mxu1 %vm327_vm1, %v11150_v48 }
 0x39d   : > { %9664 = vmatmul.mubr.msk.f32.gmra.mrb[162].mxu1 %vm327_vm1, %v11158_v50 }
 0x39e   : > { %9666 = vmatprep.mubr.msk.f32.mxu1 %vm327_vm1, %v11164_v52 }
 0x3a1   : > { %9667 = vmatmul.mubr.msk.f32.gmra.mrb[164].mxu1 %vm327_vm1, %v11170_v24 }
 0x3a2   : > { %9669 = vmatprep.mubr.msk.f32.mxu1 %vm327_vm1, %v11176_v54 }
 0x3a5   : > { %9670 = vmatmul.mubr.msk.f32.gmra.mrb[166].mxu1 %vm327_vm1, %v11182_v55  ;;  %v11481_v55 = vld [vmem:[%s12353_s2 + $0x2] ss:$0 sm:$0xff] }
 0x3a6   : > { %9672 = vmatprep.mubr.msk.f32.mxu1 %vm327_vm1, %v11188_v58 }
 0x3a9   : > { %9673 = vmatmul.mubr.msk.f32.gmra.mrb[168].mxu1 %vm327_vm1, %v11194_v60 }
 0x3aa   : > { %9675 = vmatprep.mubr.msk.f32.mxu1 %vm327_vm1, %v11200_v63 }
 0x3ad   : > { %9676 = vmatmul.mubr.msk.f32.gmra.mrb[170].mxu1 %vm327_vm1, %v11206_v1 }
 0x3ae   : > { %9678 = vmatprep.mubr.msk.f32.mxu1 %vm327_vm1, %v11212_v6 }
 0x3b1   : > { %9679 = vmatmul.mubr.msk.f32.gmra.mrb[172].mxu1 %vm327_vm1, %v11218_v39 }
 0x3b2   : > { %9681 = vmatprep.mubr.msk.f32.mxu1 %vm327_vm1, %v11224_v41 }
 0x3b5   : > { %9682 = vmatmul.mubr.msk.f32.gmra.mrb[174].mxu1 %vm327_vm1, %v11230_v42 }
 0x3b6   : > { %9684 = vmatprep.mubr.msk.f32.mxu1 %vm327_vm1, %v11236_v37 }
 0x3b9   : > { %9685 = vmatmul.mubr.msk.f32.gmra.mrb[176].mxu1 %vm327_vm1, %v11242_v45  ;;  %v11517_v45 = vld [vmem:[%s12356_s5 + $0x10] sm:$0x3] }
 0x3ba   : > { %9687 = vmatprep.mubr.msk.f32.mxu1 %vm327_vm1, %v11248_v4 }
 0x3bd   : > { %9688 = vmatmul.mubr.msk.f32.gmra.mrb[178].mxu1 %vm327_vm1, %v11256_v25 }
 0x3be   : > { %9690 = vmatprep.mubr.msk.f32.mxu1 %vm327_vm1, %v11262_v28 }
 0x3c1   : > { %9691 = vmatmul.mubr.msk.f32.gmra.mrb[180].mxu1 %vm327_vm1, %v11268_v27 }
 0x3c2   : > { %9693 = vmatprep.mubr.msk.f32.mxu1 %vm327_vm1, %v11274_v31 }
 0x3c5   : > { %9694 = vmatmul.mubr.msk.f32.gmra.mrb[182].mxu1 %vm327_vm1, %v11280_v33 }
 0x3c6   : > { %9696 = vmatprep.mubr.msk.f32.mxu1 %vm327_vm1, %v11286_v35 }
 0x3c9   : > { %9697 = vmatmul.mubr.msk.f32.gmra.mrb[184].mxu1 %vm327_vm1, %v11292_v49 }
 0x3ca   : > { %9699 = vmatprep.mubr.msk.f32.mxu1 %vm327_vm1, %v11298_v53 }
 0x3cc   : > { %v11421_v44 = vpop.f32.mrb[16].mxu1 }
 0x3cd   : > { %12364 = vst [vmem:[#allocation8_spill] sm:$0xff] %v11421_v44  ;;  %v11423_v3 = vpop.f32.mrb[17].mxu1  ;;  %9700 = vmatmul.mubr.msk.f32.gmra.mrb[186].mxu1 %vm327_vm1, %v11304_v47 }
 0x3ce   : > { %12365 = vst [vmem:[#allocation9_spill] sm:$0xff] %v11423_v3  ;;  %9702 = vmatprep.mubr.msk.f32.mxu1 %vm327_vm1, %v11310_v59 }
 0x3d0   : > { %v11425_v23 = vpop.f32.mrb[18].mxu1 }
 0x3d1   : > { %12366 = vst [vmem:[#allocation10_spill] sm:$0xff] %v11425_v23  ;;  %v11427_v26 = vpop.f32.mrb[19].mxu1  ;;  %9703 = vmatmul.mubr.msk.f32.gmra.mrb[188].mxu1 %vm327_vm1, %v11316_v0 }
 0x3d2   : > { %12367 = vst [vmem:[#allocation11_spill] sm:$0xff] %v11427_v26  ;;  %9705 = vmatprep.mubr.msk.f32.mxu1 %vm327_vm1, %v11322_v38 }
 0x3d4   : > { %v11429_v29 = vpop.f32.mrb[20].mxu1 }
 0x3d5   : > { %12368 = vst [vmem:[#allocation12_spill] sm:$0xff] %v11429_v29  ;;  %v11434_v32 = vpop.f32.mrb[21].mxu1  ;;  %9706 = vmatmul.mubr.msk.f32.gmra.mrb[190].mxu1 %vm327_vm1, %v11328_v36 }
 0x3d6   : > { %12369 = vst [vmem:[#allocation13_spill] sm:$0xff] %v11434_v32 }
 0x3d8   : > { %v11440_v34 = vpop.f32.mrb[22].mxu1 }
 0x3d9   : > { %12370 = vst [vmem:[#allocation14_spill] sm:$0xff] %v11440_v34  ;;  %v11444_v5 = vpop.f32.mrb[23].mxu1 }
 0x3da   : > { %12371 = vst [vmem:[#allocation15_spill] sm:$0xff] %v11444_v5 }
 0x3dc   : > { %v11448_v57 = vpop.f32.mrb[24].mxu1 }
 0x3dd   : > { %12372 = vst [vmem:[#allocation16_spill] sm:$0xff] %v11448_v57  ;;  %v11452_v51 = vpop.f32.mrb[25].mxu1 }
 0x3de   : > { %12373 = vst [vmem:[#allocation17_spill] sm:$0xff] %v11452_v51 }
 0x3e0   : > { %v11456_v46 = vpop.f32.mrb[26].mxu1 }
 0x3e1   : > { %12374 = vst [vmem:[#allocation18_spill] sm:$0xff] %v11456_v46  ;;  %v11460_v48 = vpop.f32.mrb[27].mxu1 }
 0x3e2   : > { %12375 = vst [vmem:[#allocation19_spill] sm:$0xff] %v11460_v48 }
 0x3e4   : > { %v11464_v50 = vpop.f32.mrb[28].mxu1 }
 0x3e5   : > { %12376 = vst [vmem:[#allocation20_spill] sm:$0xff] %v11464_v50  ;;  %v11468_v52 = vpop.f32.mrb[29].mxu1 }
 0x3e6   : > { %12377 = vst [vmem:[#allocation21_spill] sm:$0xff] %v11468_v52 }
 0x3e8   : > { %v11472_v24 = vpop.f32.mrb[30].mxu1 }
 0x3e9   : > { %12378 = vst [vmem:[#allocation22_spill] sm:$0xff] %v11472_v24  ;;  %v11476_v54 = vpop.f32.mrb[31].mxu1 }
 0x3ea   : > { %12379 = vst [vmem:[#allocation23_spill] sm:$0xff] %v11476_v54 }
 0x3ec   : > { %v9262_v58 = vpop.f32.mrb[96].mxu1 }
 0x3ed   : > { %v3745_v60 = vadd.f32 %v9262_v58, %v11481_v55  ;;  %v3739_v62 = vpop.f32.mrb[97].mxu1 }
 0x3ee   : > { %v3740_v56 = vadd.f32 %v11481_v55, %v3739_v62 }
 0x3ef   : > { %v3899_v63 = vmax.f32 %v3745_v60, 0.0 }
 0x3f0   : > { %v3898_v61 = vmax.f32 %v3740_v56, 0.0  ;;  %v9265_v2 = vpop.f32.mrb[98].mxu1 }
 0x3f1   : > { %3931 = vst.msk [vmem:[#allocation2 + $0x10] sm:$0xff] %vm653_vm2, %v3899_v63  ;;  %v3755_v1 = vadd.f32 %v9265_v2, %v11481_v55  ;;  %v3749_v40 = vpop.f32.mrb[99].mxu1 }
 0x3f2   : > { %3930 = vst.msk [vmem:[#allocation2 + $0x8] sm:$0xff] %vm653_vm2, %v3898_v61  ;;  %v3750_v6 = vadd.f32 %v11481_v55, %v3749_v40 }
 0x3f3   : > { %v3901_v30 = vmax.f32 %v3755_v1, 0.0 }
 0x3f4   : > { %v3900_v58 = vmax.f32 %v3750_v6, 0.0  ;;  %v9268_v39 = vpop.f32.mrb[100].mxu1 }
 0x3f5   : > { %3933 = vst.msk [vmem:[#allocation2 + $0x30] sm:$0xff] %vm653_vm2, %v3901_v30  ;;  %v3765_v41 = vadd.f32 %v9268_v39, %v11481_v55  ;;  %v3759_v60 = vpop.f32.mrb[101].mxu1 }
 0x3f6   : > { %3932 = vst.msk [vmem:[#allocation2 + $0x28] sm:$0xff] %vm653_vm2, %v3900_v58  ;;  %v3760_v62 = vadd.f32 %v11481_v55, %v3759_v60 }
 0x3f7   : > { %v3903_v56 = vmax.f32 %v3765_v41, 0.0 }
 0x3f8   : > { %v3902_v63 = vmax.f32 %v3760_v62, 0.0  ;;  %v9271_v42 = vpop.f32.mrb[102].mxu1 }
 0x3f9   : > { %3935 = vst.msk [vmem:[#allocation2 + $0x50] sm:$0xff] %vm653_vm2, %v3903_v56  ;;  %v3775_v37 = vadd.f32 %v9271_v42, %v11481_v55  ;;  %v3769_v61 = vpop.f32.mrb[103].mxu1  ;;  %v3962_v2 = vld [vmem:[#allocation2 + $0x5] sm:$0xff]  ;;  %v3963_v1 = vld [vmem:[#allocation2 + $0xd] sm:$0xff] }
 0x3fa   : > { %3934 = vst.msk [vmem:[#allocation2 + $0x48] sm:$0xff] %vm653_vm2, %v3902_v63  ;;  %v3770_v40 = vadd.f32 %v11481_v55, %v3769_v61  ;;  %9310 = vmatprep.mubr.msk.f32.mxu0 %vm653_vm2, %v3962_v2 }
 0x3fb   : > { %v3905_v6 = vmax.f32 %v3775_v37, 0.0  ;;  %9311 = vmatmul.mubr.msk.f32.vlgmr.msra.gmra.mrb[0].mxu0 %vm653_vm2, %v3963_v1 }
 0x3fc   : > { %v3904_v4 = vmax.f32 %v3770_v40, 0.0  ;;  %9359 = vmatpush3.msk.msra.mxu0 %vm1147_vm3, %v11391_v43  ;;  %v9274_v30 = vpop.f32.mrb[104].mxu1 }
 0x3fd   : > { %3937 = vst.msk [vmem:[#allocation2 + $0x70] sm:$0xff] %vm653_vm2, %v3905_v6  ;;  %v3785_v58 = vadd.f32 %v9274_v30, %v11481_v55  ;;  %v3779_v39 = vpop.f32.mrb[105].mxu1  ;;  %v3964_v41 = vld [vmem:[#allocation2 + $0x25] sm:$0xff]  ;;  %v3965_v60 = vld [vmem:[#allocation2 + $0x2d] sm:$0xff]  ;;  %9408 = vmatprep.subr.msk.mxu0 %vm1147_vm3, %v11517_v45 }
 0x3fe   : > { %3936 = vst.msk [vmem:[#allocation2 + $0x68] sm:$0xff] %vm653_vm2, %v3904_v4  ;;  %v3780_v25 = vadd.f32 %v11481_v55, %v3779_v39  ;;  %9313 = vmatprep.mubr.msk.f32.mxu0 %vm653_vm2, %v3964_v41 }
 0x3ff   : > { %v3907_v43 = vmax.f32 %v3785_v58, 0.0  ;;  %9314 = vmatmul.mubr.msk.f32.gmra.mrb[2].mxu0 %vm653_vm2, %v3965_v60 }
 0x400   : > { %v3906_v28 = vmax.f32 %v3780_v25, 0.0  ;;  %v9277_v62 = vpop.f32.mrb[106].mxu1 }
 0x401   : > { %3939 = vst.msk [vmem:[#allocation2 + $0x90] sm:$0xff] %vm653_vm2, %v3907_v43  ;;  %v3795_v56 = vadd.f32 %v9277_v62, %v11481_v55  ;;  %v3789_v63 = vpop.f32.mrb[107].mxu1  ;;  %v3966_v42 = vld [vmem:[#allocation2 + $0x45] sm:$0xff]  ;;  %v3967_v37 = vld [vmem:[#allocation2 + $0x4d] sm:$0xff] }
 0x402   : > { %3938 = vst.msk [vmem:[#allocation2 + $0x88] sm:$0xff] %vm653_vm2, %v3906_v28  ;;  %v3790_v61 = vadd.f32 %v11481_v55, %v3789_v63  ;;  %9316 = vmatprep.mubr.msk.f32.mxu0 %vm653_vm2, %v3966_v42 }
 0x403   : > { %v3909_v2 = vmax.f32 %v3795_v56, 0.0  ;;  %9317 = vmatmul.mubr.msk.f32.gmra.mrb[4].mxu0 %vm653_vm2, %v3967_v37 }
 0x404   : > { %v3908_v27 = vmax.f32 %v3790_v61, 0.0  ;;  %v9280_v31 = vpop.f32.mrb[108].mxu1 }
 0x405   : > { %3941 = vst.msk [vmem:[#allocation2 + $0xb0] sm:$0xff] %vm653_vm2, %v3909_v2  ;;  %v3805_v1 = vadd.f32 %v9280_v31, %v11481_v55  ;;  %v3799_v40 = vpop.f32.mrb[109].mxu1  ;;  %v3968_v6 = vld [vmem:[#allocation2 + $0x65] sm:$0xff]  ;;  %v3969_v4 = vld [vmem:[#allocation2 + $0x6d] sm:$0xff] }
 0x406   : > { %3940 = vst.msk [vmem:[#allocation2 + $0xa8] sm:$0xff] %vm653_vm2, %v3908_v27  ;;  %v3800_v30 = vadd.f32 %v11481_v55, %v3799_v40  ;;  %9319 = vmatprep.mubr.msk.f32.mxu0 %vm653_vm2, %v3968_v6 }
 0x407   : > { %v3911_v58 = vmax.f32 %v3805_v1, 0.0  ;;  %9320 = vmatmul.mubr.msk.f32.gmra.mrb[6].mxu0 %vm653_vm2, %v3969_v4 }
 0x408   : > { %v3910_v33 = vmax.f32 %v3800_v30, 0.0  ;;  %v9283_v35 = vpop.f32.mrb[110].mxu1 }
 0x409   : > { %3943 = vst.msk [vmem:[#allocation2 + $0xd0] sm:$0xff] %vm653_vm2, %v3911_v58  ;;  %v3815_v39 = vadd.f32 %v9283_v35, %v11481_v55  ;;  %v3809_v41 = vpop.f32.mrb[111].mxu1  ;;  %v3970_v60 = vld [vmem:[#allocation2 + $0x85] sm:$0xff]  ;;  %v3971_v25 = vld [vmem:[#allocation2 + $0x8d] sm:$0xff] }
 0x40a   : > { %3942 = vst.msk [vmem:[#allocation2 + $0xc8] sm:$0xff] %vm653_vm2, %v3910_v33  ;;  %v3810_v43 = vadd.f32 %v11481_v55, %v3809_v41  ;;  %9322 = vmatprep.mubr.msk.f32.mxu0 %vm653_vm2, %v3970_v60 }
 0x40b   : > { %v3913_v28 = vmax.f32 %v3815_v39, 0.0  ;;  %9323 = vmatmul.mubr.msk.f32.gmra.mrb[8].mxu0 %vm653_vm2, %v3971_v25 }
 0x40c   : > { %v3912_v49 = vmax.f32 %v3810_v43, 0.0  ;;  %v9286_v53 = vpop.f32.mrb[112].mxu1 }
 0x40d   : > { %3945 = vst.msk [vmem:[#allocation2 + $0xf0] sm:$0xff] %vm653_vm2, %v3913_v28  ;;  %v3825_v62 = vadd.f32 %v9286_v53, %v11481_v55  ;;  %v3819_v56 = vpop.f32.mrb[113].mxu1  ;;  %v3972_v63 = vld [vmem:[#allocation2 + $0xa5] sm:$0xff]  ;;  %v3973_v42 = vld [vmem:[#allocation2 + $0xad] sm:$0xff] }
 0x40e   : > { %3944 = vst.msk [vmem:[#allocation2 + $0xe8] sm:$0xff] %vm653_vm2, %v3912_v49  ;;  %v3820_v37 = vadd.f32 %v11481_v55, %v3819_v56  ;;  %9325 = vmatprep.mubr.msk.f32.mxu0 %vm653_vm2, %v3972_v63 }
 0x40f   : > { %v3915_v61 = vmax.f32 %v3825_v62, 0.0  ;;  %9326 = vmatmul.mubr.msk.f32.gmra.mrb[10].mxu0 %vm653_vm2, %v3973_v42 }
 0x410   : > { %v3914_v47 = vmax.f32 %v3820_v37, 0.0  ;;  %v9289_v59 = vpop.f32.mrb[114].mxu1 }
 0x411   : > { %3947 = vst.msk [vmem:[#allocation2 + $0x110] sm:$0xff] %vm653_vm2, %v3915_v61  ;;  %v3835_v2 = vadd.f32 %v9289_v59, %v11481_v55  ;;  %v3829_v27 = vpop.f32.mrb[115].mxu1  ;;  %v3974_v31 = vld [vmem:[#allocation2 + $0xc5] sm:$0xff]  ;;  %v3975_v1 = vld [vmem:[#allocation2 + $0xcd] sm:$0xff] }
 0x412   : > { %3946 = vst.msk [vmem:[#allocation2 + $0x108] sm:$0xff] %vm653_vm2, %v3914_v47  ;;  %v3830_v40 = vadd.f32 %v11481_v55, %v3829_v27  ;;  %9328 = vmatprep.mubr.msk.f32.mxu0 %vm653_vm2, %v3974_v31 }
 0x413   : > { %v3917_v6 = vmax.f32 %v3835_v2, 0.0  ;;  %9329 = vmatmul.mubr.msk.f32.gmra.mrb[12].mxu0 %vm653_vm2, %v3975_v1 }
 0x414   : > { %v3916_v0 = vmax.f32 %v3830_v40, 0.0  ;;  %v9292_v38 = vpop.f32.mrb[116].mxu1 }
 0x415   : > { %3949 = vst.msk [vmem:[#allocation2 + $0x130] sm:$0xff] %vm653_vm2, %v3917_v6  ;;  %v3845_v4 = vadd.f32 %v9292_v38, %v11481_v55  ;;  %v3839_v30 = vpop.f32.mrb[117].mxu1  ;;  %v3976_v58 = vld [vmem:[#allocation2 + $0xe5] sm:$0xff]  ;;  %v3977_v33 = vld [vmem:[#allocation2 + $0xed] sm:$0xff] }
 0x416   : > { %3948 = vst.msk [vmem:[#allocation2 + $0x128] sm:$0xff] %vm653_vm2, %v3916_v0  ;;  %v3840_v35 = vadd.f32 %v11481_v55, %v3839_v30  ;;  %9331 = vmatprep.mubr.msk.f32.mxu0 %vm653_vm2, %v3976_v58 }
 0x417   : > { %v3919_v39 = vmax.f32 %v3845_v4, 0.0  ;;  %9332 = vmatmul.mubr.msk.f32.gmra.mrb[14].mxu0 %vm653_vm2, %v3977_v33 }
 0x418   : > { %v3918_v41 = vmax.f32 %v3840_v35, 0.0  ;;  %v9295_v36 = vpop.f32.mrb[118].mxu1 }
 0x419   : > { %3951 = vst.msk [vmem:[#allocation2 + $0x150] sm:$0xff] %vm653_vm2, %v3919_v39  ;;  %v3855_v60 = vadd.f32 %v9295_v36, %v11481_v55  ;;  %v3849_v25 = vpop.f32.mrb[119].mxu1  ;;  %v3978_v43 = vld [vmem:[#allocation2 + $0x105] sm:$0xff]  ;;  %v3979_v28 = vld [vmem:[#allocation2 + $0x10d] sm:$0xff] }
 0x41a   : > { %3950 = vst.msk [vmem:[#allocation2 + $0x148] sm:$0xff] %vm653_vm2, %v3918_v41  ;;  %v3850_v49 = vadd.f32 %v11481_v55, %v3849_v25  ;;  %9334 = vmatprep.mubr.msk.f32.mxu0 %vm653_vm2, %v3978_v43 }
 0x41b   : > { %v3921_v53 = vmax.f32 %v3855_v60, 0.0  ;;  %9335 = vmatmul.mubr.msk.f32.gmra.mrb[16].mxu0 %vm653_vm2, %v3979_v28 }
 0x41c   : > { %v3920_v62 = vmax.f32 %v3850_v49, 0.0  ;;  %v9298_v56 = vpop.f32.mrb[120].mxu1 }
 0x41d   : > { %3953 = vst.msk [vmem:[#allocation2 + $0x170] sm:$0xff] %vm653_vm2, %v3921_v53  ;;  %v3865_v63 = vadd.f32 %v9298_v56, %v11481_v55  ;;  %v3859_v42 = vpop.f32.mrb[121].mxu1  ;;  %v3980_v37 = vld [vmem:[#allocation2 + $0x125] sm:$0xff]  ;;  %v3981_v61 = vld [vmem:[#allocation2 + $0x12d] sm:$0xff] }
 0x41e   : > { %3952 = vst.msk [vmem:[#allocation2 + $0x168] sm:$0xff] %vm653_vm2, %v3920_v62  ;;  %v3860_v47 = vadd.f32 %v11481_v55, %v3859_v42  ;;  %9337 = vmatprep.mubr.msk.f32.mxu0 %vm653_vm2, %v3980_v37 }
 0x41f   : > { %v3923_v59 = vmax.f32 %v3865_v63, 0.0  ;;  %9338 = vmatmul.mubr.msk.f32.gmra.mrb[18].mxu0 %vm653_vm2, %v3981_v61  ;;  %v11625_v63 = vld [vmem:[%s12353_s2 + $0x3] ss:$0 sm:$0xff] }
 0x420   : > { %v3922_v2 = vmax.f32 %v3860_v47, 0.0  ;;  %v9301_v27 = vpop.f32.mrb[122].mxu1 }
 0x421   : > { %3955 = vst.msk [vmem:[#allocation2 + $0x190] sm:$0xff] %vm653_vm2, %v3923_v59  ;;  %v3875_v31 = vadd.f32 %v9301_v27, %v11481_v55  ;;  %v3869_v1 = vpop.f32.mrb[123].mxu1  ;;  %v3982_v40 = vld [vmem:[#allocation2 + $0x145] sm:$0xff]  ;;  %v3983_v6 = vld [vmem:[#allocation2 + $0x14d] sm:$0xff] }
 0x422   : > { %3954 = vst.msk [vmem:[#allocation2 + $0x188] sm:$0xff] %vm653_vm2, %v3922_v2  ;;  %v3870_v0 = vadd.f32 %v11481_v55, %v3869_v1  ;;  %9340 = vmatprep.mubr.msk.f32.mxu0 %vm653_vm2, %v3982_v40  ;;  %v11633_v1 = vld [vmem:[#allocation2 + $0xb] sm:$0xff]  ;;  %v11635_v40 = vld [vmem:[#allocation2 + $0x13] sm:$0xff] }
 0x423   : > { %v3925_v38 = vmax.f32 %v3875_v31, 0.0  ;;  %9341 = vmatmul.mubr.msk.f32.gmra.mrb[20].mxu0 %vm653_vm2, %v3983_v6  ;;  %v4353_v31 = vld [vmem:[#allocation2 + $0x10] sm:$0xff] }
 0x424   : > { %v3924_v4 = vmax.f32 %v3870_v0, 0.0  ;;  %v9304_v30 = vpop.f32.mrb[124].mxu1 }
 0x425   : > { %3957 = vst.msk [vmem:[#allocation2 + $0x1b0] sm:$0xff] %vm653_vm2, %v3925_v38  ;;  %v3885_v58 = vadd.f32 %v9304_v30, %v11481_v55  ;;  %v3879_v33 = vpop.f32.mrb[125].mxu1  ;;  %v3984_v35 = vld [vmem:[#allocation2 + $0x165] sm:$0xff]  ;;  %v3985_v39 = vld [vmem:[#allocation2 + $0x16d] sm:$0xff] }
 0x426   : > { %3956 = vst.msk [vmem:[#allocation2 + $0x1a8] sm:$0xff] %vm653_vm2, %v3924_v4  ;;  %v3880_v41 = vadd.f32 %v11481_v55, %v3879_v33  ;;  %9343 = vmatprep.mubr.msk.f32.mxu0 %vm653_vm2, %v3984_v35  ;;  %v4352_v30 = vld [vmem:[#allocation2 + $0x8] sm:$0xff] }
 0x427   : > { %v3927_v36 = vmax.f32 %v3885_v58, 0.0  ;;  %9344 = vmatmul.mubr.msk.f32.gmra.mrb[22].mxu0 %vm653_vm2, %v3985_v39 }
 0x428   : > { %v3926_v60 = vmax.f32 %v3880_v41, 0.0  ;;  %v9307_v25 = vpop.f32.mrb[126].mxu1  ;;  %v4355_v41 = vld [vmem:[#allocation2 + $0x30] sm:$0xff] }
 0x429   : > { %3959 = vst.msk [vmem:[#allocation2 + $0x1d0] sm:$0xff] %vm653_vm2, %v3927_v36  ;;  %v3895_v43 = vadd.f32 %v9307_v25, %v11481_v55  ;;  %v3889_v28 = vpop.f32.mrb[127].mxu1  ;;  %v3986_v49 = vld [vmem:[#allocation2 + $0x185] sm:$0xff]  ;;  %v3987_v53 = vld [vmem:[#allocation2 + $0x18d] sm:$0xff] }
 0x42a   : > { %3958 = vst.msk [vmem:[#allocation2 + $0x1c8] sm:$0xff] %vm653_vm2, %v3926_v60  ;;  %v3890_v62 = vadd.f32 %v11481_v55, %v3889_v28  ;;  %9346 = vmatprep.mubr.msk.f32.mxu0 %vm653_vm2, %v3986_v49  ;;  %v11643_v36 = vld [vmem:[#allocation2 + $0x2b] sm:$0xff]  ;;  %v11645_v60 = vld [vmem:[#allocation2 + $0x33] sm:$0xff] }
 0x42b   : > { %v3929_v56 = vmax.f32 %v3895_v43, 0.0  ;;  %9347 = vmatmul.mubr.msk.f32.gmra.mrb[24].mxu0 %vm653_vm2, %v3987_v53  ;;  %v4354_v53 = vld [vmem:[#allocation2 + $0x28] sm:$0xff] }
 0x42c   : > { %v3928_v42 = vmax.f32 %v3890_v62, 0.0  ;;  %v9462_v37 = vpop.f32.mrb[128].mxu1 }
 0x42d   : > { %3961 = vst.msk [vmem:[#allocation2 + $0x1f0] sm:$0xff] %vm653_vm2, %v3929_v56  ;;  %v3988_v61 = vld [vmem:[#allocation2 + $0x1a5] sm:$0xff]  ;;  %v3989_v47 = vld [vmem:[#allocation2 + $0x1ad] sm:$0xff]  ;;  %v5217_v59 = vadd.f32 %v9462_v37, %v11625_v63  ;;  %v5211_v2 = vpop.f32.mrb[129].mxu1 }
 0x42e   : > { %3960 = vst.msk [vmem:[#allocation2 + $0x1e8] sm:$0xff] %vm653_vm2, %v3928_v42  ;;  %9349 = vmatprep.mubr.msk.f32.mxu0 %vm653_vm2, %v3988_v61  ;;  %v5212_v55 = vadd.f32 %v11625_v63, %v5211_v2  ;;  %v4357_v61 = vld [vmem:[#allocation2 + $0x50] sm:$0xff] }
 0x42f   : > { %9350 = vmatmul.mubr.msk.f32.gmra.mrb[26].mxu0 %vm653_vm2, %v3989_v47  ;;  %v5371_v27 = vmax.f32 %v5217_v59, 0.0  ;;  %v11654_v47 = vld [vmem:[#allocation2 + $0x4b] sm:$0xff]  ;;  %v11656_v59 = vld [vmem:[#allocation2 + $0x53] sm:$0xff] }
 0x430   : > { %v5370_v6 = vmax.f32 %v5212_v55, 0.0  ;;  %v9465_v0 = vpop.f32.mrb[130].mxu1  ;;  %v4771_v23 = vld [vmem:[#allocation2 + $0x1d3] sm:$0xff] }
 0x431   : > { %v3990_v38 = vld [vmem:[#allocation2 + $0x1c5] sm:$0xff]  ;;  %v3991_v4 = vld [vmem:[#allocation2 + $0x1cd] sm:$0xff]  ;;  %5403 = vst.msk [vmem:[#allocation2 + $0x10] sm:$0xff] %vm653_vm2, %v5371_v27  ;;  %v5227_v58 = vadd.f32 %v9465_v0, %v11625_v63  ;;  %v5221_v33 = vpop.f32.mrb[131].mxu1 }
 0x432   : > { %9352 = vmatprep.mubr.msk.f32.mxu0 %vm653_vm2, %v3990_v38  ;;  %5402 = vst.msk [vmem:[#allocation2 + $0x8] sm:$0xff] %vm653_vm2, %v5370_v6  ;;  %v5222_v35 = vadd.f32 %v11625_v63, %v5221_v33  ;;  %v4356_v27 = vld [vmem:[#allocation2 + $0x48] sm:$0xff]  ;;  %v11663_v38 = vld [vmem:[%s12356_s5 + $0x12] sm:$0x3] }
 0x433   : > { %9353 = vmatmul.mubr.msk.f32.gmra.mrb[28].mxu0 %vm653_vm2, %v3991_v4  ;;  %v5373_v39 = vmax.f32 %v5227_v58, 0.0  ;;  %v4359_v58 = vld [vmem:[#allocation2 + $0x70] sm:$0xff]  ;;  %v4380_v44 = vld [vmem:[#allocation2 + $0x1c8] sm:$0xff] }
 0x434   : > { %v5372_v25 = vmax.f32 %v5222_v35, 0.0  ;;  %v9468_v43 = vpop.f32.mrb[132].mxu1  ;;  %v11671_v33 = vld [vmem:[#allocation2 + $0x6b] sm:$0xff]  ;;  %v11673_v35 = vld [vmem:[#allocation2 + $0x73] sm:$0xff] }
 0x435   : > { %v3992_v28 = vld [vmem:[#allocation2 + $0x1e5] sm:$0xff]  ;;  %v3993_v49 = vld [vmem:[#allocation2 + $0x1ed] sm:$0xff]  ;;  %5405 = vst.msk [vmem:[#allocation2 + $0x30] sm:$0xff] %vm653_vm2, %v5373_v39  ;;  %v5237_v62 = vadd.f32 %v9468_v43, %v11625_v63  ;;  %v5231_v56 = vpop.f32.mrb[133].mxu1 }
 0x436   : > { %9355 = vmatprep.mubr.msk.f32.mxu0 %vm653_vm2, %v3992_v28  ;;  %5404 = vst.msk [vmem:[#allocation2 + $0x28] sm:$0xff] %vm653_vm2, %v5372_v25  ;;  %v5232_v42 = vadd.f32 %v11625_v63, %v5231_v56  ;;  %v4358_v43 = vld [vmem:[#allocation2 + $0x68] sm:$0xff]  ;;  %v11685_v56 = vld [vmem:[#allocation2 + $0x93] sm:$0xff] }
 0x437   : > { %9356 = vmatmul.mubr.msk.f32.gmra.mrb[30].mxu0 %vm653_vm2, %v3993_v49  ;;  %v5375_v37 = vmax.f32 %v5237_v62, 0.0  ;;  %v11683_v62 = vld [vmem:[#allocation2 + $0x8b] sm:$0xff] }
 0x438   : > { %9360 = vmatprep.mubr.msk.f32.mxu0 %vm653_vm2, %v4352_v30  ;;  %v5374_v2 = vmax.f32 %v5232_v42, 0.0  ;;  %v9471_v55 = vpop.f32.mrb[134].mxu1  ;;  %v4382_v22 = vld [vmem:[#allocation2 + $0x1e8] sm:$0xff] }
 0x439   : > { %5407 = vst.msk [vmem:[#allocation2 + $0x50] sm:$0xff] %vm653_vm2, %v5375_v37  ;;  %v5247_v6 = vadd.f32 %v9471_v55, %v11625_v63  ;;  %v5241_v0 = vpop.f32.mrb[135].mxu1 }
 0x43a   : > { %5406 = vst.msk [vmem:[#allocation2 + $0x48] sm:$0xff] %vm653_vm2, %v5374_v2  ;;  %v5242_v4 = vadd.f32 %v11625_v63, %v5241_v0  ;;  %v4360_v2 = vld [vmem:[#allocation2 + $0x88] sm:$0xff]  ;;  %v4363_v0 = vld [vmem:[#allocation2 + $0xb0] sm:$0xff] }
 0x43b   : > { %9361 = vmatmul.mubr.msk.f32.vlgmr.msra.gmra.mrb[0].mxu0 %vm653_vm2, %v4353_v31  ;;  %v5377_v30 = vmax.f32 %v5247_v6, 0.0 }
 0x43c   : > { %9409 = vmatpush3.msk.msra.mxu0 %vm1147_vm3, %v11517_v45  ;;  %9363 = vmatprep.mubr.msk.f32.mxu0 %vm653_vm2, %v4354_v53  ;;  %v5376_v39 = vmax.f32 %v5242_v4, 0.0  ;;  %v9474_v25 = vpop.f32.mrb[136].mxu1  ;;  %v4361_v53 = vld [vmem:[#allocation2 + $0x90] sm:$0xff] }
 0x43d   : > { %9508 = vmatprep.subr.msk.mxu0 %vm1147_vm3, %v11663_v38  ;;  %5409 = vst.msk [vmem:[#allocation2 + $0x70] sm:$0xff] %vm653_vm2, %v5377_v30  ;;  %v5257_v31 = vadd.f32 %v9474_v25, %v11625_v63  ;;  %v5251_v28 = vpop.f32.mrb[137].mxu1  ;;  %v11693_v4 = vld [vmem:[#allocation2 + $0xab] sm:$0xff]  ;;  %v11695_v30 = vld [vmem:[#allocation2 + $0xb3] sm:$0xff] }
 0x43e   : > { %5408 = vst.msk [vmem:[#allocation2 + $0x68] sm:$0xff] %vm653_vm2, %v5376_v39  ;;  %v5252_v45 = vadd.f32 %v11625_v63, %v5251_v28 }
 0x43f   : > { %9364 = vmatmul.mubr.msk.f32.gmra.mrb[2].mxu0 %vm653_vm2, %v4355_v41  ;;  %v5379_v49 = vmax.f32 %v5257_v31, 0.0  ;;  %v4362_v31 = vld [vmem:[#allocation2 + $0xa8] sm:$0xff] }
 0x440   : > { %9366 = vmatprep.mubr.msk.f32.mxu0 %vm653_vm2, %v4356_v27  ;;  %v5378_v42 = vmax.f32 %v5252_v45, 0.0  ;;  %v9477_v37 = vpop.f32.mrb[138].mxu1 }
 0x441   : > { %5411 = vst.msk [vmem:[#allocation2 + $0x90] sm:$0xff] %vm653_vm2, %v5379_v49  ;;  %v5267_v55 = vadd.f32 %v9477_v37, %v11625_v63  ;;  %v5261_v6 = vpop.f32.mrb[139].mxu1  ;;  %v4365_v49 = vld [vmem:[#allocation2 + $0xd0] sm:$0xff] }
 0x442   : > { %5410 = vst.msk [vmem:[#allocation2 + $0x88] sm:$0xff] %vm653_vm2, %v5378_v42  ;;  %v5262_v41 = vadd.f32 %v11625_v63, %v5261_v6  ;;  %v11703_v42 = vld [vmem:[#allocation2 + $0xcb] sm:$0xff]  ;;  %v11705_v37 = vld [vmem:[#allocation2 + $0xd3] sm:$0xff] }
 0x443   : > { %9367 = vmatmul.mubr.msk.f32.gmra.mrb[4].mxu0 %vm653_vm2, %v4357_v61  ;;  %v5381_v27 = vmax.f32 %v5267_v55, 0.0 }
 0x444   : > { %9369 = vmatprep.mubr.msk.f32.mxu0 %vm653_vm2, %v4358_v43  ;;  %v5380_v39 = vmax.f32 %v5262_v41, 0.0  ;;  %v9480_v25 = vpop.f32.mrb[140].mxu1  ;;  %v4364_v41 = vld [vmem:[#allocation2 + $0xc8] sm:$0xff] }
 0x445   : > { %5413 = vst.msk [vmem:[#allocation2 + $0xb0] sm:$0xff] %vm653_vm2, %v5381_v27  ;;  %v5277_v28 = vadd.f32 %v9480_v25, %v11625_v63  ;;  %v5271_v45 = vpop.f32.mrb[141].mxu1  ;;  %v4367_v25 = vld [vmem:[#allocation2 + $0xf0] sm:$0xff] }
 0x446   : > { %5412 = vst.msk [vmem:[#allocation2 + $0xa8] sm:$0xff] %vm653_vm2, %v5380_v39  ;;  %v5272_v61 = vadd.f32 %v11625_v63, %v5271_v45  ;;  %v11715_v45 = vld [vmem:[#allocation2 + $0xf3] sm:$0xff] }
 0x447   : > { %9370 = vmatmul.mubr.msk.f32.gmra.mrb[6].mxu0 %vm653_vm2, %v4359_v58  ;;  %v5383_v43 = vmax.f32 %v5277_v28, 0.0  ;;  %v11713_v28 = vld [vmem:[#allocation2 + $0xeb] sm:$0xff] }
 0x448   : > { %9372 = vmatprep.mubr.msk.f32.mxu0 %vm653_vm2, %v4360_v2  ;;  %v5382_v55 = vmax.f32 %v5272_v61, 0.0  ;;  %v9483_v6 = vpop.f32.mrb[142].mxu1 }
 0x449   : > { %5415 = vst.msk [vmem:[#allocation2 + $0xd0] sm:$0xff] %vm653_vm2, %v5383_v43  ;;  %v5287_v27 = vadd.f32 %v9483_v6, %v11625_v63  ;;  %v5281_v39 = vpop.f32.mrb[143].mxu1  ;;  %v4366_v43 = vld [vmem:[#allocation2 + $0xe8] sm:$0xff] }
 0x44a   : > { %5414 = vst.msk [vmem:[#allocation2 + $0xc8] sm:$0xff] %vm653_vm2, %v5382_v55  ;;  %v5282_v58 = vadd.f32 %v11625_v63, %v5281_v39  ;;  %v11723_v39 = vld [vmem:[#allocation2 + $0x10b] sm:$0xff] }
 0x44b   : > { %9373 = vmatmul.mubr.msk.f32.gmra.mrb[8].mxu0 %vm653_vm2, %v4361_v53  ;;  %v5385_v2 = vmax.f32 %v5287_v27, 0.0  ;;  %v4369_v27 = vld [vmem:[#allocation2 + $0x110] sm:$0xff] }
 0x44c   : > { %9375 = vmatprep.mubr.msk.f32.mxu0 %vm653_vm2, %v4362_v31  ;;  %v5384_v61 = vmax.f32 %v5282_v58, 0.0  ;;  %v9486_v54 = vpop.f32.mrb[144].mxu1  ;;  %v11725_v58 = vld [vmem:[#allocation2 + $0x113] sm:$0xff] }
 0x44d   : > { %5417 = vst.msk [vmem:[#allocation2 + $0xf0] sm:$0xff] %vm653_vm2, %v5385_v2  ;;  %v5297_v6 = vadd.f32 %v9486_v54, %v11625_v63  ;;  %v5291_v55 = vpop.f32.mrb[145].mxu1  ;;  %v4368_v2 = vld [vmem:[#allocation2 + $0x108] sm:$0xff] }
 0x44e   : > { %5416 = vst.msk [vmem:[#allocation2 + $0xe8] sm:$0xff] %vm653_vm2, %v5384_v61  ;;  %v5292_v53 = vadd.f32 %v11625_v63, %v5291_v55  ;;  %v11733_v55 = vld [vmem:[#allocation2 + $0x12b] sm:$0xff] }
 0x44f   : > { %9376 = vmatmul.mubr.msk.f32.gmra.mrb[10].mxu0 %vm653_vm2, %v4363_v0  ;;  %v5387_v31 = vmax.f32 %v5297_v6, 0.0  ;;  %v4371_v6 = vld [vmem:[#allocation2 + $0x130] sm:$0xff] }
 0x450   : > { %9378 = vmatprep.mubr.msk.f32.mxu0 %vm653_vm2, %v4364_v41  ;;  %v5386_v24 = vmax.f32 %v5292_v53, 0.0  ;;  %v9489_v52 = vpop.f32.mrb[146].mxu1  ;;  %v11735_v53 = vld [vmem:[#allocation2 + $0x133] sm:$0xff] }
 0x451   : > { %5419 = vst.msk [vmem:[#allocation2 + $0x110] sm:$0xff] %vm653_vm2, %v5387_v31  ;;  %v5307_v54 = vadd.f32 %v9489_v52, %v11625_v63  ;;  %v5301_v61 = vpop.f32.mrb[147].mxu1  ;;  %v4370_v31 = vld [vmem:[#allocation2 + $0x128] sm:$0xff] }
 0x452   : > { %5418 = vst.msk [vmem:[#allocation2 + $0x108] sm:$0xff] %vm653_vm2, %v5386_v24  ;;  %v5302_v0 = vadd.f32 %v11625_v63, %v5301_v61  ;;  %v11743_v61 = vld [vmem:[#allocation2 + $0x14b] sm:$0xff] }
 0x453   : > { %9379 = vmatmul.mubr.msk.f32.gmra.mrb[12].mxu0 %vm653_vm2, %v4365_v49  ;;  %v5389_v41 = vmax.f32 %v5307_v54, 0.0  ;;  %v4373_v54 = vld [vmem:[#allocation2 + $0x150] sm:$0xff] }
 0x454   : > { %9381 = vmatprep.mubr.msk.f32.mxu0 %vm653_vm2, %v4366_v43  ;;  %v5388_v50 = vmax.f32 %v5302_v0, 0.0  ;;  %v9492_v48 = vpop.f32.mrb[148].mxu1  ;;  %v11745_v0 = vld [vmem:[#allocation2 + $0x153] sm:$0xff] }
 0x455   : > { %5421 = vst.msk [vmem:[#allocation2 + $0x130] sm:$0xff] %vm653_vm2, %v5389_v41  ;;  %v5317_v52 = vadd.f32 %v9492_v48, %v11625_v63  ;;  %v5311_v24 = vpop.f32.mrb[149].mxu1  ;;  %v4372_v41 = vld [vmem:[#allocation2 + $0x148] sm:$0xff] }
 0x456   : > { %5420 = vst.msk [vmem:[#allocation2 + $0x128] sm:$0xff] %vm653_vm2, %v5388_v50  ;;  %v5312_v49 = vadd.f32 %v11625_v63, %v5311_v24  ;;  %v11753_v24 = vld [vmem:[#allocation2 + $0x16b] sm:$0xff] }
 0x457   : > { %9382 = vmatmul.mubr.msk.f32.gmra.mrb[14].mxu0 %vm653_vm2, %v4367_v25  ;;  %v5391_v43 = vmax.f32 %v5317_v52, 0.0  ;;  %v4375_v52 = vld [vmem:[#allocation2 + $0x170] sm:$0xff] }
 0x458   : > { %9384 = vmatprep.mubr.msk.f32.mxu0 %vm653_vm2, %v4368_v2  ;;  %v5390_v46 = vmax.f32 %v5312_v49, 0.0  ;;  %v9495_v51 = vpop.f32.mrb[150].mxu1  ;;  %v11755_v49 = vld [vmem:[#allocation2 + $0x173] sm:$0xff] }
 0x459   : > { %5423 = vst.msk [vmem:[#allocation2 + $0x150] sm:$0xff] %vm653_vm2, %v5391_v43  ;;  %v5327_v48 = vadd.f32 %v9495_v51, %v11625_v63  ;;  %v5321_v50 = vpop.f32.mrb[151].mxu1  ;;  %v4374_v43 = vld [vmem:[#allocation2 + $0x168] sm:$0xff] }
 0x45a   : > { %5422 = vst.msk [vmem:[#allocation2 + $0x148] sm:$0xff] %vm653_vm2, %v5390_v46  ;;  %v5322_v25 = vadd.f32 %v11625_v63, %v5321_v50  ;;  %v11763_v50 = vld [vmem:[#allocation2 + $0x18b] sm:$0xff] }
 0x45b   : > { %9385 = vmatmul.mubr.msk.f32.gmra.mrb[16].mxu0 %vm653_vm2, %v4369_v27  ;;  %v5393_v2 = vmax.f32 %v5327_v48, 0.0  ;;  %v4377_v48 = vld [vmem:[#allocation2 + $0x190] sm:$0xff] }
 0x45c   : > { %9387 = vmatprep.mubr.msk.f32.mxu0 %vm653_vm2, %v4370_v31  ;;  %v5392_v57 = vmax.f32 %v5322_v25, 0.0  ;;  %v9498_v5 = vpop.f32.mrb[152].mxu1  ;;  %v11765_v25 = vld [vmem:[#allocation2 + $0x193] sm:$0xff] }
 0x45d   : > { %5425 = vst.msk [vmem:[#allocation2 + $0x170] sm:$0xff] %vm653_vm2, %v5393_v2  ;;  %v5337_v51 = vadd.f32 %v9498_v5, %v11625_v63  ;;  %v5331_v46 = vpop.f32.mrb[153].mxu1  ;;  %v4376_v2 = vld [vmem:[#allocation2 + $0x188] sm:$0xff] }
 0x45e   : > { %5424 = vst.msk [vmem:[#allocation2 + $0x168] sm:$0xff] %vm653_vm2, %v5392_v57  ;;  %v5332_v27 = vadd.f32 %v11625_v63, %v5331_v46  ;;  %v11773_v46 = vld [vmem:[#allocation2 + $0x1ab] sm:$0xff] }
 0x45f   : > { %9388 = vmatmul.mubr.msk.f32.gmra.mrb[18].mxu0 %vm653_vm2, %v4371_v6  ;;  %v5395_v31 = vmax.f32 %v5337_v51, 0.0  ;;  %v4379_v51 = vld [vmem:[#allocation2 + $0x1b0] sm:$0xff] }
 0x460   : > { %9390 = vmatprep.mubr.msk.f32.mxu0 %vm653_vm2, %v4372_v41  ;;  %v5394_v34 = vmax.f32 %v5332_v27, 0.0  ;;  %v9501_v32 = vpop.f32.mrb[154].mxu1  ;;  %v11775_v27 = vld [vmem:[#allocation2 + $0x1b3] sm:$0xff] }
 0x461   : > { %5427 = vst.msk [vmem:[#allocation2 + $0x190] sm:$0xff] %vm653_vm2, %v5395_v31  ;;  %v5347_v5 = vadd.f32 %v9501_v32, %v11625_v63  ;;  %v5341_v57 = vpop.f32.mrb[155].mxu1  ;;  %v4378_v31 = vld [vmem:[#allocation2 + $0x1a8] sm:$0xff] }
 0x462   : > { %5426 = vst.msk [vmem:[#allocation2 + $0x188] sm:$0xff] %vm653_vm2, %v5394_v34  ;;  %v5342_v6 = vadd.f32 %v11625_v63, %v5341_v57  ;;  %v4770_v57 = vld [vmem:[#allocation2 + $0x1cb] sm:$0xff] }
 0x463   : > { %9391 = vmatmul.mubr.msk.f32.gmra.mrb[20].mxu0 %vm653_vm2, %v4373_v54  ;;  %v5397_v41 = vmax.f32 %v5347_v5, 0.0  ;;  %v4381_v5 = vld [vmem:[#allocation2 + $0x1d0] sm:$0xff] }
 0x464   : > { %9393 = vmatprep.mubr.msk.f32.mxu0 %vm653_vm2, %v4374_v43  ;;  %v5396_v29 = vmax.f32 %v5342_v6, 0.0  ;;  %v9504_v26 = vpop.f32.mrb[156].mxu1 }
 0x465   : > { %5429 = vst.msk [vmem:[#allocation2 + $0x1b0] sm:$0xff] %vm653_vm2, %v5397_v41  ;;  %v5357_v32 = vadd.f32 %v9504_v26, %v11625_v63  ;;  %v5351_v34 = vpop.f32.mrb[157].mxu1  ;;  %v5846_v21 = vld [vmem:[#allocation2 + $0x168] sm:$0xff] }
 0x466   : > { %5428 = vst.msk [vmem:[#allocation2 + $0x1a8] sm:$0xff] %vm653_vm2, %v5396_v29  ;;  %v5352_v54 = vadd.f32 %v11625_v63, %v5351_v34  ;;  %v4773_v34 = vld [vmem:[#allocation2 + $0x1f3] sm:$0xff] }
 0x467   : > { %9394 = vmatmul.mubr.msk.f32.gmra.mrb[22].mxu0 %vm653_vm2, %v4375_v52  ;;  %v5399_v43 = vmax.f32 %v5357_v32, 0.0  ;;  %v4772_v32 = vld [vmem:[#allocation2 + $0x1eb] sm:$0xff] }
 0x468   : > { %9396 = vmatprep.mubr.msk.f32.mxu0 %vm653_vm2, %v4376_v2  ;;  %v5398_v6 = vmax.f32 %v5352_v54, 0.0  ;;  %v9507_v3 = vpop.f32.mrb[158].mxu1  ;;  %v4383_v2 = vld [vmem:[#allocation2 + $0x1f0] sm:$0xff] }
 0x469   : > { %5431 = vst.msk [vmem:[#allocation2 + $0x1d0] sm:$0xff] %vm653_vm2, %v5399_v43  ;;  %v5367_v26 = vadd.f32 %v9507_v3, %v11625_v63  ;;  %v5361_v41 = vpop.f32.mrb[159].mxu1  ;;  %v8040_v3 = vld [vmem:[%s12356_s5 + $0x14] sm:$0x3]  ;;  %v5848_v20 = vld [vmem:[#allocation2 + $0x188] sm:$0xff] }
 0x46a   : > { %5430 = vst.msk [vmem:[#allocation2 + $0x1c8] sm:$0xff] %vm653_vm2, %v5398_v6  ;;  %v5362_v29 = vadd.f32 %v11625_v63, %v5361_v41  ;;  %v11863_v63 = vld [vmem:[#allocation2 + $0xc] sm:$0xff] }
 0x46b   : > { %9397 = vmatmul.mubr.msk.f32.gmra.mrb[24].mxu0 %vm653_vm2, %v4377_v48  ;;  %v5401_v52 = vmax.f32 %v5367_v26, 0.0  ;;  %v11932_v48 = vld [vmem:[#allocation2 + $0x16c] sm:$0xff] }
 0x46c   : > { %9399 = vmatprep.mubr.msk.f32.mxu0 %vm653_vm2, %v4378_v31  ;;  %v5400_v54 = vmax.f32 %v5362_v29, 0.0  ;;  %v11944_v26 = vld [vmem:[#allocation2 + $0x18c] sm:$0xff] }
 0x46d   : > { %5433 = vst.msk [vmem:[#allocation2 + $0x1f0] sm:$0xff] %vm653_vm2, %v5401_v52  ;;  %v5460_v43 = vld [vmem:[#allocation2 + $0x1a4] sm:$0xff]  ;;  %v11951_v52 = vld [vmem:[#allocation2 + $0x30] sm:$0xff] }
 0x46e   : > { %5432 = vst.msk [vmem:[#allocation2 + $0x1e8] sm:$0xff] %vm653_vm2, %v5400_v54  ;;  %v5850_v19 = vld [vmem:[#allocation2 + $0x1a8] sm:$0xff] }
 0x46f   : > { %9400 = vmatmul.mubr.msk.f32.gmra.mrb[26].mxu0 %vm653_vm2, %v4379_v51  ;;  %v11938_v51 = vld [vmem:[#allocation2 + $0x10] sm:$0xff] }
 0x470   : > { %9402 = vmatprep.mubr.msk.f32.mxu0 %vm653_vm2, %v4380_v44  ;;  %v5436_v44 = vld [vmem:[#allocation2 + $0x24] sm:$0xff] }
 0x471   : > { %v5462_v54 = vld [vmem:[#allocation2 + $0x1c4] sm:$0xff] }
 0x472   : > { %v5852_v18 = vld [vmem:[#allocation2 + $0x1c8] sm:$0xff] }
 0x473   : > { %9403 = vmatmul.mubr.msk.f32.gmra.mrb[28].mxu0 %vm653_vm2, %v4381_v5  ;;  %v5824_v5 = vld [vmem:[#allocation2 + $0x8] sm:$0xff] }
 0x474   : > { %9405 = vmatprep.mubr.msk.f32.mxu0 %vm653_vm2, %v4382_v22  ;;  %v5434_v22 = vld [vmem:[#allocation2 + $0x4] sm:$0xff] }
 0x477   : > { %9406 = vmatmul.mubr.msk.f32.gmra.mrb[30].mxu0 %vm653_vm2, %v4383_v2  ;;  %v11953_v2 = vld [vmem:[#allocation2 + $0x34] sm:$0xff] }
 0x478   : > { %9410 = vmatprep.mubr.msk.f32.mxu0 %vm653_vm2, %v11633_v1  ;;  %v11868_v1 = vld [vmem:[%s12356_s5 + $0x16] sm:$0x3] }
 0x47b   : > { %9411 = vmatmul.mubr.msk.f32.vlgmr.msra.gmra.mrb[0].mxu0 %vm653_vm2, %v11635_v40  ;;  %v11876_v40 = vld [vmem:[#allocation2 + $0x2c] sm:$0xff] }
 0x47c   : > { %9509 = vmatpush3.msk.msra.mxu0 %vm1147_vm3, %v11663_v38  ;;  %9413 = vmatprep.mubr.msk.f32.mxu0 %vm653_vm2, %v11643_v36  ;;  %v5440_v36 = vld [vmem:[#allocation2 + $0x64] sm:$0xff] }
 0x47d   : > { %9558 = vmatprep.subr.msk.mxu0 %vm1147_vm3, %v8040_v3  ;;  %v5444_v38 = vld [vmem:[#allocation2 + $0xa4] sm:$0xff] }
 0x47f   : > { %9414 = vmatmul.mubr.msk.f32.gmra.mrb[2].mxu0 %vm653_vm2, %v11645_v60  ;;  %v11881_v60 = vld [vmem:[#allocation2 + $0x4c] sm:$0xff] }
 0x480   : > { %9416 = vmatprep.mubr.msk.f32.mxu0 %vm653_vm2, %v11654_v47  ;;  %v5442_v47 = vld [vmem:[#allocation2 + $0x84] sm:$0xff] }
 0x483   : > { %9417 = vmatmul.mubr.msk.f32.gmra.mrb[4].mxu0 %vm653_vm2, %v11656_v59  ;;  %v11886_v59 = vld [vmem:[#allocation2 + $0x6c] sm:$0xff] }
 0x484   : > { %9419 = vmatprep.mubr.msk.f32.mxu0 %vm653_vm2, %v11671_v33  ;;  %v11891_v33 = vld [vmem:[#allocation2 + $0x8c] sm:$0xff] }
 0x487   : > { %9420 = vmatmul.mubr.msk.f32.gmra.mrb[6].mxu0 %vm653_vm2, %v11673_v35  ;;  %v5446_v35 = vld [vmem:[#allocation2 + $0xc4] sm:$0xff] }
 0x488   : > { %9422 = vmatprep.mubr.msk.f32.mxu0 %vm653_vm2, %v11683_v62  ;;  %v11896_v62 = vld [vmem:[#allocation2 + $0xac] sm:$0xff] }
 0x48b   : > { %9423 = vmatmul.mubr.msk.f32.gmra.mrb[8].mxu0 %vm653_vm2, %v11685_v56  ;;  %v5448_v56 = vld [vmem:[#allocation2 + $0xe4] sm:$0xff] }
 0x48c   : > { %9425 = vmatprep.mubr.msk.f32.mxu0 %vm653_vm2, %v11693_v4  ;;  %v11901_v4 = vld [vmem:[#allocation2 + $0xcc] sm:$0xff] }
 0x48f   : > { %9426 = vmatmul.mubr.msk.f32.gmra.mrb[10].mxu0 %vm653_vm2, %v11695_v30  ;;  %v5450_v30 = vld [vmem:[#allocation2 + $0x104] sm:$0xff] }
 0x490   : > { %9428 = vmatprep.mubr.msk.f32.mxu0 %vm653_vm2, %v11703_v42  ;;  %v11906_v42 = vld [vmem:[#allocation2 + $0xec] sm:$0xff] }
 0x493   : > { %9429 = vmatmul.mubr.msk.f32.gmra.mrb[12].mxu0 %vm653_vm2, %v11705_v37  ;;  %v5452_v37 = vld [vmem:[#allocation2 + $0x124] sm:$0xff] }
 0x494   : > { %9431 = vmatprep.mubr.msk.f32.mxu0 %vm653_vm2, %v11713_v28  ;;  %v11911_v28 = vld [vmem:[#allocation2 + $0x10c] sm:$0xff] }
 0x497   : > { %9432 = vmatmul.mubr.msk.f32.gmra.mrb[14].mxu0 %vm653_vm2, %v11715_v45  ;;  %v5454_v45 = vld [vmem:[#allocation2 + $0x144] sm:$0xff] }
 0x498   : > { %9434 = vmatprep.mubr.msk.f32.mxu0 %vm653_vm2, %v11723_v39  ;;  %v11916_v39 = vld [vmem:[#allocation2 + $0x12c] sm:$0xff] }
 0x49b   : > { %9435 = vmatmul.mubr.msk.f32.gmra.mrb[16].mxu0 %vm653_vm2, %v11725_v58  ;;  %v5456_v58 = vld [vmem:[#allocation2 + $0x164] sm:$0xff] }
 0x49c   : > { %9437 = vmatprep.mubr.msk.f32.mxu0 %vm653_vm2, %v11733_v55  ;;  %v11921_v55 = vld [vmem:[#allocation2 + $0x14c] sm:$0xff] }
 0x49f   : > { %9438 = vmatmul.mubr.msk.f32.gmra.mrb[18].mxu0 %vm653_vm2, %v11735_v53  ;;  %v9662_v53 = vpop.f32.mrb[160].mxu1 }
 0x4a0   : > { %9440 = vmatprep.mubr.msk.f32.mxu0 %vm653_vm2, %v11743_v61  ;;  %v11929_v61 = vld [vmem:[%s12353_s2 + $0x4] ss:$0 sm:$0xff] }
 0x4a3   : > { %9441 = vmatmul.mubr.msk.f32.gmra.mrb[20].mxu0 %vm653_vm2, %v11745_v0  ;;  %v5458_v0 = vld [vmem:[#allocation2 + $0x184] sm:$0xff] }
 0x4a4   : > { %9443 = vmatprep.mubr.msk.f32.mxu0 %vm653_vm2, %v11753_v24  ;;  %v6689_v24 = vadd.f32 %v9662_v53, %v11929_v61 }
 0x4a7   : > { %9444 = vmatmul.mubr.msk.f32.gmra.mrb[22].mxu0 %vm653_vm2, %v11755_v49  ;;  %v6683_v49 = vpop.f32.mrb[161].mxu1 }
 0x4a8   : > { %9446 = vmatprep.mubr.msk.f32.mxu0 %vm653_vm2, %v11763_v50  ;;  %v6684_v50 = vadd.f32 %v11929_v61, %v6683_v49  ;;  %v9665_v31 = vpop.f32.mrb[162].mxu1 }
 0x4a9   : > { %v6693_v6 = vpop.f32.mrb[163].mxu1 }
 0x4aa   : > { %v6694_v41 = vadd.f32 %v11929_v61, %v6693_v6 }
 0x4ab   : > { %9447 = vmatmul.mubr.msk.f32.gmra.mrb[24].mxu0 %vm653_vm2, %v11765_v25  ;;  %v6843_v25 = vmax.f32 %v6689_v24, 0.0 }
 0x4ac   : > { %9449 = vmatprep.mubr.msk.f32.mxu0 %vm653_vm2, %v11773_v46  ;;  %v11940_v46 = vld [vmem:[#allocation2 + $0x14] sm:$0xff] }
 0x4ad   : > { %6875 = vst.msk [vmem:[#allocation2 + $0x10] sm:$0xff] %vm653_vm2, %v6843_v25  ;;  %v11979_v25 = vld [vmem:[#allocation2 + $0x74] sm:$0xff] }
 0x4af   : > { %9450 = vmatmul.mubr.msk.f32.gmra.mrb[26].mxu0 %vm653_vm2, %v11775_v27  ;;  %v6842_v27 = vmax.f32 %v6684_v50, 0.0  ;;  %v11977_v50 = vld [vmem:[#allocation2 + $0x70] sm:$0xff] }
 0x4b0   : > { %9452 = vmatprep.mubr.msk.f32.mxu0 %vm653_vm2, %v4770_v57  ;;  %v6699_v57 = vadd.f32 %v9665_v31, %v11929_v61 }
 0x4b1   : > { %6874 = vst.msk [vmem:[#allocation2 + $0x8] sm:$0xff] %vm653_vm2, %v6842_v27 }
 0x4b2   : > { %v6845_v29 = vmax.f32 %v6699_v57, 0.0 }
 0x4b3   : > { %9453 = vmatmul.mubr.msk.f32.gmra.mrb[28].mxu0 %vm653_vm2, %v4771_v23  ;;  %v5438_v23 = vld [vmem:[#allocation2 + $0x44] sm:$0xff] }
 0x4b4   : > { %9455 = vmatprep.mubr.msk.f32.mxu0 %vm653_vm2, %v4772_v32  ;;  %v6844_v32 = vmax.f32 %v6694_v41, 0.0  ;;  %6877 = vst.msk [vmem:[#allocation2 + $0x30] sm:$0xff] %vm653_vm2, %v6845_v29  ;;  %v11983_v41 = vld [vmem:[#allocation2 + $0x1ec] sm:$0xff] }
 0x4b7   : > { %9456 = vmatmul.mubr.msk.f32.gmra.mrb[30].mxu0 %vm653_vm2, %v4773_v34  ;;  %v9668_v34 = vpop.f32.mrb[164].mxu1 }
 0x4b8   : > { %9510 = vmatprep.mubr.msk.f32.mxu0 %vm653_vm2, %v5434_v22  ;;  %v6709_v22 = vadd.f32 %v9668_v34, %v11929_v61  ;;  %v11990_v34 = vld [vmem:[#allocation2 + $0x90] sm:$0xff] }
 0x4bb   : > { %9511 = vmatmul.mubr.msk.f32.vlgmr.msra.gmra.mrb[0].mxu0 %vm653_vm2, %v11863_v63 }
 0x4bc   : > { %9559 = vmatpush3.msk.msra.mxu0 %vm1147_vm3, %v8040_v3  ;;  %9513 = vmatprep.mubr.msk.f32.mxu0 %vm653_vm2, %v5436_v44  ;;  %v5826_v3 = vld [vmem:[#allocation2 + $0x28] sm:$0xff]  ;;  %v6703_v44 = vpop.f32.mrb[165].mxu1 }
 0x4bd   : > { %9608 = vmatprep.subr.msk.mxu0 %vm1147_vm3, %v11868_v1  ;;  %6876 = vst.msk [vmem:[#allocation2 + $0x28] sm:$0xff] %vm653_vm2, %v6844_v32 }
 0x4bf   : > { %9514 = vmatmul.mubr.msk.f32.gmra.mrb[2].mxu0 %vm653_vm2, %v11876_v40 }
 0x4c0   : > { %9516 = vmatprep.mubr.msk.f32.mxu0 %vm653_vm2, %v5438_v23  ;;  %v11957_v23 = vld [vmem:[#allocation2 + $0x1ac] sm:$0xff] }
 0x4c3   : > { %9517 = vmatmul.mubr.msk.f32.gmra.mrb[4].mxu0 %vm653_vm2, %v11881_v60 }
 0x4c4   : > { %9519 = vmatprep.mubr.msk.f32.mxu0 %vm653_vm2, %v5440_v36  ;;  %v6704_v36 = vadd.f32 %v11929_v61, %v6703_v44 }
 0x4c7   : > { %9520 = vmatmul.mubr.msk.f32.gmra.mrb[6].mxu0 %vm653_vm2, %v11886_v59 }
 0x4c8   : > { %9522 = vmatprep.mubr.msk.f32.mxu0 %vm653_vm2, %v5442_v47  ;;  %v6847_v47 = vmax.f32 %v6709_v22, 0.0 }
 0x4cb   : > { %9523 = vmatmul.mubr.msk.f32.gmra.mrb[8].mxu0 %vm653_vm2, %v11891_v33 }
 0x4cc   : > { %9525 = vmatprep.mubr.msk.f32.mxu0 %vm653_vm2, %v5444_v38  ;;  %v11964_v38 = vld [vmem:[#allocation2 + $0x50] sm:$0xff] }
 0x4cf   : > { %9526 = vmatmul.mubr.msk.f32.gmra.mrb[10].mxu0 %vm653_vm2, %v11896_v62 }
 0x4d0   : > { %9528 = vmatprep.mubr.msk.f32.mxu0 %vm653_vm2, %v5446_v35  ;;  %v11966_v35 = vld [vmem:[#allocation2 + $0x54] sm:$0xff] }
 0x4d1   : > { %6879 = vst.msk [vmem:[#allocation2 + $0x50] sm:$0xff] %vm653_vm2, %v6847_v47 }
 0x4d3   : > { %9529 = vmatmul.mubr.msk.f32.gmra.mrb[12].mxu0 %vm653_vm2, %v11901_v4 }
 0x4d4   : > { %9531 = vmatprep.mubr.msk.f32.mxu0 %vm653_vm2, %v5448_v56  ;;  %v6846_v56 = vmax.f32 %v6704_v36, 0.0  ;;  %v5832_v36 = vld [vmem:[#allocation2 + $0x88] sm:$0xff] }
 0x4d7   : > { %9532 = vmatmul.mubr.msk.f32.gmra.mrb[14].mxu0 %vm653_vm2, %v11906_v42 }
 0x4d8   : > { %9534 = vmatprep.mubr.msk.f32.mxu0 %vm653_vm2, %v5450_v30  ;;  %v9671_v30 = vpop.f32.mrb[166].mxu1 }
 0x4d9   : > { %v6713_v53 = vpop.f32.mrb[167].mxu1 }
 0x4da   : > { %v6714_v24 = vadd.f32 %v11929_v61, %v6713_v53  ;;  %v9674_v31 = vpop.f32.mrb[168].mxu1  ;;  %v12010_v53 = vld [vmem:[#allocation2 + $0xb4] sm:$0xff] }
 0x4db   : > { %9535 = vmatmul.mubr.msk.f32.gmra.mrb[16].mxu0 %vm653_vm2, %v11911_v28  ;;  %v6729_v57 = vadd.f32 %v9674_v31, %v11929_v61  ;;  %v6723_v6 = vpop.f32.mrb[169].mxu1 }
 0x4dc   : > { %9537 = vmatprep.mubr.msk.f32.mxu0 %vm653_vm2, %v5452_v37  ;;  %v5464_v37 = vld [vmem:[#allocation2 + $0x1e4] sm:$0xff]  ;;  %v6848_v27 = vmax.f32 %v6714_v24, 0.0  ;;  %v6724_v29 = vadd.f32 %v11929_v61, %v6723_v6  ;;  %v9677_v44 = vpop.f32.mrb[170].mxu1  ;;  %v12021_v6 = vld [vmem:[#allocation2 + $0xd4] sm:$0xff] }
 0x4dd   : > { %v6851_v32 = vmax.f32 %v6729_v57, 0.0  ;;  %v6739_v47 = vadd.f32 %v9677_v44, %v11929_v61  ;;  %v5837_v57 = vld [vmem:[#allocation2 + $0xd0] sm:$0xff] }
 0x4de   : > { %v6850_v22 = vmax.f32 %v6724_v29, 0.0 }
 0x4df   : > { %9538 = vmatmul.mubr.msk.f32.gmra.mrb[18].mxu0 %vm653_vm2, %v11916_v39 }
 0x4e0   : > { %9540 = vmatprep.mubr.msk.f32.mxu0 %vm653_vm2, %v5454_v45  ;;  %v5828_v45 = vld [vmem:[#allocation2 + $0x48] sm:$0xff]  ;;  %6882 = vst.msk [vmem:[#allocation2 + $0x88] sm:$0xff] %vm653_vm2, %v6850_v22 }
 0x4e1   : > { %6878 = vst.msk [vmem:[#allocation2 + $0x48] sm:$0xff] %vm653_vm2, %v6846_v56  ;;  %v6733_v56 = vpop.f32.mrb[171].mxu1  ;;  %v5836_v22 = vld [vmem:[#allocation2 + $0xc8] sm:$0xff] }
 0x4e3   : > { %9541 = vmatmul.mubr.msk.f32.gmra.mrb[20].mxu0 %vm653_vm2, %v11921_v55 }
 0x4e4   : > { %9543 = vmatprep.mubr.msk.f32.mxu0 %vm653_vm2, %v5456_v58  ;;  %v6719_v58 = vadd.f32 %v9671_v30, %v11929_v61  ;;  %v11999_v30 = vld [vmem:[%s12357_s6] sm:$0x3] }
 0x4e6   : > { %v6849_v49 = vmax.f32 %v6719_v58, 0.0  ;;  %v12008_v58 = vld [vmem:[#allocation2 + $0xb0] sm:$0xff] }
 0x4e7   : > { %9544 = vmatmul.mubr.msk.f32.gmra.mrb[22].mxu0 %vm653_vm2, %v11932_v48 }
 0x4e8   : > { %9546 = vmatprep.mubr.msk.f32.mxu0 %vm653_vm2, %v5458_v0  ;;  %v11970_v0 = vld [vmem:[#allocation2 + $0x1cc] sm:$0xff]  ;;  %6881 = vst.msk [vmem:[#allocation2 + $0x70] sm:$0xff] %vm653_vm2, %v6849_v49  ;;  %v9680_v49 = vpop.f32.mrb[172].mxu1 }
 0x4e9   : > { %v6743_v31 = vpop.f32.mrb[173].mxu1 }
 0x4eb   : > { %9547 = vmatmul.mubr.msk.f32.gmra.mrb[24].mxu0 %vm653_vm2, %v11944_v26 }
 0x4ec   : > { %9549 = vmatprep.mubr.msk.f32.mxu0 %vm653_vm2, %v5460_v43  ;;  %v5830_v43 = vld [vmem:[#allocation2 + $0x68] sm:$0xff] }
 0x4ed   : > { %6880 = vst.msk [vmem:[#allocation2 + $0x68] sm:$0xff] %vm653_vm2, %v6848_v27  ;;  %v5834_v27 = vld [vmem:[#allocation2 + $0xa8] sm:$0xff] }
 0x4ef   : > { %9550 = vmatmul.mubr.msk.f32.gmra.mrb[26].mxu0 %vm653_vm2, %v11957_v23 }
 0x4f0   : > { %9552 = vmatprep.mubr.msk.f32.mxu0 %vm653_vm2, %v5462_v54  ;;  %v11992_v54 = vld [vmem:[#allocation2 + $0x94] sm:$0xff] }
 0x4f1   : > { %6883 = vst.msk [vmem:[#allocation2 + $0x90] sm:$0xff] %vm653_vm2, %v6851_v32  ;;  %v9683_v32 = vpop.f32.mrb[174].mxu1 }
 0x4f2   : > { %v6759_v44 = vadd.f32 %v9683_v32, %v11929_v61 }
 0x4f3   : > { %9553 = vmatmul.mubr.msk.f32.gmra.mrb[28].mxu0 %vm653_vm2, %v11970_v0 }
 0x4f4   : > { %9555 = vmatprep.mubr.msk.f32.mxu0 %vm653_vm2, %v5464_v37  ;;  %v6853_v37 = vmax.f32 %v6739_v47, 0.0  ;;  %v6753_v47 = vpop.f32.mrb[175].mxu1 }
 0x4f6   : > { %6885 = vst.msk [vmem:[#allocation2 + $0xb0] sm:$0xff] %vm653_vm2, %v6853_v37 }
 0x4f7   : > { %9556 = vmatmul.mubr.msk.f32.gmra.mrb[30].mxu0 %vm653_vm2, %v11983_v41 }
 0x4f8   : > { %9560 = vmatprep.mubr.msk.f32.mxu0 %vm653_vm2, %v5824_v5  ;;  %v6734_v5 = vadd.f32 %v11929_v61, %v6733_v56  ;;  %v6754_v56 = vadd.f32 %v11929_v61, %v6753_v47 }
 0x4fa   : > { %v6852_v24 = vmax.f32 %v6734_v5, 0.0  ;;  %v12030_v5 = vld [vmem:[#allocation2 + $0xf4] sm:$0xff]  ;;  %v6856_v37 = vmax.f32 %v6754_v56, 0.0 }
 0x4fb   : > { %9561 = vmatmul.mubr.msk.f32.vlgmr.msra.gmra.mrb[0].mxu0 %vm653_vm2, %v11938_v51  ;;  %v6749_v51 = vadd.f32 %v9680_v49, %v11929_v61  ;;  %v5838_v49 = vld [vmem:[#allocation2 + $0xe8] sm:$0xff] }
 0x4fc   : > { %9609 = vmatpush3.msk.msra.mxu0 %vm1147_vm3, %v11868_v1  ;;  %9563 = vmatprep.mubr.msk.f32.mxu0 %vm653_vm2, %v5826_v3  ;;  %6884 = vst.msk [vmem:[#allocation2 + $0xa8] sm:$0xff] %vm653_vm2, %v6852_v24  ;;  %v6744_v1 = vadd.f32 %v11929_v61, %v6743_v31  ;;  %v9686_v24 = vpop.f32.mrb[176].mxu1  ;;  %6888 = vst.msk [vmem:[#allocation2 + $0xe8] sm:$0xff] %vm653_vm2, %v6856_v37  ;;  %v12048_v37 = vld [vmem:[#allocation2 + $0x134] sm:$0xff] }
 0x4fd   : > { %9708 = vmatprep.subr.msk.mxu0 %vm1147_vm3, %v11999_v30  ;;  %v6855_v3 = vmax.f32 %v6749_v51, 0.0  ;;  %v6769_v51 = vadd.f32 %v9686_v24, %v11929_v61  ;;  %v6763_v31 = vpop.f32.mrb[177].mxu1 }
 0x4fe   : > { %v6854_v29 = vmax.f32 %v6744_v1, 0.0  ;;  %v6764_v1 = vadd.f32 %v11929_v61, %v6763_v31  ;;  %v9689_v32 = vpop.f32.mrb[178].mxu1  ;;  %v5842_v31 = vld [vmem:[#allocation2 + $0x128] sm:$0xff] }
 0x4ff   : > { %9564 = vmatmul.mubr.msk.f32.gmra.mrb[2].mxu0 %vm653_vm2, %v11951_v52  ;;  %6887 = vst.msk [vmem:[#allocation2 + $0xd0] sm:$0xff] %vm653_vm2, %v6855_v3  ;;  %v6857_v52 = vmax.f32 %v6759_v44, 0.0  ;;  %v12039_v3 = vld [vmem:[#allocation2 + $0x114] sm:$0xff]  ;;  %v5840_v44 = vld [vmem:[#allocation2 + $0x108] sm:$0xff]  ;;  %v6779_v47 = vadd.f32 %v9689_v32, %v11929_v61  ;;  %v6773_v56 = vpop.f32.mrb[179].mxu1 }
 0x500   : > { %9566 = vmatprep.mubr.msk.f32.mxu0 %vm653_vm2, %v5828_v45  ;;  %6886 = vst.msk [vmem:[#allocation2 + $0xc8] sm:$0xff] %vm653_vm2, %v6854_v29  ;;  %v5839_v45 = vld [vmem:[#allocation2 + $0xf0] sm:$0xff]  ;;  %v6858_v29 = vmax.f32 %v6764_v1, 0.0 }
 0x501   : > { %6889 = vst.msk [vmem:[#allocation2 + $0xf0] sm:$0xff] %vm653_vm2, %v6857_v52  ;;  %v6774_v52 = vadd.f32 %v11929_v61, %v6773_v56  ;;  %v12057_v32 = vld [vmem:[#allocation2 + $0x154] sm:$0xff] }
 0x502   : > { %6890 = vst.msk [vmem:[#allocation2 + $0x108] sm:$0xff] %vm653_vm2, %v6858_v29 }
 0x503   : > { %9567 = vmatmul.mubr.msk.f32.gmra.mrb[4].mxu0 %vm653_vm2, %v11964_v38  ;;  %v6859_v38 = vmax.f32 %v6769_v51, 0.0  ;;  %v6860_v24 = vmax.f32 %v6774_v52, 0.0  ;;  %v9692_v51 = vpop.f32.mrb[180].mxu1  ;;  %v5844_v52 = vld [vmem:[#allocation2 + $0x148] sm:$0xff] }
 0x504   : > { %9569 = vmatprep.mubr.msk.f32.mxu0 %vm653_vm2, %v5830_v43  ;;  %v5841_v43 = vld [vmem:[#allocation2 + $0x110] sm:$0xff]  ;;  %v6789_v1 = vadd.f32 %v9692_v51, %v11929_v61 }
 0x505   : > { %6891 = vst.msk [vmem:[#allocation2 + $0x110] sm:$0xff] %vm653_vm2, %v6859_v38  ;;  %v6783_v38 = vpop.f32.mrb[181].mxu1  ;;  %6892 = vst.msk [vmem:[#allocation2 + $0x128] sm:$0xff] %vm653_vm2, %v6860_v24 }
 0x506   : > { %v6784_v29 = vadd.f32 %v11929_v61, %v6783_v38  ;;  %v9695_v56 = vpop.f32.mrb[182].mxu1 }
 0x507   : > { %9570 = vmatmul.mubr.msk.f32.gmra.mrb[6].mxu0 %vm653_vm2, %v11977_v50  ;;  %v6861_v50 = vmax.f32 %v6779_v47, 0.0  ;;  %v6793_v51 = vpop.f32.mrb[183].mxu1 }
 0x508   : > { %9572 = vmatprep.mubr.msk.f32.mxu0 %vm653_vm2, %v5832_v36  ;;  %v5843_v36 = vld [vmem:[#allocation2 + $0x130] sm:$0xff]  ;;  %v6862_v47 = vmax.f32 %v6784_v29, 0.0  ;;  %v6794_v24 = vadd.f32 %v11929_v61, %v6793_v51  ;;  %v9698_v29 = vpop.f32.mrb[184].mxu1 }
 0x509   : > { %6893 = vst.msk [vmem:[#allocation2 + $0x130] sm:$0xff] %vm653_vm2, %v6861_v50  ;;  %v6799_v50 = vadd.f32 %v9695_v56, %v11929_v61  ;;  %v6803_v56 = vpop.f32.mrb[185].mxu1 }
 0x50a   : > { %6894 = vst.msk [vmem:[#allocation2 + $0x148] sm:$0xff] %vm653_vm2, %v6862_v47  ;;  %v6864_v38 = vmax.f32 %v6794_v24, 0.0  ;;  %v6804_v47 = vadd.f32 %v11929_v61, %v6803_v56  ;;  %v9701_v24 = vpop.f32.mrb[186].mxu1 }
 0x50b   : > { %9573 = vmatmul.mubr.msk.f32.gmra.mrb[8].mxu0 %vm653_vm2, %v11990_v34  ;;  %v6863_v34 = vmax.f32 %v6789_v1, 0.0  ;;  %v12065_v1 = vld [vmem:[#allocation2 + $0x174] sm:$0xff] }
 0x50c   : > { %9575 = vmatprep.mubr.msk.f32.mxu0 %vm653_vm2, %v5834_v27  ;;  %v5845_v27 = vld [vmem:[#allocation2 + $0x150] sm:$0xff]  ;;  %6896 = vst.msk [vmem:[#allocation2 + $0x168] sm:$0xff] %vm653_vm2, %v6864_v38  ;;  %v6866_v51 = vmax.f32 %v6804_v47, 0.0 }
 0x50d   : > { %6895 = vst.msk [vmem:[#allocation2 + $0x150] sm:$0xff] %vm653_vm2, %v6863_v34  ;;  %v6809_v34 = vadd.f32 %v9698_v29, %v11929_v61  ;;  %v6813_v29 = vpop.f32.mrb[187].mxu1 }
 0x50e   : > { %6898 = vst.msk [vmem:[#allocation2 + $0x188] sm:$0xff] %vm653_vm2, %v6866_v51  ;;  %v6814_v38 = vadd.f32 %v11929_v61, %v6813_v29  ;;  %v9704_v47 = vpop.f32.mrb[188].mxu1 }
 0x50f   : > { %9576 = vmatmul.mubr.msk.f32.gmra.mrb[10].mxu0 %vm653_vm2, %v12008_v58  ;;  %v6865_v58 = vmax.f32 %v6799_v50, 0.0  ;;  %v12073_v50 = vld [vmem:[#allocation2 + $0x194] sm:$0xff] }
 0x510   : > { %9578 = vmatprep.mubr.msk.f32.mxu0 %vm653_vm2, %v5836_v22  ;;  %v5847_v22 = vld [vmem:[#allocation2 + $0x170] sm:$0xff]  ;;  %v6868_v56 = vmax.f32 %v6814_v38, 0.0 }
 0x511   : > { %6897 = vst.msk [vmem:[#allocation2 + $0x170] sm:$0xff] %vm653_vm2, %v6865_v58  ;;  %v6819_v58 = vadd.f32 %v9701_v24, %v11929_v61  ;;  %v6823_v24 = vpop.f32.mrb[189].mxu1 }
 0x512   : > { %6900 = vst.msk [vmem:[#allocation2 + $0x1a8] sm:$0xff] %vm653_vm2, %v6868_v56  ;;  %v6824_v51 = vadd.f32 %v11929_v61, %v6823_v24  ;;  %v9707_v38 = vpop.f32.mrb[190].mxu1 }
 0x513   : > { %9579 = vmatmul.mubr.msk.f32.gmra.mrb[12].mxu0 %vm653_vm2, %v5837_v57  ;;  %v6867_v57 = vmax.f32 %v6809_v34, 0.0  ;;  %v12081_v34 = vld [vmem:[#allocation2 + $0x1b4] sm:$0xff] }
 0x514   : > { %9581 = vmatprep.mubr.msk.f32.mxu0 %vm653_vm2, %v5838_v49  ;;  %v5849_v49 = vld [vmem:[#allocation2 + $0x190] sm:$0xff]  ;;  %v6870_v29 = vmax.f32 %v6824_v51, 0.0  ;;  %v5854_v51 = vld [vmem:[#allocation2 + $0x1e8] sm:$0xff] }
 0x515   : > { %6899 = vst.msk [vmem:[#allocation2 + $0x190] sm:$0xff] %vm653_vm2, %v6867_v57  ;;  %v6829_v57 = vadd.f32 %v9704_v47, %v11929_v61  ;;  %v6833_v47 = vpop.f32.mrb[191].mxu1 }
 0x516   : > { %6902 = vst.msk [vmem:[#allocation2 + $0x1c8] sm:$0xff] %vm653_vm2, %v6870_v29  ;;  %v6834_v56 = vadd.f32 %v11929_v61, %v6833_v47  ;;  %v6948_v29 = vld [vmem:[#allocation2 + $0xa8] sm:$0xff]  ;;  %v6947_v47 = vld [vmem:[#allocation2 + $0x90] sm:$0xff] }
 0x517   : > { %9582 = vmatmul.mubr.msk.f32.gmra.mrb[14].mxu0 %vm653_vm2, %v5839_v45  ;;  %v6869_v45 = vmax.f32 %v6819_v58, 0.0  ;;  %v12089_v58 = vld [vmem:[#allocation2 + $0x1d4] sm:$0xff] }
 0x518   : > { %9584 = vmatprep.mubr.msk.f32.mxu0 %vm653_vm2, %v5840_v44  ;;  %v5851_v44 = vld [vmem:[#allocation2 + $0x1b0] sm:$0xff]  ;;  %v6872_v24 = vmax.f32 %v6834_v56, 0.0 }
 0x519   : > { %6901 = vst.msk [vmem:[#allocation2 + $0x1b0] sm:$0xff] %vm653_vm2, %v6869_v45  ;;  %v6839_v45 = vadd.f32 %v9707_v38, %v11929_v61  ;;  %v6909_v61 = vld [vmem:[#allocation2 + $0x2f] sm:$0xff] }
 0x51a   : > { %6904 = vst.msk [vmem:[#allocation2 + $0x1e8] sm:$0xff] %vm653_vm2, %v6872_v24  ;;  %v7009_v38 = vld [vmem:[#allocation2 + $0x71] sm:$0xff]  ;;  %v7012_v24 = vld [vmem:[#allocation2 + $0xa9] sm:$0xff] }
 0x51b   : > { %9585 = vmatmul.mubr.msk.f32.gmra.mrb[16].mxu0 %vm653_vm2, %v5841_v43  ;;  %v6871_v43 = vmax.f32 %v6829_v57, 0.0  ;;  %v12097_v57 = vld [vmem:[#allocation2 + $0x1f4] sm:$0xff] }
 0x51c   : > { %9587 = vmatprep.mubr.msk.f32.mxu0 %vm653_vm2, %v5842_v31  ;;  %v5853_v31 = vld [vmem:[#allocation2 + $0x1d0] sm:$0xff] }
 0x51d   : > { %6903 = vst.msk [vmem:[#allocation2 + $0x1d0] sm:$0xff] %vm653_vm2, %v6871_v43 }
 0x51f   : > { %9588 = vmatmul.mubr.msk.f32.gmra.mrb[18].mxu0 %vm653_vm2, %v5843_v36  ;;  %v6873_v36 = vmax.f32 %v6839_v45, 0.0  ;;  %v6915_v45 = vld [vmem:[#allocation2 + $0x8f] sm:$0xff] }
 0x520   : > { %9590 = vmatprep.mubr.msk.f32.mxu0 %vm653_vm2, %v5844_v52  ;;  %v5855_v52 = vld [vmem:[#allocation2 + $0x1f0] sm:$0xff] }
 0x521   : > { %6905 = vst.msk [vmem:[#allocation2 + $0x1f0] sm:$0xff] %vm653_vm2, %v6873_v36 }
 0x523   : > { %9591 = vmatmul.mubr.msk.f32.gmra.mrb[20].mxu0 %vm653_vm2, %v5845_v27  ;;  %v6914_v27 = vld [vmem:[#allocation2 + $0x87] sm:$0xff] }
 0x524   : > { %9593 = vmatprep.mubr.msk.f32.mxu0 %vm653_vm2, %v5846_v21  ;;  %v7002_v21 = vld [vmem:[#allocation2 + $0x9] sm:$0xff] }
 0x527   : > { %9594 = vmatmul.mubr.msk.f32.gmra.mrb[22].mxu0 %vm653_vm2, %v5847_v22  ;;  %v7007_v22 = vld [vmem:[#allocation2 + $0x51] sm:$0xff] }
 0x528   : > { %9596 = vmatprep.mubr.msk.f32.mxu0 %vm653_vm2, %v5848_v20 }
 0x52b   : > { %9597 = vmatmul.mubr.msk.f32.gmra.mrb[24].mxu0 %vm653_vm2, %v5849_v49  ;;  %v6945_v49 = vld [vmem:[#allocation2 + $0x70] sm:$0xff] }
 0x52c   : > { %9599 = vmatprep.mubr.msk.f32.mxu0 %vm653_vm2, %v5850_v19  ;;  %v6938_v19 = vld [vmem:[#allocation2 + $0x8] sm:$0xff] }
 0x52f   : > { %9600 = vmatmul.mubr.msk.f32.gmra.mrb[26].mxu0 %vm653_vm2, %v5851_v44 }
 0x530   : > { %9602 = vmatprep.mubr.msk.f32.mxu0 %vm653_vm2, %v5852_v18  ;;  %v6906_v18 = vld [vmem:[#allocation2 + $0x7] sm:$0xff] }
 0x531   : > { %v6970_v20 = vmax.f32 %v6906_v18, %v6938_v19  ;;  %v6950_v18 = vld [vmem:[#allocation2 + $0xc8] sm:$0xff]  ;;  %v7011_v19 = vld [vmem:[#allocation2 + $0x91] sm:$0xff] }
 0x533   : > { %9603 = vmatmul.mubr.msk.f32.gmra.mrb[28].mxu0 %vm653_vm2, %v5853_v31  ;;  %v7010_v31 = vld [vmem:[#allocation2 + $0x89] sm:$0xff] }
 0x534   : > { %9605 = vmatprep.mubr.msk.f32.mxu0 %vm653_vm2, %v5854_v51  ;;  %v6918_v51 = vld [vmem:[#allocation2 + $0xc7] sm:$0xff] }
 0x537   : > { %9606 = vmatmul.mubr.msk.f32.gmra.mrb[30].mxu0 %vm653_vm2, %v5855_v52 }
 0x538   : > { %9610 = vmatprep.mubr.msk.f32.mxu0 %vm653_vm2, %v11863_v63  ;;  %v6908_v63 = vld [vmem:[#allocation2 + $0x27] sm:$0xff] }
 0x53b   : > { %9611 = vmatmul.mubr.msk.f32.vlgmr.msra.gmra.mrb[0].mxu0 %vm653_vm2, %v11940_v46 }
 0x53c   : > { %9709 = vmatpush3.msk.msra.mxu0 %vm1147_vm3, %v11999_v30  ;;  %9613 = vmatprep.mubr.msk.f32.mxu0 %vm653_vm2, %v11876_v40  ;;  %v6940_v40 = vld [vmem:[#allocation2 + $0x28] sm:$0xff]  ;;  %v6943_v30 = vld [vmem:[#allocation2 + $0x50] sm:$0xff] }
 0x53f   : > { %9614 = vmatmul.mubr.msk.f32.gmra.mrb[2].mxu0 %vm653_vm2, %v11953_v2 }
 0x540   : > { %9616 = vmatprep.mubr.msk.f32.mxu0 %vm653_vm2, %v11881_v60  ;;  %v6907_v60 = vld [vmem:[#allocation2 + $0xf] sm:$0xff] }
 0x543   : > { %9617 = vmatmul.mubr.msk.f32.gmra.mrb[4].mxu0 %vm653_vm2, %v11966_v35  ;;  %v7006_v35 = vld [vmem:[#allocation2 + $0x49] sm:$0xff] }
 0x544   : > { %9619 = vmatprep.mubr.msk.f32.mxu0 %vm653_vm2, %v11886_v59  ;;  %v6939_v59 = vld [vmem:[#allocation2 + $0x10] sm:$0xff] }
 0x547   : > { %9620 = vmatmul.mubr.msk.f32.gmra.mrb[6].mxu0 %vm653_vm2, %v11979_v25  ;;  %v6944_v25 = vld [vmem:[#allocation2 + $0x68] sm:$0xff] }
 0x548   : > { %9622 = vmatprep.mubr.msk.f32.mxu0 %vm653_vm2, %v11891_v33  ;;  %v7034_v33 = vmax.f32 %v6970_v20, %v7002_v21  ;;  %v6917_v20 = vld [vmem:[#allocation2 + $0xaf] sm:$0xff] }
 0x549   : > { %v6949_v21 = vld [vmem:[#allocation2 + $0xb0] sm:$0xff] }
 0x54b   : > { %9623 = vmatmul.mubr.msk.f32.gmra.mrb[8].mxu0 %vm653_vm2, %v11992_v54  ;;  %v6911_v54 = vld [vmem:[#allocation2 + $0x4f] sm:$0xff] }
 0x54c   : > { %9625 = vmatprep.mubr.msk.f32.mxu0 %vm653_vm2, %v11896_v62  ;;  %v6972_v62 = vmax.f32 %v6908_v63, %v6940_v40  ;;  %v6982_v40 = vmax.f32 %v6918_v51, %v6950_v18  ;;  %v6927_v51 = vld [vmem:[#allocation2 + $0x14f] sm:$0xff] }
 0x54d   : > { %v6959_v18 = vld [vmem:[#allocation2 + $0x150] sm:$0xff] }
 0x54f   : > { %9626 = vmatmul.mubr.msk.f32.gmra.mrb[10].mxu0 %vm653_vm2, %v12010_v53 }
 0x550   : > { %9628 = vmatprep.mubr.msk.f32.mxu0 %vm653_vm2, %v11901_v4  ;;  %v6971_v4 = vmax.f32 %v6907_v60, %v6939_v59  ;;  %v6981_v59 = vmax.f32 %v6917_v20, %v6949_v21 }
 0x553   : > { %9629 = vmatmul.mubr.msk.f32.gmra.mrb[12].mxu0 %vm653_vm2, %v12021_v6 }
 0x554   : > { %9631 = vmatprep.mubr.msk.f32.mxu0 %vm653_vm2, %v11906_v42  ;;  %v7004_v42 = vld [vmem:[#allocation2 + $0x29] sm:$0xff] }
 0x555   : > { %v7036_v46 = vmax.f32 %v6972_v62, %v7004_v42  ;;  %v6920_v62 = vld [vmem:[#allocation2 + $0xe7] sm:$0xff]  ;;  %v7013_v42 = vld [vmem:[#allocation2 + $0xb1] sm:$0xff] }
 0x557   : > { %9632 = vmatmul.mubr.msk.f32.gmra.mrb[14].mxu0 %vm653_vm2, %v12030_v5 }
 0x558   : > { %9634 = vmatprep.mubr.msk.f32.mxu0 %vm653_vm2, %v11911_v28  ;;  %v6910_v28 = vld [vmem:[#allocation2 + $0x47] sm:$0xff] }
 0x55b   : > { %9635 = vmatmul.mubr.msk.f32.gmra.mrb[16].mxu0 %vm653_vm2, %v12039_v3  ;;  %v6975_v3 = vmax.f32 %v6911_v54, %v6943_v30 }
 0x55c   : > { %9637 = vmatprep.mubr.msk.f32.mxu0 %vm653_vm2, %v11916_v39  ;;  %v6942_v39 = vld [vmem:[#allocation2 + $0x48] sm:$0xff] }
 0x55f   : > { %9638 = vmatmul.mubr.msk.f32.gmra.mrb[18].mxu0 %vm653_vm2, %v12048_v37  ;;  %v7008_v37 = vld [vmem:[#allocation2 + $0x69] sm:$0xff] }
 0x560   : > { %9640 = vmatprep.mubr.msk.f32.mxu0 %vm653_vm2, %v11921_v55  ;;  %v7003_v55 = vld [vmem:[#allocation2 + $0x11] sm:$0xff] }
 0x561   : > { %v7035_v2 = vmax.f32 %v6971_v4, %v7003_v55  ;;  %v6952_v4 = vld [vmem:[#allocation2 + $0xe8] sm:$0xff] }
 0x563   : > { %9641 = vmatmul.mubr.msk.f32.gmra.mrb[20].mxu0 %vm653_vm2, %v12057_v32  ;;  %v6946_v32 = vld [vmem:[#allocation2 + $0x88] sm:$0xff] }
 0x564   : > { %9643 = vmatprep.mubr.msk.f32.mxu0 %vm653_vm2, %v11932_v48  ;;  %v6941_v48 = vld [vmem:[#allocation2 + $0x30] sm:$0xff]  ;;  %v6978_v44 = vmax.f32 %v6914_v27, %v6946_v32 }
 0x565   : > { %v6923_v27 = vld [vmem:[#allocation2 + $0x10f] sm:$0xff] }
 0x566   : > { %v7042_v56 = vmax.f32 %v6978_v44, %v7010_v31  ;;  %v6955_v32 = vld [vmem:[#allocation2 + $0x110] sm:$0xff] }
 0x567   : > { %9644 = vmatmul.mubr.msk.f32.gmra.mrb[22].mxu0 %vm653_vm2, %v12065_v1  ;;  %v6913_v1 = vld [vmem:[#allocation2 + $0x6f] sm:$0xff] }
 0x568   : > { %9646 = vmatprep.mubr.msk.f32.mxu0 %vm653_vm2, %v11944_v26  ;;  %v6974_v26 = vmax.f32 %v6910_v28, %v6942_v39  ;;  %v6977_v43 = vmax.f32 %v6913_v1, %v6945_v49  ;;  %v6919_v28 = vld [vmem:[#allocation2 + $0xcf] sm:$0xff] }
 0x569   : > { %v6951_v39 = vld [vmem:[#allocation2 + $0xd0] sm:$0xff] }
 0x56a   : > { %v7038_v53 = vmax.f32 %v6974_v26, %v7006_v35  ;;  %v7041_v52 = vmax.f32 %v6977_v43, %v7009_v38  ;;  %v7016_v26 = vld [vmem:[#allocation2 + $0xe9] sm:$0xff]  ;;  %v7015_v35 = vld [vmem:[#allocation2 + $0xd1] sm:$0xff] }
 0x56b   : > { %9647 = vmatmul.mubr.msk.f32.gmra.mrb[24].mxu0 %vm653_vm2, %v12073_v50  ;;  %v7020_v44 = vld [vmem:[#allocation2 + $0x129] sm:$0xff]  ;;  %v7019_v31 = vld [vmem:[#allocation2 + $0x111] sm:$0xff] }
 0x56c   : > { %9649 = vmatprep.mubr.msk.f32.mxu0 %vm653_vm2, %v11957_v23  ;;  %v6973_v23 = vmax.f32 %v6909_v61, %v6941_v48  ;;  %v6984_v61 = vmax.f32 %v6920_v62, %v6952_v4  ;;  %v7045_v48 = vmax.f32 %v6981_v59, %v7013_v42  ;;  %v6958_v43 = vld [vmem:[#allocation2 + $0x148] sm:$0xff]  ;;  %v6961_v4 = vld [vmem:[#allocation2 + $0x170] sm:$0xff] }
 0x56d   : > { %v6962_v59 = vld [vmem:[#allocation2 + $0x188] sm:$0xff] }
 0x56e   : > { %v6929_v62 = vld [vmem:[#allocation2 + $0x16f] sm:$0xff] }
 0x56f   : > { %9650 = vmatmul.mubr.msk.f32.gmra.mrb[26].mxu0 %vm653_vm2, %v12081_v34  ;;  %v7039_v34 = vmax.f32 %v6975_v3, %v7007_v22  ;;  %v6956_v3 = vld [vmem:[#allocation2 + $0x128] sm:$0xff] }
 0x570   : > { %9652 = vmatprep.mubr.msk.f32.mxu0 %vm653_vm2, %v11970_v0  ;;  %v6912_v0 = vld [vmem:[#allocation2 + $0x67] sm:$0xff] }
 0x571   : > { %v6976_v6 = vmax.f32 %v6912_v0, %v6944_v25  ;;  %v6921_v0 = vld [vmem:[#allocation2 + $0xef] sm:$0xff] }
 0x572   : > { %v6953_v25 = vld [vmem:[#allocation2 + $0xf0] sm:$0xff] }
 0x573   : > { %9653 = vmatmul.mubr.msk.f32.gmra.mrb[28].mxu0 %vm653_vm2, %v12089_v58  ;;  %v7040_v50 = vmax.f32 %v6976_v6, %v7008_v37  ;;  %v6916_v58 = vld [vmem:[#allocation2 + $0xa7] sm:$0xff]  ;;  %v7017_v37 = vld [vmem:[#allocation2 + $0xf1] sm:$0xff] }
 0x574   : > { %9655 = vmatprep.mubr.msk.f32.mxu0 %vm653_vm2, %v11983_v41  ;;  %v7005_v41 = vld [vmem:[#allocation2 + $0x31] sm:$0xff]  ;;  %v6980_v36 = vmax.f32 %v6916_v58, %v6948_v29  ;;  %v7018_v6 = vld [vmem:[#allocation2 + $0x109] sm:$0xff] }
 0x575   : > { %v7037_v5 = vmax.f32 %v6973_v23, %v7005_v41  ;;  %v6954_v23 = vld [vmem:[#allocation2 + $0x108] sm:$0xff]  ;;  %v7048_v41 = vmax.f32 %v6984_v61, %v7016_v26  ;;  %v6957_v29 = vld [vmem:[#allocation2 + $0x130] sm:$0xff] }
 0x576   : > { %v7044_v63 = vmax.f32 %v6980_v36, %v7012_v24  ;;  %v6925_v58 = vld [vmem:[#allocation2 + $0x12f] sm:$0xff] }
 0x577   : > { %9656 = vmatmul.mubr.msk.f32.gmra.mrb[30].mxu0 %vm653_vm2, %v12097_v57  ;;  %v6979_v57 = vmax.f32 %v6915_v45, %v6947_v47  ;;  %v7022_v36 = vld [vmem:[#allocation2 + $0x149] sm:$0xff]  ;;  %v7021_v24 = vld [vmem:[#allocation2 + $0x131] sm:$0xff] }
 0x578   : > { %9710 = vmatprep.mubr.msk.f32.mxu0 %vm653_vm2, %v7034_v33  ;;  %v7014_v33 = vld [vmem:[#allocation2 + $0xc9] sm:$0xff]  ;;  %v7025_v26 = vld [vmem:[#allocation2 + $0x171] sm:$0xff] }
 0x579   : > { %v7043_v60 = vmax.f32 %v6979_v57, %v7011_v19  ;;  %v7046_v55 = vmax.f32 %v6982_v40, %v7014_v33  ;;  %v6960_v57 = vld [vmem:[#allocation2 + $0x168] sm:$0xff]  ;;  %v7023_v33 = vld [vmem:[#allocation2 + $0x151] sm:$0xff] }
 0x57a   : > { %v7024_v40 = vld [vmem:[#allocation2 + $0x169] sm:$0xff] }
 0x57b   : > { %9711 = vmatmul.mubr.msk.f32.vlgmr.msra.gmra.mrb[0].mxu0 %vm653_vm2, %v7035_v2  ;;  %v6922_v2 = vld [vmem:[#allocation2 + $0x107] sm:$0xff] }
 0x57c   : > { %9713 = vmatprep.mubr.msk.f32.mxu0 %vm653_vm2, %v7036_v46  ;;  %v6983_v46 = vmax.f32 %v6919_v28, %v6951_v39  ;;  %v6986_v54 = vmax.f32 %v6922_v2, %v6954_v23  ;;  %v7026_v61 = vld [vmem:[#allocation2 + $0x189] sm:$0xff] }
 0x57d   : > { %v6931_v2 = vld [vmem:[#allocation2 + $0x18f] sm:$0xff] }
 0x57e   : > { %v7047_v30 = vmax.f32 %v6983_v46, %v7015_v35  ;;  %v7050_v22 = vmax.f32 %v6986_v54, %v7018_v6  ;;  %v6964_v46 = vld [vmem:[#allocation2 + $0x1a8] sm:$0xff]  ;;  %v6963_v23 = vld [vmem:[#allocation2 + $0x190] sm:$0xff] }
 0x57f   : > { %9714 = vmatmul.mubr.msk.f32.gmra.mrb[2].mxu0 %vm653_vm2, %v7037_v5  ;;  %v6924_v5 = vld [vmem:[#allocation2 + $0x127] sm:$0xff]  ;;  %v7027_v6 = vld [vmem:[#allocation2 + $0x191] sm:$0xff] }
 0x580   : > { %9716 = vmatprep.mubr.msk.f32.mxu0 %vm653_vm2, %v7038_v53  ;;  %v6985_v53 = vmax.f32 %v6921_v0, %v6953_v25  ;;  %v6988_v1 = vmax.f32 %v6924_v5, %v6956_v3  ;;  %v7028_v54 = vld [vmem:[#allocation2 + $0x1a9] sm:$0xff] }
 0x581   : > { %v6933_v5 = vld [vmem:[#allocation2 + $0x1af] sm:$0xff] }
 0x582   : > { %v7049_v49 = vmax.f32 %v6985_v53, %v7017_v37  ;;  %v7052_v38 = vmax.f32 %v6988_v1, %v7020_v44  ;;  %v6966_v53 = vld [vmem:[#allocation2 + $0x1c8] sm:$0xff]  ;;  %v6965_v3 = vld [vmem:[#allocation2 + $0x1b0] sm:$0xff] }
 0x583   : > { %9717 = vmatmul.mubr.msk.f32.gmra.mrb[4].mxu0 %vm653_vm2, %v7039_v34  ;;  %v6926_v34 = vld [vmem:[#allocation2 + $0x147] sm:$0xff]  ;;  %v7029_v44 = vld [vmem:[#allocation2 + $0x1b1] sm:$0xff] }
 0x584   : > { %9719 = vmatprep.mubr.msk.f32.mxu0 %vm653_vm2, %v7040_v50  ;;  %v6987_v50 = vmax.f32 %v6923_v27, %v6955_v32  ;;  %v6990_v45 = vmax.f32 %v6926_v34, %v6958_v43  ;;  %v7030_v1 = vld [vmem:[#allocation2 + $0x1c9] sm:$0xff] }
 0x585   : > { %v6935_v34 = vld [vmem:[#allocation2 + $0x1cf] sm:$0xff] }
 0x586   : > { %v7051_v47 = vmax.f32 %v6987_v50, %v7019_v31  ;;  %v7054_v19 = vmax.f32 %v6990_v45, %v7022_v36  ;;  %v6968_v50 = vld [vmem:[#allocation2 + $0x1e8] sm:$0xff]  ;;  %v6967_v43 = vld [vmem:[#allocation2 + $0x1d0] sm:$0xff] }
 0x587   : > { %9720 = vmatmul.mubr.msk.f32.gmra.mrb[6].mxu0 %vm653_vm2, %v7041_v52  ;;  %v6928_v52 = vld [vmem:[#allocation2 + $0x167] sm:$0xff]  ;;  %v6969_v36 = vld [vmem:[#allocation2 + $0x1f0] sm:$0xff] }
 0x588   : > { %9722 = vmatprep.mubr.msk.f32.mxu0 %vm653_vm2, %v7042_v56  ;;  %v6989_v56 = vmax.f32 %v6925_v58, %v6957_v29  ;;  %v6992_v20 = vmax.f32 %v6928_v52, %v6960_v57  ;;  %v7032_v45 = vld [vmem:[#allocation2 + $0x1e9] sm:$0xff] }
 0x58a   : > { %v7053_v21 = vmax.f32 %v6989_v56, %v7021_v24  ;;  %v7056_v42 = vmax.f32 %v6992_v20, %v7024_v40  ;;  %v6937_v56 = vld [vmem:[#allocation2 + $0x1ef] sm:$0xff] }
 0x58b   : > { %9723 = vmatmul.mubr.msk.f32.gmra.mrb[8].mxu0 %vm653_vm2, %v7043_v60  ;;  %v6930_v60 = vld [vmem:[#allocation2 + $0x187] sm:$0xff]  ;;  %v7001_v24 = vmax.f32 %v6937_v56, %v6969_v36 }
 0x58c   : > { %9725 = vmatprep.mubr.msk.f32.mxu0 %vm653_vm2, %v7044_v63  ;;  %v6991_v63 = vmax.f32 %v6927_v51, %v6959_v18  ;;  %v6994_v28 = vmax.f32 %v6930_v60, %v6962_v59  ;;  %v7033_v51 = vld [vmem:[#allocation2 + $0x1f1] sm:$0xff] }
 0x58d   : > { %v7065_v18 = vmax.f32 %v7001_v24, %v7033_v51  ;;  %v12387_v51 = vld [vmem:[#allocation10_spill] sm:$0xff] }
 0x58e   : > { %v7055_v39 = vmax.f32 %v6991_v63, %v7023_v33  ;;  %v7058_v35 = vmax.f32 %v6994_v28, %v7026_v61 }
 0x58f   : > { %9726 = vmatmul.mubr.msk.f32.gmra.mrb[10].mxu0 %vm653_vm2, %v7045_v48  ;;  %v6932_v48 = vld [vmem:[#allocation2 + $0x1a7] sm:$0xff] }
 0x590   : > { %9728 = vmatprep.mubr.msk.f32.mxu0 %vm653_vm2, %v7046_v55  ;;  %v6993_v55 = vmax.f32 %v6929_v62, %v6961_v4  ;;  %v6996_v0 = vmax.f32 %v6932_v48, %v6964_v46 }
 0x592   : > { %v7057_v25 = vmax.f32 %v6993_v55, %v7025_v26  ;;  %v7060_v37 = vmax.f32 %v6996_v0, %v7028_v54  ;;  %v12380_v54 = vld [vmem:[#allocation3_spill] sm:$0xff] }
 0x593   : > { %9729 = vmatmul.mubr.msk.f32.gmra.mrb[12].mxu0 %vm653_vm2, %v7047_v30  ;;  %v6934_v30 = vld [vmem:[#allocation2 + $0x1c7] sm:$0xff] }
 0x594   : > { %9731 = vmatprep.mubr.msk.f32.mxu0 %vm653_vm2, %v7048_v41  ;;  %v6995_v41 = vmax.f32 %v6931_v2, %v6963_v23  ;;  %v6998_v27 = vmax.f32 %v6934_v30, %v6966_v53 }
 0x596   : > { %v7059_v32 = vmax.f32 %v6995_v41, %v7027_v6  ;;  %v7062_v31 = vmax.f32 %v6998_v27, %v7030_v1 }
 0x597   : > { %9732 = vmatmul.mubr.msk.f32.gmra.mrb[14].mxu0 %vm653_vm2, %v7049_v49  ;;  %v6936_v49 = vld [vmem:[#allocation2 + $0x1e7] sm:$0xff] }
 0x598   : > { %9734 = vmatprep.mubr.msk.f32.mxu0 %vm653_vm2, %v7050_v22  ;;  %v6997_v22 = vmax.f32 %v6933_v5, %v6965_v3  ;;  %v7000_v58 = vmax.f32 %v6936_v49, %v6968_v50  ;;  %v12381_v5 = vld [vmem:[#allocation4_spill] sm:$0xff]  ;;  %v12383_v49 = vld [vmem:[#allocation6_spill] sm:$0xff] }
 0x59a   : > { %v7061_v29 = vmax.f32 %v6997_v22, %v7029_v44  ;;  %v7064_v52 = vmax.f32 %v7000_v58, %v7032_v45  ;;  %v12384_v44 = vld [vmem:[#allocation7_spill] sm:$0xff] }
 0x59b   : > { %9735 = vmatmul.mubr.msk.f32.gmra.mrb[16].mxu0 %vm653_vm2, %v7051_v47  ;;  %v7031_v47 = vld [vmem:[#allocation2 + $0x1d1] sm:$0xff] }
 0x59c   : > { %9737 = vmatprep.mubr.msk.f32.mxu0 %vm653_vm2, %v7052_v38  ;;  %v6999_v38 = vmax.f32 %v6935_v34, %v6967_v43 }
 0x59e   : > { %v7063_v57 = vmax.f32 %v6999_v38, %v7031_v47  ;;  %v12385_v38 = vld [vmem:[#allocation8_spill] sm:$0xff]  ;;  %v12386_v47 = vld [vmem:[#allocation9_spill] sm:$0xff] }
 0x59f   : > { %9738 = vmatmul.mubr.msk.f32.gmra.mrb[18].mxu0 %vm653_vm2, %v7053_v21 }
 0x5a0   : > { %9740 = vmatprep.mubr.msk.f32.mxu0 %vm653_vm2, %v7054_v19  ;;  %v12211_v19 = vld [vmem:[%s12355_s4] ss:$0 sm:$0xff] }
 0x5a1   : > { %v9760_v20 = vadd.f32 %v10961_v7, %v12211_v19  ;;  %v9762_v21 = vadd.f32 %v12211_v19, %v10963_v8  ;;  %v9764_v7 = vadd.f32 %v10965_v9, %v12211_v19  ;;  %v9766_v8 = vadd.f32 %v12211_v19, %v10967_v10 }
 0x5a2   : > { %v9768_v28 = vadd.f32 %v10969_v11, %v12211_v19  ;;  %v9770_v9 = vadd.f32 %v12211_v19, %v10971_v12  ;;  %v9772_v48 = vadd.f32 %v10973_v13, %v12211_v19  ;;  %v9774_v11 = vadd.f32 %v12211_v19, %v10975_v14 }
 0x5a3   : > { %9741 = vmatmul.mubr.msk.f32.gmra.mrb[20].mxu0 %vm653_vm2, %v7055_v39  ;;  %v9776_v23 = vadd.f32 %v10977_v15, %v12211_v19  ;;  %v9778_v13 = vadd.f32 %v12211_v19, %v10979_v16  ;;  %v9780_v41 = vadd.f32 %v10981_v17, %v12211_v19  ;;  %v9782_v15 = vadd.f32 %v12211_v19, %v12380_v54 }
 0x5a4   : > { %9743 = vmatprep.mubr.msk.f32.mxu0 %vm653_vm2, %v7056_v42  ;;  %v9784_v3 = vadd.f32 %v12381_v5, %v12211_v19  ;;  %v9788_v50 = vadd.f32 %v12383_v49, %v12211_v19  ;;  %v9790_v34 = vadd.f32 %v12211_v19, %v12384_v44  ;;  %v9792_v45 = vadd.f32 %v12385_v38, %v12211_v19 }
 0x5a5   : > { %v9794_v56 = vadd.f32 %v12211_v19, %v12386_v47 }
 0x5a7   : > { %9744 = vmatmul.mubr.msk.f32.gmra.mrb[22].mxu0 %vm653_vm2, %v7057_v25 }
 0x5a8   : > { %9746 = vmatprep.mubr.msk.f32.mxu0 %vm653_vm2, %v7058_v35 }
 0x5ab   : > { %9747 = vmatmul.mubr.msk.f32.gmra.mrb[24].mxu0 %vm653_vm2, %v7059_v32 }
 0x5ac   : > { %9749 = vmatprep.mubr.msk.f32.mxu0 %vm653_vm2, %v7060_v37  ;;  %v12382_v37 = vld [vmem:[#allocation5_spill] sm:$0xff] }
 0x5ad   : > { %v9786_v17 = vadd.f32 %v12211_v19, %v12382_v37 }
 0x5af   : > { %9750 = vmatmul.mubr.msk.f32.gmra.mrb[26].mxu0 %vm653_vm2, %v7061_v29 }
 0x5b0   : > { %9752 = vmatprep.mubr.msk.f32.mxu0 %vm653_vm2, %v7062_v31 }
 0x5b3   : > { %9753 = vmatmul.mubr.msk.f32.gmra.mrb[28].mxu0 %vm653_vm2, %v7063_v57 }
 0x5b4   : > { %9755 = vmatprep.mubr.msk.f32.mxu0 %vm653_vm2, %v7064_v52 }
 0x5b7   : > { %9756 = vmatmul.mubr.msk.f32.gmra.mrb[30].mxu0 %vm653_vm2, %v7065_v18  ;;  %v9796_v18 = vadd.f32 %v12387_v51, %v12211_v19 }
 0x64e   : > { %v9712_v63 = vpop.f32.mrb[0].mxu0 }
 0x64f   : > { %v9761_v40 = vadd.f32 %v9760_v20, %v9712_v63  ;;  %v7232_v60 = vpop.f32.mrb[1].mxu0  ;;  %v12388_v20 = vld [vmem:[#allocation11_spill] sm:$0xff] }
 0x650   : > { %v9763_v59 = vadd.f32 %v9762_v21, %v7232_v60  ;;  %v9798_v21 = vadd.f32 %v12211_v19, %v12388_v20 }
 0x651   : > { %7425 = vst.msk [vmem:[%s12222_s20 + $0x8] sm:$0xff] %vm7423_vm4, %v9761_v40 }
 0x652   : > { %7424 = vst.msk [vmem:[%s12222_s20] sm:$0xff] %vm7423_vm4, %v9763_v59  ;;  %v9715_v33 = vpop.f32.mrb[2].mxu0 }
 0x653   : > { %v9765_v62 = vadd.f32 %v9764_v7, %v9715_v33  ;;  %v7242_v4 = vpop.f32.mrb[3].mxu0  ;;  %v12389_v7 = vld [vmem:[#allocation12_spill] sm:$0xff]  ;;  %v12390_v33 = vld [vmem:[#allocation13_spill] sm:$0xff] }
 0x654   : > { %v9767_v42 = vadd.f32 %v9766_v8, %v7242_v4  ;;  %v9800_v8 = vadd.f32 %v12389_v7, %v12211_v19 }
 0x655   : > { %7427 = vst.msk [vmem:[%s12222_s20 + $0x18] sm:$0xff] %vm7423_vm4, %v9765_v62  ;;  %v9802_v62 = vadd.f32 %v12211_v19, %v12390_v33 }
 0x656   : > { %7426 = vst.msk [vmem:[%s12222_s20 + $0x10] sm:$0xff] %vm7423_vm4, %v9767_v42  ;;  %v9718_v10 = vpop.f32.mrb[4].mxu0 }
 0x657   : > { %v9769_v39 = vadd.f32 %v9768_v28, %v9718_v10  ;;  %v7252_v55 = vpop.f32.mrb[5].mxu0  ;;  %v12391_v10 = vld [vmem:[#allocation14_spill] sm:$0xff] }
 0x658   : > { %v9771_v61 = vadd.f32 %v9770_v9, %v7252_v55  ;;  %v12392_v55 = vld [vmem:[#allocation15_spill] sm:$0xff] }
 0x659   : > { %7429 = vst.msk [vmem:[%s12222_s20 + $0x28] sm:$0xff] %vm7423_vm4, %v9769_v39  ;;  %v9804_v39 = vadd.f32 %v12391_v10, %v12211_v19 }
 0x65a   : > { %7428 = vst.msk [vmem:[%s12222_s20 + $0x20] sm:$0xff] %vm7423_vm4, %v9771_v61  ;;  %v9721_v12 = vpop.f32.mrb[6].mxu0  ;;  %v9806_v61 = vadd.f32 %v12211_v19, %v12392_v55 }
 0x65b   : > { %v9773_v46 = vadd.f32 %v9772_v48, %v9721_v12  ;;  %v7262_v26 = vpop.f32.mrb[7].mxu0 }
 0x65c   : > { %v9775_v2 = vadd.f32 %v9774_v11, %v7262_v26  ;;  %v12393_v26 = vld [vmem:[#allocation16_spill] sm:$0xff] }
 0x65d   : > { %7431 = vst.msk [vmem:[%s12222_s20 + $0x38] sm:$0xff] %vm7423_vm4, %v9773_v46 }
 0x65e   : > { %7430 = vst.msk [vmem:[%s12222_s20 + $0x30] sm:$0xff] %vm7423_vm4, %v9775_v2  ;;  %v9724_v14 = vpop.f32.mrb[8].mxu0  ;;  %v9808_v2 = vadd.f32 %v12393_v26, %v12211_v19 }
 0x65f   : > { %v9777_v35 = vadd.f32 %v9776_v23, %v9724_v14  ;;  %v7272_v0 = vpop.f32.mrb[9].mxu0  ;;  %v12394_v23 = vld [vmem:[#allocation17_spill] sm:$0xff] }
 0x660   : > { %v9779_v25 = vadd.f32 %v9778_v13, %v7272_v0  ;;  %v9810_v13 = vadd.f32 %v12211_v19, %v12394_v23 }
 0x661   : > { %7433 = vst.msk [vmem:[%s12222_s20 + $0x48] sm:$0xff] %vm7423_vm4, %v9777_v35 }
 0x662   : > { %7432 = vst.msk [vmem:[%s12222_s20 + $0x40] sm:$0xff] %vm7423_vm4, %v9779_v25  ;;  %v9727_v16 = vpop.f32.mrb[10].mxu0 }
 0x663   : > { %v9781_v30 = vadd.f32 %v9780_v41, %v9727_v16  ;;  %v7282_v53 = vpop.f32.mrb[11].mxu0  ;;  %v12395_v41 = vld [vmem:[#allocation18_spill] sm:$0xff] }
 0x664   : > { %v9783_v6 = vadd.f32 %v9782_v15, %v7282_v53  ;;  %v9812_v54 = vadd.f32 %v12395_v41, %v12211_v19  ;;  %v12396_v15 = vld [vmem:[#allocation19_spill] sm:$0xff] }
 0x665   : > { %7435 = vst.msk [vmem:[%s12222_s20 + $0x58] sm:$0xff] %vm7423_vm4, %v9781_v30  ;;  %v9814_v16 = vadd.f32 %v12211_v19, %v12396_v15 }
 0x666   : > { %7434 = vst.msk [vmem:[%s12222_s20 + $0x50] sm:$0xff] %vm7423_vm4, %v9783_v6  ;;  %v9730_v27 = vpop.f32.mrb[12].mxu0 }
 0x667   : > { %v9785_v32 = vadd.f32 %v9784_v3, %v9730_v27  ;;  %v7292_v22 = vpop.f32.mrb[13].mxu0  ;;  %v12397_v3 = vld [vmem:[#allocation20_spill] sm:$0xff] }
 0x668   : > { %v9787_v1 = vadd.f32 %v9786_v17, %v7292_v22  ;;  %v9816_v37 = vadd.f32 %v12397_v3, %v12211_v19  ;;  %v12398_v17 = vld [vmem:[#allocation21_spill] sm:$0xff] }
 0x669   : > { %7437 = vst.msk [vmem:[%s12222_s20 + $0x68] sm:$0xff] %vm7423_vm4, %v9785_v32  ;;  %v9818_v27 = vadd.f32 %v12211_v19, %v12398_v17 }
 0x66a   : > { %7436 = vst.msk [vmem:[%s12222_s20 + $0x60] sm:$0xff] %vm7423_vm4, %v9787_v1  ;;  %v9733_v43 = vpop.f32.mrb[14].mxu0 }
 0x66b   : > { %v9789_v31 = vadd.f32 %v9788_v50, %v9733_v43  ;;  %v7302_v58 = vpop.f32.mrb[15].mxu0  ;;  %v12399_v50 = vld [vmem:[#allocation22_spill] sm:$0xff] }
 0x66c   : > { %v9791_v29 = vadd.f32 %v9790_v34, %v7302_v58  ;;  %v9820_v44 = vadd.f32 %v12399_v50, %v12211_v19  ;;  %v12400_v34 = vld [vmem:[#allocation23_spill] sm:$0xff] }
 0x66d   : > { %7439 = vst.msk [vmem:[%s12222_s20 + $0x78] sm:$0xff] %vm7423_vm4, %v9789_v31  ;;  %v9822_v43 = vadd.f32 %v12211_v19, %v12400_v34 }
 0x66e   : > { %7438 = vst.msk [vmem:[%s12222_s20 + $0x70] sm:$0xff] %vm7423_vm4, %v9791_v29  ;;  %v9736_v36 = vpop.f32.mrb[16].mxu0 }
 0x66f   : > { %v9793_v52 = vadd.f32 %v9792_v45, %v9736_v36  ;;  %v7312_v57 = vpop.f32.mrb[17].mxu0 }
 0x670   : > { %v9795_v24 = vadd.f32 %v9794_v56, %v7312_v57 }
 0x671   : > { %7441 = vst.msk [vmem:[%s12222_s20 + $0x88] sm:$0xff] %vm7423_vm4, %v9793_v52 }
 0x672   : > { %7440 = vst.msk [vmem:[%s12222_s20 + $0x80] sm:$0xff] %vm7423_vm4, %v9795_v24  ;;  %v9739_v63 = vpop.f32.mrb[18].mxu0 }
 0x673   : > { %v9797_v40 = vadd.f32 %v9796_v18, %v9739_v63  ;;  %v7322_v60 = vpop.f32.mrb[19].mxu0 }
 0x674   : > { %v9799_v59 = vadd.f32 %v9798_v21, %v7322_v60 }
 0x675   : > { %7443 = vst.msk [vmem:[%s12222_s20 + $0x98] sm:$0xff] %vm7423_vm4, %v9797_v40 }
 0x676   : > { %7442 = vst.msk [vmem:[%s12222_s20 + $0x90] sm:$0xff] %vm7423_vm4, %v9799_v59  ;;  %v9742_v4 = vpop.f32.mrb[20].mxu0 }
 0x677   : > { %v9801_v42 = vadd.f32 %v9800_v8, %v9742_v4  ;;  %v7332_v28 = vpop.f32.mrb[21].mxu0 }
 0x678   : > { %v9803_v9 = vadd.f32 %v9802_v62, %v7332_v28 }
 0x679   : > { %7445 = vst.msk [vmem:[%s12222_s20 + $0xa8] sm:$0xff] %vm7423_vm4, %v9801_v42 }
 0x67a   : > { %7444 = vst.msk [vmem:[%s12222_s20 + $0xa0] sm:$0xff] %vm7423_vm4, %v9803_v9  ;;  %v9745_v48 = vpop.f32.mrb[22].mxu0 }
 0x67b   : > { %v9805_v11 = vadd.f32 %v9804_v39, %v9745_v48  ;;  %v7342_v12 = vpop.f32.mrb[23].mxu0 }
 0x67c   : > { %v9807_v46 = vadd.f32 %v9806_v61, %v7342_v12 }
 0x67d   : > { %7447 = vst.msk [vmem:[%s12222_s20 + $0xb8] sm:$0xff] %vm7423_vm4, %v9805_v11 }
 0x67e   : > { %7446 = vst.msk [vmem:[%s12222_s20 + $0xb0] sm:$0xff] %vm7423_vm4, %v9807_v46  ;;  %v9748_v14 = vpop.f32.mrb[24].mxu0 }
 0x67f   : > { %v9809_v35 = vadd.f32 %v9808_v2, %v9748_v14  ;;  %v7352_v0 = vpop.f32.mrb[25].mxu0 }
 0x680   : > { %v9811_v25 = vadd.f32 %v9810_v13, %v7352_v0 }
 0x681   : > { %7449 = vst.msk [vmem:[%s12222_s20 + $0xc8] sm:$0xff] %vm7423_vm4, %v9809_v35 }
 0x682   : > { %7448 = vst.msk [vmem:[%s12222_s20 + $0xc0] sm:$0xff] %vm7423_vm4, %v9811_v25  ;;  %v9751_v30 = vpop.f32.mrb[26].mxu0 }
 0x683   : > { %v9813_v53 = vadd.f32 %v9812_v54, %v9751_v30  ;;  %v7362_v6 = vpop.f32.mrb[27].mxu0 }
 0x684   : > { %v9815_v5 = vadd.f32 %v9814_v16, %v7362_v6 }
 0x685   : > { %7451 = vst.msk [vmem:[%s12222_s20 + $0xd8] sm:$0xff] %vm7423_vm4, %v9813_v53 }
 0x686   : > { %7450 = vst.msk [vmem:[%s12222_s20 + $0xd0] sm:$0xff] %vm7423_vm4, %v9815_v5  ;;  %v9754_v32 = vpop.f32.mrb[28].mxu0 }
 0x687   : > { %v9817_v22 = vadd.f32 %v9816_v37, %v9754_v32  ;;  %v7372_v1 = vpop.f32.mrb[29].mxu0 }
 0x688   : > { %v9819_v49 = vadd.f32 %v9818_v27, %v7372_v1 }
 0x689   : > { %7453 = vst.msk [vmem:[%s12222_s20 + $0xe8] sm:$0xff] %vm7423_vm4, %v9817_v22 }
 0x68a   : > { %7452 = vst.msk [vmem:[%s12222_s20 + $0xe0] sm:$0xff] %vm7423_vm4, %v9819_v49  ;;  %v9757_v31 = vpop.f32.mrb[30].mxu0 }
 0x68b   : > { %v9821_v58 = vadd.f32 %v9820_v44, %v9757_v31  ;;  %v7382_v29 = vpop.f32.mrb[31].mxu0 }
 0x68c   : > { %v9823_v38 = vadd.f32 %v9822_v43, %v7382_v29 }
 0x68d   : > { %7455 = vst.msk [vmem:[%s12222_s20 + $0xf8] sm:$0xff] %vm7423_vm4, %v9821_v58 }
 0x68e   : > { %7454 = vst.msk [vmem:[%s12222_s20 + $0xf0] sm:$0xff] %vm7423_vm4, %v9823_v38 }
 0x68f PF: > { %s17_s24 = sadd.s32 1, %s10255_s24  }
 0x690   : > { %p14_p4 = scmp.ge.s32.totalorder %s17_s24, 4  }
 0x692   :  { %16 = sbr.rel (!%p14_p4) target bundleno = 1 (0x1), region = 97 }

</bundles_post_ra>
